<compile_context>
chip_gen: v7x
topology: tpu7x:2x2x1
jax: 0.10.0
libtpu: 0.0.40
codegen_flags: <defaults>
</compile_context>

<pallas_src>
import functools

import jax
import jax.numpy as jnp
from jax.experimental import pallas as pl
from jax.experimental.pallas import tpu as pltpu


def _round_up(x, m):
    return ((x + m - 1) // m) * m


@functools.lru_cache(maxsize=1)
def _vmem_capacity_bytes():
    """Per-TensorCore VMEM capacity; conservative fallback if query fails."""
    try:
        info = pltpu.get_tpu_info()
        cap = getattr(info, "vmem_capacity_bytes", None)
        if cap:
            return int(cap)
    except Exception:
        pass
    return 64 * 1024 * 1024  # v7x-safe default


# -----------------------------------------------------------------------------
# Fused (patches @ weights) + shift -> activation  Pallas kernel.
# Bias / folded BN scale is pre-multiplied into the weight matrix, so the
# epilogue is add + activation, done in f32 (v5e has no bf16 VPU/EUP).
# -----------------------------------------------------------------------------
def _fused_matmul_kernel(x_ref, w_ref, shift_ref, o_ref, *, act):
    acc = jnp.dot(x_ref[...], w_ref[...], preferred_element_type=jnp.float32)
    y = acc + shift_ref[...]
    if act == "leaky":
        y = jnp.maximum(y, 0.2 * y)          # single VPU max, no cmp+select
    elif act == "sigmoid":
        y = 1.0 / (1.0 + jnp.exp(-y))        # exact; final layer is tiny
    o_ref[...] = y.astype(o_ref.dtype)


def _pick_tm(M, Kp, Np, out_bytes):
    """Choose the M tile from the per-chip VMEM budget.

    v5e/v6e (128 MiB, 1 TC): largest tile that fits -> fewest grid steps/DMAs.
    v7x (64 MiB, 2 TCs): prefer an even count of >=2 grid steps (tm >= 64)
    so the "parallel" M axis can be sharded across both TensorCores.
    """
    cap = _vmem_capacity_bytes()
    small_vmem = cap <= (80 << 20)                     # v7x
    budget = (cap * 6) // 10 if small_vmem else (cap * 7) // 10
    budget = min(budget, 96 << 20)

    def fits(tm):
        x_b = 2 * tm * Kp * 2            # bf16 input tile, double-buffered
        w_b = 2 * Kp * Np * 2            # bf16 weight block (resident)
        o_b = 2 * tm * Np * out_bytes    # output tile, double-buffered
        return x_b + w_b + o_b <= budget

    m8 = _round_up(M, 8)
    cands = [tm for tm in (4096, 2048, 1024, 512, 256, 128, 64, 32, 16, 8)
             if tm <= m8 and fits(tm)]
    if not cands:
        return 8
    if not small_vmem:
        return cands[0]
    for tm in cands:                      # even #steps, lane-dense output
        if tm >= 64 and pl.cdiv(M, tm) >= 2 and pl.cdiv(M, tm) % 2 == 0:
            return tm
    for tm in cands:                      # at least 2 steps
        if pl.cdiv(M, tm) >= 2:
            return tm
    return cands[0]


def fused_matmul(x, w, shift, act, out_dtype):
    """x: (M, Kp) bf16, w: (Kp, Np) bf16, shift: (Np,) f32 -> (Mp, Np).

    Kp and Np must be multiples of 128 (caller pads).  Returns the M-padded
    result; caller slices once.
    """
    M, Kp = x.shape
    _, Np = w.shape
    out_bytes = jnp.dtype(out_dtype).itemsize
    tm = _pick_tm(M, Kp, Np, out_bytes)
    Mp = _round_up(M, tm)
    if Mp != M:
        x = jnp.pad(x, ((0, Mp - M), (0, 0)))
    grid = (Mp // tm,)

    cap = _vmem_capacity_bytes()
    vmem_limit = min(int(cap * 0.75), 96 * 1024 * 1024)

    kernel = functools.partial(_fused_matmul_kernel, act=act)
    out = pl.pallas_call(
        kernel,
        out_shape=jax.ShapeDtypeStruct((Mp, Np), out_dtype),
        grid_spec=pltpu.PrefetchScalarGridSpec(
            num_scalar_prefetch=0,
            grid=grid,
            in_specs=[
                pl.BlockSpec((tm, Kp), lambda i: (i, 0)),
                # Constant block indices: weight / shift tiles are fetched
                # once and stay resident across the M grid steps.
                pl.BlockSpec((Kp, Np), lambda i: (0, 0)),
                pl.BlockSpec((1, Np), lambda i: (0, 0)),
            ],
            out_specs=pl.BlockSpec((tm, Np), lambda i: (i, 0)),
        ),
        compiler_params=pltpu.CompilerParams(
            dimension_semantics=("parallel",),
            vmem_limit_bytes=vmem_limit,
        ),
    )(x, w, shift.reshape(1, Np))
    return out


# -----------------------------------------------------------------------------
# Conv layer = im2col (single XLA patches op) + fused Pallas matmul
# -----------------------------------------------------------------------------
def conv_layer(x_nhwc, w, b, *, stride, pad, act, bn=None, eps=1e-5):
    """x_nhwc: (N,H,W,Cin); w: PyTorch layout (Cout,Cin,kh,kw); b: (Cout,)."""
    Cout, Cin, kh, kw = w.shape
    N, H, W, C = x_nhwc.shape
    assert C == Cin
    Ho = (H + 2 * pad - kh) // stride + 1
    Wo = (W + 2 * pad - kw) // stride + 1

    x_bf16 = x_nhwc if x_nhwc.dtype == jnp.bfloat16 else x_nhwc.astype(jnp.bfloat16)
    # im2col in one XLA op, in bf16.  Patch features are ordered channel-major
    # (Cin, kh, kw).
    # TODO(synk): fuse this gather into the Pallas kernel (shifted pl.ds loads
    # over a padded NHWC ref) to remove the kh*kw HBM read amplification at
    # realistic resolutions.
    patches = jax.lax.conv_general_dilated_patches(
        x_bf16, filter_shape=(kh, kw), window_strides=(stride, stride),
        padding=((pad, pad), (pad, pad)),
        dimension_numbers=("NHWC", "HWIO", "NHWC"))
    K = Cin * kh * kw
    M = N * Ho * Wo
    patches = patches.reshape(M, K)

    # Weight matrix with K ordered (Cin, kh, kw) to match the patch ordering.
    wmat = jnp.transpose(w, (1, 2, 3, 0)).reshape(K, Cout).astype(jnp.float32)

    # Fold bias / inference-mode BatchNorm into per-channel scale/shift and
    # fold the scale into the weights -> kernel epilogue is add + activation.
    if bn is None:
        shift = b.astype(jnp.float32)
    else:
        gamma, beta, mean, var = bn
        scale = gamma / jnp.sqrt(var + eps)
        wmat = wmat * scale[None, :]
        shift = (b - mean) * scale + beta

    # Pad K / Cout to lane-friendly multiples of 128 (only when needed).
    Kp = _round_up(K, 128)
    Np = _round_up(Cout, 128)
    if Kp != K:
        patches = jnp.pad(patches, ((0, 0), (0, Kp - K)))
    if Kp != K or Np != Cout:
        wmat = jnp.pad(wmat, ((0, Kp - K), (0, Np - Cout)))
        shift = jnp.pad(shift, (0, Np - Cout))
    wmat = wmat.astype(jnp.bfloat16)

    # bf16 activations for LeakyReLU layers (next layer consumes bf16); f32
    # only for the final sigmoid output.
    out_dtype = jnp.float32 if act == "sigmoid" else jnp.bfloat16
    y = fused_matmul(patches, wmat, shift, act, out_dtype)   # (Mp, Np)
    if y.shape[0] != M or Np != Cout:
        y = y[:M, :Cout]                                     # single slice
    return y.reshape(N, Ho, Wo, Cout)


# -----------------------------------------------------------------------------
# Parameter init (deterministic, PyTorch-default-like uniform fan-in init)
# -----------------------------------------------------------------------------
def _conv_init(key, cout, cin, kh, kw):
    fan_in = cin * kh * kw
    bound = 1.0 / float(fan_in) ** 0.5
    kw_, kb_ = jax.random.split(key)
    w = jax.random.uniform(kw_, (cout, cin, kh, kw), jnp.float32, -bound, bound)
    b = jax.random.uniform(kb_, (cout,), jnp.float32, -bound, bound)
    return w, b


def _bn_init(c):
    return (jnp.ones((c,), jnp.float32),   # gamma
            jnp.zeros((c,), jnp.float32),  # beta
            jnp.zeros((c,), jnp.float32),  # running_mean
            jnp.ones((c,), jnp.float32))   # running_var


def init_params(key):
    k1, k2, k3, k4 = jax.random.split(key, 4)
    return {
        "conv1": _conv_init(k1, 64, 3, 4, 4),
        "conv2": _conv_init(k2, 128, 64, 4, 4),
        "bn2": _bn_init(128),
        "conv3": _conv_init(k3, 256, 128, 4, 4),
        "bn3": _bn_init(256),
        "conv4": _conv_init(k4, 1, 256, 4, 4),
    }


# -----------------------------------------------------------------------------
# Full forward pass (input/output in NCHW, matching the PyTorch module)
# -----------------------------------------------------------------------------
def discriminator_forward(params, x_nchw):
    x = jnp.transpose(x_nchw, (0, 2, 3, 1))  # NCHW -> NHWC
    w1, b1 = params["conv1"]
    x = conv_layer(x, w1, b1, stride=2, pad=1, act="leaky")
    w2, b2 = params["conv2"]
    x = conv_layer(x, w2, b2, stride=2, pad=1, act="leaky", bn=params["bn2"])
    w3, b3 = params["conv3"]
    x = conv_layer(x, w3, b3, stride=2, pad=1, act="leaky", bn=params["bn3"])
    w4, b4 = params["conv4"]
    x = conv_layer(x, w4, b4, stride=1, pad=1, act="sigmoid")
    return jnp.transpose(x, (0, 3, 1, 2))  # NHWC -> NCHW


if __name__ == "__main__":
    key = jax.random.PRNGKey(0)
    xkey, pkey = jax.random.split(key)
    # Small input consistent with the module: N=2, C=3, H=W=32.
    x = jax.random.normal(xkey, (2, 3, 32, 32), jnp.float32)
    params = init_params(pkey)

    out = jax.jit(discriminator_forward)(params, x)
    out = jax.block_until_ready(out)

    # 32 -> 16 -> 8 -> 4 -> 3 spatially; 1 output channel.
    assert out.shape == (2, 1, 3, 3), out.shape
    assert bool(jnp.all(jnp.isfinite(out)))
    # Sigmoid range.
    assert bool(jnp.all((out >= -1e-6) & (out <= 1.0 + 1e-6)))
    print("KERNEL_OK")
</pallas_src>

<mosaic_0001>
module attributes {stable_mosaic.version = 11 : i64} {
  func.func @_fused_matmul_kernel(%arg0: i32, %arg1: memref<256x128xbf16, #tpu.memory_space<vmem>>, %arg2: memref<128x128xbf16, #tpu.memory_space<vmem>>, %arg3: memref<1x128xf32, #tpu.memory_space<vmem>>, %arg4: memref<256x128xbf16, #tpu.memory_space<vmem>>) attributes {dimension_semantics = [#tpu.dimension_semantics<parallel>], iteration_bounds = array<i64: 2>, scalar_prefetch = 0 : i64, scratch_operands = 0 : i64, tpu.core_type = #tpu.core_type<tc>, window_params = [{transform_indices = @transform_0, window_bounds = array<i64: 256, 128>}, {pipeline_mode = #tpu.pipeline_mode<synchronous>, transform_indices = @transform_1, window_bounds = array<i64: 128, 128>}, {pipeline_mode = #tpu.pipeline_mode<synchronous>, transform_indices = @transform_2, window_bounds = array<i64: 1, 128>}, {transform_indices = @transform_3, window_bounds = array<i64: 256, 128>}]} {
    %c0 = arith.constant 0 : index
    %c0_0 = arith.constant 0 : index
    %0 = vector.load %arg1[%c0, %c0_0] : memref<256x128xbf16, #tpu.memory_space<vmem>>, vector<256x128xbf16>
    %c0_1 = arith.constant 0 : index
    %c0_2 = arith.constant 0 : index
    %1 = vector.load %arg2[%c0_1, %c0_2] : memref<128x128xbf16, #tpu.memory_space<vmem>>, vector<128x128xbf16>
    %cst = arith.constant dense<0.000000e+00> : vector<256x128xf32>
    %2 = tpu.matmul %0, %1, %cst {dimension_numbers = #tpu.dot_dimension_numbers<[1], [0], [0], [1], [0, 0, 1, 1], [], []>} : vector<256x128xbf16>, vector<128x128xbf16>, vector<256x128xf32> -> vector<256x128xf32>
    %c0_3 = arith.constant 0 : index
    %c0_4 = arith.constant 0 : index
    %3 = vector.load %arg3[%c0_3, %c0_4] : memref<1x128xf32, #tpu.memory_space<vmem>>, vector<1x128xf32>
    %4 = vector.broadcast %3 : vector<1x128xf32> to vector<256x128xf32>
    %5 = arith.addf %2, %4 : vector<256x128xf32>
    %cst_5 = arith.constant 2.000000e-01 : f32
    %6 = vector.broadcast %cst_5 : f32 to vector<256x128xf32>
    %7 = arith.mulf %6, %5 : vector<256x128xf32>
    %8 = arith.maximumf %5, %7 : vector<256x128xf32>
    %9 = arith.truncf %8 : vector<256x128xf32> to vector<256x128xbf16>
    %c0_6 = arith.constant 0 : index
    %c0_7 = arith.constant 0 : index
    %10 = vector.load %arg4[%c0_6, %c0_7] : memref<256x128xbf16, #tpu.memory_space<vmem>>, vector<256x128xbf16>
    tpu.vector_store %arg4[%c0_6, %c0_7], %9 {strides = array<i32>} : memref<256x128xbf16, #tpu.memory_space<vmem>>, vector<256x128xbf16>,
    return
  }
  func.func @transform_0(%arg0: i32) -> (i32, i32) {
    %c0_i32 = arith.constant 0 : i32
    %c0_i32_0 = arith.constant 0 : i32
    return %arg0, %c0_i32 : i32, i32
  }
  func.func @transform_1(%arg0: i32) -> (i32, i32) {
    %c0_i32 = arith.constant 0 : i32
    %c0_i32_0 = arith.constant 0 : i32
    %c0_i32_1 = arith.constant 0 : i32
    return %c0_i32, %c0_i32_0 : i32, i32
  }
  func.func @transform_2(%arg0: i32) -> (i32, i32) {
    %c0_i32 = arith.constant 0 : i32
    %c0_i32_0 = arith.constant 0 : i32
    %c0_i32_1 = arith.constant 0 : i32
    return %c0_i32, %c0_i32_0 : i32, i32
  }
  func.func @transform_3(%arg0: i32) -> (i32, i32) {
    %c0_i32 = arith.constant 0 : i32
    %c0_i32_0 = arith.constant 0 : i32
    return %arg0, %c0_i32 : i32, i32
  }
}

module attributes {stable_mosaic.version = 11 : i64} {
  func.func @_fused_matmul_kernel(%arg0: i32, %arg1: memref<64x1024xbf16, #tpu.memory_space<vmem>>, %arg2: memref<1024x128xbf16, #tpu.memory_space<vmem>>, %arg3: memref<1x128xf32, #tpu.memory_space<vmem>>, %arg4: memref<64x128xbf16, #tpu.memory_space<vmem>>) attributes {dimension_semantics = [#tpu.dimension_semantics<parallel>], iteration_bounds = array<i64: 2>, scalar_prefetch = 0 : i64, scratch_operands = 0 : i64, tpu.core_type = #tpu.core_type<tc>, window_params = [{transform_indices = @transform_0, window_bounds = array<i64: 64, 1024>}, {pipeline_mode = #tpu.pipeline_mode<synchronous>, transform_indices = @transform_1, window_bounds = array<i64: 1024, 128>}, {pipeline_mode = #tpu.pipeline_mode<synchronous>, transform_indices = @transform_2, window_bounds = array<i64: 1, 128>}, {transform_indices = @transform_3, window_bounds = array<i64: 64, 128>}]} {
    %c0 = arith.constant 0 : index
    %c0_0 = arith.constant 0 : index
    %0 = vector.load %arg1[%c0, %c0_0] : memref<64x1024xbf16, #tpu.memory_space<vmem>>, vector<64x1024xbf16>
    %c0_1 = arith.constant 0 : index
    %c0_2 = arith.constant 0 : index
    %1 = vector.load %arg2[%c0_1, %c0_2] : memref<1024x128xbf16, #tpu.memory_space<vmem>>, vector<1024x128xbf16>
    %cst = arith.constant dense<0.000000e+00> : vector<64x128xf32>
    %2 = tpu.matmul %0, %1, %cst {dimension_numbers = #tpu.dot_dimension_numbers<[1], [0], [0], [1], [0, 0, 1, 1], [], []>} : vector<64x1024xbf16>, vector<1024x128xbf16>, vector<64x128xf32> -> vector<64x128xf32>
    %c0_3 = arith.constant 0 : index
    %c0_4 = arith.constant 0 : index
    %3 = vector.load %arg3[%c0_3, %c0_4] : memref<1x128xf32, #tpu.memory_space<vmem>>, vector<1x128xf32>
    %4 = vector.broadcast %3 : vector<1x128xf32> to vector<64x128xf32>
    %5 = arith.addf %2, %4 : vector<64x128xf32>
    %cst_5 = arith.constant 2.000000e-01 : f32
    %6 = vector.broadcast %cst_5 : f32 to vector<64x128xf32>
    %7 = arith.mulf %6, %5 : vector<64x128xf32>
    %8 = arith.maximumf %5, %7 : vector<64x128xf32>
    %9 = arith.truncf %8 : vector<64x128xf32> to vector<64x128xbf16>
    %c0_6 = arith.constant 0 : index
    %c0_7 = arith.constant 0 : index
    %10 = vector.load %arg4[%c0_6, %c0_7] : memref<64x128xbf16, #tpu.memory_space<vmem>>, vector<64x128xbf16>
    tpu.vector_store %arg4[%c0_6, %c0_7], %9 {strides = array<i32>} : memref<64x128xbf16, #tpu.memory_space<vmem>>, vector<64x128xbf16>,
    return
  }
  func.func @transform_0(%arg0: i32) -> (i32, i32) {
    %c0_i32 = arith.constant 0 : i32
    %c0_i32_0 = arith.constant 0 : i32
    return %arg0, %c0_i32 : i32, i32
  }
  func.func @transform_1(%arg0: i32) -> (i32, i32) {
    %c0_i32 = arith.constant 0 : i32
    %c0_i32_0 = arith.constant 0 : i32
    %c0_i32_1 = arith.constant 0 : i32
    return %c0_i32, %c0_i32_0 : i32, i32
  }
  func.func @transform_2(%arg0: i32) -> (i32, i32) {
    %c0_i32 = arith.constant 0 : i32
    %c0_i32_0 = arith.constant 0 : i32
    %c0_i32_1 = arith.constant 0 : i32
    return %c0_i32, %c0_i32_0 : i32, i32
  }
  func.func @transform_3(%arg0: i32) -> (i32, i32) {
    %c0_i32 = arith.constant 0 : i32
    %c0_i32_0 = arith.constant 0 : i32
    return %arg0, %c0_i32 : i32, i32
  }
}

module attributes {stable_mosaic.version = 11 : i64} {
  func.func @_fused_matmul_kernel(%arg0: i32, %arg1: memref<16x2048xbf16, #tpu.memory_space<vmem>>, %arg2: memref<2048x256xbf16, #tpu.memory_space<vmem>>, %arg3: memref<1x256xf32, #tpu.memory_space<vmem>>, %arg4: memref<16x256xbf16, #tpu.memory_space<vmem>>) attributes {dimension_semantics = [#tpu.dimension_semantics<parallel>], iteration_bounds = array<i64: 2>, scalar_prefetch = 0 : i64, scratch_operands = 0 : i64, tpu.core_type = #tpu.core_type<tc>, window_params = [{transform_indices = @transform_0, window_bounds = array<i64: 16, 2048>}, {pipeline_mode = #tpu.pipeline_mode<synchronous>, transform_indices = @transform_1, window_bounds = array<i64: 2048, 256>}, {pipeline_mode = #tpu.pipeline_mode<synchronous>, transform_indices = @transform_2, window_bounds = array<i64: 1, 256>}, {transform_indices = @transform_3, window_bounds = array<i64: 16, 256>}]} {
    %c0 = arith.constant 0 : index
    %c0_0 = arith.constant 0 : index
    %0 = vector.load %arg1[%c0, %c0_0] : memref<16x2048xbf16, #tpu.memory_space<vmem>>, vector<16x2048xbf16>
    %c0_1 = arith.constant 0 : index
    %c0_2 = arith.constant 0 : index
    %1 = vector.load %arg2[%c0_1, %c0_2] : memref<2048x256xbf16, #tpu.memory_space<vmem>>, vector<2048x256xbf16>
    %cst = arith.constant dense<0.000000e+00> : vector<16x256xf32>
    %2 = tpu.matmul %0, %1, %cst {dimension_numbers = #tpu.dot_dimension_numbers<[1], [0], [0], [1], [0, 0, 1, 1], [], []>} : vector<16x2048xbf16>, vector<2048x256xbf16>, vector<16x256xf32> -> vector<16x256xf32>
    %c0_3 = arith.constant 0 : index
    %c0_4 = arith.constant 0 : index
    %3 = vector.load %arg3[%c0_3, %c0_4] : memref<1x256xf32, #tpu.memory_space<vmem>>, vector<1x256xf32>
    %4 = vector.broadcast %3 : vector<1x256xf32> to vector<16x256xf32>
    %5 = arith.addf %2, %4 : vector<16x256xf32>
    %cst_5 = arith.constant 2.000000e-01 : f32
    %6 = vector.broadcast %cst_5 : f32 to vector<16x256xf32>
    %7 = arith.mulf %6, %5 : vector<16x256xf32>
    %8 = arith.maximumf %5, %7 : vector<16x256xf32>
    %9 = arith.truncf %8 : vector<16x256xf32> to vector<16x256xbf16>
    %c0_6 = arith.constant 0 : index
    %c0_7 = arith.constant 0 : index
    %10 = vector.load %arg4[%c0_6, %c0_7] : memref<16x256xbf16, #tpu.memory_space<vmem>>, vector<16x256xbf16>
    tpu.vector_store %arg4[%c0_6, %c0_7], %9 {strides = array<i32>} : memref<16x256xbf16, #tpu.memory_space<vmem>>, vector<16x256xbf16>,
    return
  }
  func.func @transform_0(%arg0: i32) -> (i32, i32) {
    %c0_i32 = arith.constant 0 : i32
    %c0_i32_0 = arith.constant 0 : i32
    return %arg0, %c0_i32 : i32, i32
  }
  func.func @transform_1(%arg0: i32) -> (i32, i32) {
    %c0_i32 = arith.constant 0 : i32
    %c0_i32_0 = arith.constant 0 : i32
    %c0_i32_1 = arith.constant 0 : i32
    return %c0_i32, %c0_i32_0 : i32, i32
  }
  func.func @transform_2(%arg0: i32) -> (i32, i32) {
    %c0_i32 = arith.constant 0 : i32
    %c0_i32_0 = arith.constant 0 : i32
    %c0_i32_1 = arith.constant 0 : i32
    return %c0_i32, %c0_i32_0 : i32, i32
  }
  func.func @transform_3(%arg0: i32) -> (i32, i32) {
    %c0_i32 = arith.constant 0 : i32
    %c0_i32_0 = arith.constant 0 : i32
    return %arg0, %c0_i32 : i32, i32
  }
}

module attributes {stable_mosaic.version = 11 : i64} {
  func.func @_fused_matmul_kernel(%arg0: i32, %arg1: memref<16x4096xbf16, #tpu.memory_space<vmem>>, %arg2: memref<4096x128xbf16, #tpu.memory_space<vmem>>, %arg3: memref<1x128xf32, #tpu.memory_space<vmem>>, %arg4: memref<16x128xf32, #tpu.memory_space<vmem>>) attributes {dimension_semantics = [#tpu.dimension_semantics<parallel>], iteration_bounds = array<i64: 2>, scalar_prefetch = 0 : i64, scratch_operands = 0 : i64, tpu.core_type = #tpu.core_type<tc>, window_params = [{transform_indices = @transform_0, window_bounds = array<i64: 16, 4096>}, {pipeline_mode = #tpu.pipeline_mode<synchronous>, transform_indices = @transform_1, window_bounds = array<i64: 4096, 128>}, {pipeline_mode = #tpu.pipeline_mode<synchronous>, transform_indices = @transform_2, window_bounds = array<i64: 1, 128>}, {transform_indices = @transform_3, window_bounds = array<i64: 16, 128>}]} {
    %c0 = arith.constant 0 : index
    %c0_0 = arith.constant 0 : index
    %0 = vector.load %arg1[%c0, %c0_0] : memref<16x4096xbf16, #tpu.memory_space<vmem>>, vector<16x4096xbf16>
    %c0_1 = arith.constant 0 : index
    %c0_2 = arith.constant 0 : index
    %1 = vector.load %arg2[%c0_1, %c0_2] : memref<4096x128xbf16, #tpu.memory_space<vmem>>, vector<4096x128xbf16>
    %cst = arith.constant dense<0.000000e+00> : vector<16x128xf32>
    %2 = tpu.matmul %0, %1, %cst {dimension_numbers = #tpu.dot_dimension_numbers<[1], [0], [0], [1], [0, 0, 1, 1], [], []>} : vector<16x4096xbf16>, vector<4096x128xbf16>, vector<16x128xf32> -> vector<16x128xf32>
    %c0_3 = arith.constant 0 : index
    %c0_4 = arith.constant 0 : index
    %3 = vector.load %arg3[%c0_3, %c0_4] : memref<1x128xf32, #tpu.memory_space<vmem>>, vector<1x128xf32>
    %4 = vector.broadcast %3 : vector<1x128xf32> to vector<16x128xf32>
    %5 = arith.addf %2, %4 : vector<16x128xf32>
    %cst_5 = arith.constant 0.000000e+00 : f32
    %6 = vector.broadcast %cst_5 : f32 to vector<16x128xf32>
    %7 = arith.subf %6, %5 : vector<16x128xf32>
    %8 = math.exp %7 : vector<16x128xf32>
    %cst_6 = arith.constant 1.000000e+00 : f32
    %9 = vector.broadcast %cst_6 : f32 to vector<16x128xf32>
    %10 = arith.addf %9, %8 : vector<16x128xf32>
    %cst_7 = arith.constant 1.000000e+00 : f32
    %11 = vector.broadcast %cst_7 : f32 to vector<16x128xf32>
    %12 = arith.divf %11, %10 : vector<16x128xf32>
    %c0_8 = arith.constant 0 : index
    %c0_9 = arith.constant 0 : index
    %13 = vector.load %arg4[%c0_8, %c0_9] : memref<16x128xf32, #tpu.memory_space<vmem>>, vector<16x128xf32>
    tpu.vector_store %arg4[%c0_8, %c0_9], %12 {strides = array<i32>} : memref<16x128xf32, #tpu.memory_space<vmem>>, vector<16x128xf32>,
    return
  }
  func.func @transform_0(%arg0: i32) -> (i32, i32) {
    %c0_i32 = arith.constant 0 : i32
    %c0_i32_0 = arith.constant 0 : i32
    return %arg0, %c0_i32 : i32, i32
  }
  func.func @transform_1(%arg0: i32) -> (i32, i32) {
    %c0_i32 = arith.constant 0 : i32
    %c0_i32_0 = arith.constant 0 : i32
    %c0_i32_1 = arith.constant 0 : i32
    return %c0_i32, %c0_i32_0 : i32, i32
  }
  func.func @transform_2(%arg0: i32) -> (i32, i32) {
    %c0_i32 = arith.constant 0 : i32
    %c0_i32_0 = arith.constant 0 : i32
    %c0_i32_1 = arith.constant 0 : i32
    return %c0_i32, %c0_i32_0 : i32, i32
  }
  func.func @transform_3(%arg0: i32) -> (i32, i32) {
    %c0_i32 = arith.constant 0 : i32
    %c0_i32_0 = arith.constant 0 : i32
    return %arg0, %c0_i32 : i32, i32
  }
}

</mosaic_0001>

<bundles_post_ra>
// kernel: discriminator_forward.4
= control target key start
LH: loop header
LB: loop body
LE: loop exit
PB: predicated region body
PF: predicated region fallthrough
CT: control target
= control target key end

     0   :  { %s1158_s12 = smov 0   ;;  %s1279_s0 = inlined_call_operand.vmem [shape: bf16[512,128], index: 0, kind: input, shape index: {}]   ;;  %s1280_s1 = inlined_call_operand.vmem [shape: bf16[128,128], index: 1, kind: input, shape index: {}]   ;;  %s1281_s2 = inlined_call_operand.vmem [shape: f32[1,128], index: 2, kind: input, shape index: {}]   ;;  %s1282_s3 = inlined_call_operand.vmem [shape: bf16[512,128], index: 3, kind: output, shape index: {}]  }
   0x1 LB: > { %s815_s13 = sadd.s32 4294967295, %s1136_s12   ;;  %p819_p0 = scmp.ge.s32.totalorder %s1136_s12, 1  ;;  %s1136_s12 = sphi %s1158_s12, %s13_s12  }
   0x2   : > { %p138_p1 = scmp.lt.s32.totalorder %s1136_s12, 3 }
   0x4   : > { %p139_p2 = pnand %p819_p0, %p138_p1 }
   0x5   : > { %v1106_v0 = vld [vmem:[%s1280_s1] sm:$0xff] (!%p139_p2)   ;;  %s820_s16 = sshll.u32 (!%p139_p2), %s815_s13, 5  ;;  %v1107_v1 = vld [vmem:[%s1280_s1 + $0x8] sm:$0xff] (!%p139_p2)   ;;  %v1108_v2 = vld [vmem:[%s1280_s1 + $0x10] sm:$0xff] (!%p139_p2)  }
   0x6   : > { %142 = sbr.rel (%p139_p2) target bundleno = 287 (0x11f), region = 32  ;;  %p163_p3 = scmp.lt.s32.totalorder (!%p139_p2), %s820_s16, 63  ;;  %1034 = vmatprep.subr.bf16.mxu0 (!%p139_p2), %v1106_v0  ;;  %1082 = vmatprep.subr.bf16.mxu1 (!%p139_p2), %v1106_v0  ;;  %v1109_v3 = vld [vmem:[%s1280_s1 + $0x18] sm:$0xff] (!%p139_p2)   ;;  %v1110_v6 = vld [vmem:[%s1280_s1 + $0x20] sm:$0xff] (!%p139_p2)   ;;  %v1111_v7 = vld [vmem:[%s1280_s1 + $0x28] sm:$0xff] (!%p139_p2)  }
   0x7   : > { %1035 = vmatpush3.bf16.msra.mxu0 (!%p139_p2), %v1106_v0  ;;  %1090 = vmatpush3.bf16.msra.mxu1 (!%p139_p2), %v1106_v0  ;;  %v1112_v8 = vld [vmem:[%s1280_s1 + $0x30] sm:$0xff] (!%p139_p2)   ;;  %v1113_v9 = vld [vmem:[%s1280_s1 + $0x38] sm:$0xff] (!%p139_p2)   ;;  %v1219_v24 = vld [vmem:[%s1281_s2] ss:$0 sm:$0xff] (!%p139_p2) }
   0x8   : > { %1036 = vmatprep.subr.bf16.mxu0 (!%p139_p2), %v1107_v1  ;;  %1083 = vmatprep.subr.bf16.mxu1 (!%p139_p2), %v1107_v1 }
   0xb   : > { %1037 = vmatpush3.bf16.msra.mxu0 (!%p139_p2), %v1107_v1  ;;  %1091 = vmatpush3.bf16.msra.mxu1 (!%p139_p2), %v1107_v1 }
   0xc   : > { %1038 = vmatprep.subr.bf16.mxu0 (!%p139_p2), %v1108_v2  ;;  %1084 = vmatprep.subr.bf16.mxu1 (!%p139_p2), %v1108_v2 }
   0xd   : > { %s1284_s16 = smov (!%p163_p3, %s820_s16), 63 }
   0xe   : > { %s821_s21 = sshll.u32 %s1284_s16, 2 }
   0xf   : > { %s1183_s24 = scalar_lea.vmem %s1279_s0, %s821_s21  ;;  %1039 = vmatpush3.bf16.msra.mxu0 %v1108_v2  ;;  %1092 = vmatpush3.bf16.msra.mxu1 %v1108_v2  ;;  %s1234_s13 = scalar_lea.vmem %s1282_s3, %s821_s21 }
  0x10   : > { %v1114_v4 = vld [vmem:[%s1183_s24] sm:$0xff]   ;;  %1040 = vmatprep.subr.bf16.mxu0 %v1109_v3  ;;  %1085 = vmatprep.subr.bf16.mxu1 %v1109_v3  ;;  %v1116_v10 = vld [vmem:[%s1183_s24 + $0x8] sm:$0xff]   ;;  %v1118_v12 = vld [vmem:[%s1183_s24 + $0x10] sm:$0xff]  }
  0x11   : > { %v1115_v5 = vld [vmem:[%s1183_s24 + $0x40] sm:$0xff]   ;;  %1050 = vmatprep.mubr.bf16.mxu0 %v1114_v4  ;;  %v1117_v11 = vld [vmem:[%s1183_s24 + $0x48] sm:$0xff]   ;;  %v1119_v13 = vld [vmem:[%s1183_s24 + $0x50] sm:$0xff]  }
  0x12   : > { %1066 = vmatprep.mubr.bf16.mxu1 %v1115_v5  ;;  %v1120_v14 = vld [vmem:[%s1183_s24 + $0x18] sm:$0xff]   ;;  %v1122_v16 = vld [vmem:[%s1183_s24 + $0x20] sm:$0xff]   ;;  %v1124_v18 = vld [vmem:[%s1183_s24 + $0x28] sm:$0xff]  }
  0x13   : > { %1041 = vmatpush3.bf16.msra.mxu0 %v1109_v3  ;;  %1093 = vmatpush3.bf16.msra.mxu1 %v1109_v3  ;;  %v1121_v15 = vld [vmem:[%s1183_s24 + $0x58] sm:$0xff]   ;;  %v1123_v17 = vld [vmem:[%s1183_s24 + $0x60] sm:$0xff]   ;;  %v1125_v19 = vld [vmem:[%s1183_s24 + $0x68] sm:$0xff]  }
  0x14   : > { %1042 = vmatprep.subr.bf16.mxu0 %v1110_v6  ;;  %1086 = vmatprep.subr.bf16.mxu1 %v1110_v6  ;;  %v1126_v20 = vld [vmem:[%s1183_s24 + $0x30] sm:$0xff]   ;;  %v1128_v22 = vld [vmem:[%s1183_s24 + $0x38] sm:$0xff]  }
  0x15   : > { %v1127_v21 = vld [vmem:[%s1183_s24 + $0x70] sm:$0xff]   ;;  %v1129_v23 = vld [vmem:[%s1183_s24 + $0x78] sm:$0xff]  }
  0x17   : > { %1043 = vmatpush3.bf16.msra.mxu0 %v1110_v6  ;;  %1094 = vmatpush3.bf16.msra.mxu1 %v1110_v6 }
  0x18   : > { %1044 = vmatprep.subr.bf16.mxu0 %v1111_v7  ;;  %1087 = vmatprep.subr.bf16.mxu1 %v1111_v7 }
  0x1b   : > { %1045 = vmatpush3.bf16.msra.mxu0 %v1111_v7  ;;  %1095 = vmatpush3.bf16.msra.mxu1 %v1111_v7 }
  0x1c   : > { %1046 = vmatprep.subr.bf16.mxu0 %v1112_v8  ;;  %1088 = vmatprep.subr.bf16.mxu1 %v1112_v8 }
  0x1f   : > { %1047 = vmatpush3.bf16.msra.mxu0 %v1112_v8  ;;  %1096 = vmatpush3.bf16.msra.mxu1 %v1112_v8 }
  0x20   : > { %1048 = vmatprep.subr.bf16.mxu0 %v1113_v9  ;;  %1089 = vmatprep.subr.bf16.mxu1 %v1113_v9 }
  0x23   : > { %1049 = vmatpush3.bf16.msra.mxu0 %v1113_v9  ;;  %1097 = vmatpush3.bf16.msra.mxu1 %v1113_v9 }
  0x26   : > { %1051 = vmatmul.mubr.bf16.vlgmr.msra.gmra.mrb[0].mxu0 %v1116_v10  ;;  %1067 = vmatmul.mubr.bf16.vlgmr.msra.gmra.mrb[0].mxu1 %v1117_v11 }
  0x27   : > { %1054 = vmatprep.mubr.bf16.mxu0 %v1118_v12  ;;  %1070 = vmatprep.mubr.bf16.mxu1 %v1119_v13 }
  0x2e   : > { %1055 = vmatmul.mubr.bf16.gmra.mrb[4].mxu0 %v1120_v14  ;;  %1071 = vmatmul.mubr.bf16.gmra.mrb[4].mxu1 %v1121_v15 }
  0x2f   : > { %1058 = vmatprep.mubr.bf16.mxu0 %v1122_v16  ;;  %1074 = vmatprep.mubr.bf16.mxu1 %v1123_v17 }
  0x36   : > { %1059 = vmatmul.mubr.bf16.gmra.mrb[8].mxu0 %v1124_v18  ;;  %1075 = vmatmul.mubr.bf16.gmra.mrb[8].mxu1 %v1125_v19 }
  0x37   : > { %1062 = vmatprep.mubr.bf16.mxu0 %v1126_v20  ;;  %1078 = vmatprep.mubr.bf16.mxu1 %v1127_v21 }
  0x3e   : > { %1063 = vmatmul.mubr.bf16.gmra.mrb[12].mxu0 %v1128_v22  ;;  %1079 = vmatmul.mubr.bf16.gmra.mrb[12].mxu1 %v1129_v23 }
  0xf9   : > { %v1052_v25 = vpop.f32.mrb[0].mxu0  ;;  %v1068_v26 = vpop.f32.mrb[0].mxu1 }
  0xfa   : > { %v417_v27 = vadd.f32 %v1052_v25, %v1219_v24  ;;  %v481_v28 = vadd.f32 %v1068_v26, %v1219_v24  ;;  %v408_v29 = vpop.f32.mrb[1].mxu0  ;;  %v472_v30 = vpop.f32.mrb[1].mxu1 }
  0xfb   : > { %v409_v31 = vadd.f32 %v1219_v24, %v408_v29  ;;  %v473_v32 = vadd.f32 %v1219_v24, %v472_v30  ;;  %v1053_v33 = vpop.f32.mrb[2].mxu0  ;;  %v1069_v34 = vpop.f32.mrb[2].mxu1 }
  0xfc   : > { %v537_v35 = vmul.f32 0.2, %v417_v27  ;;  %v553_v36 = vmul.f32 0.2, %v481_v28  ;;  %v420_v37 = vadd.f32 %v1053_v33, %v1219_v24  ;;  %v484_v38 = vadd.f32 %v1069_v34, %v1219_v24  ;;  %v411_v39 = vpop.f32.mrb[3].mxu0  ;;  %v475_v40 = vpop.f32.mrb[3].mxu1 }
  0xfd   : > { %v535_v41 = vmul.f32 0.2, %v409_v31  ;;  %v551_v42 = vmul.f32 0.2, %v473_v32  ;;  %v412_v43 = vadd.f32 %v1219_v24, %v411_v39  ;;  %v476_v44 = vadd.f32 %v1219_v24, %v475_v40 }
  0xfe   : > { %v538_v45 = vmul.f32 0.2, %v420_v37  ;;  %v554_v46 = vmul.f32 0.2, %v484_v38  ;;  %v569_v49 = vmax.f32 %v417_v27, %v537_v35  ;;  %v585_v50 = vmax.f32 %v481_v28, %v553_v36 }
  0xff   : > { %v536_v47 = vmul.f32 0.2, %v412_v43  ;;  %v552_v48 = vmul.f32 0.2, %v476_v44  ;;  %v567_v53 = vmax.f32 %v409_v31, %v535_v41  ;;  %v583_v54 = vmax.f32 %v473_v32, %v551_v42 }
 0x100   : > { %v570_v51 = vmax.f32 %v420_v37, %v538_v45  ;;  %v586_v52 = vmax.f32 %v484_v38, %v554_v46 }
 0x101   : > { %v568_v55 = vmax.f32 %v412_v43, %v536_v47  ;;  %v584_v56 = vmax.f32 %v476_v44, %v552_v48  ;;  %v1056_v57 = vpop.f32.mrb[4].mxu0  ;;  %v1072_v58 = vpop.f32.mrb[4].mxu1 }
 0x102   : > { %v923_v59 = vpack.c.bf16 %v570_v51, %v569_v49  ;;  %v963_v60 = vpack.c.bf16 %v586_v52, %v585_v50  ;;  %v433_v61 = vadd.f32 %v1056_v57, %v1219_v24  ;;  %v497_v62 = vadd.f32 %v1072_v58, %v1219_v24  ;;  %v424_v63 = vpop.f32.mrb[5].mxu0  ;;  %v488_v0 = vpop.f32.mrb[5].mxu1 }
 0x103   : > { %v918_v1 = vpack.c.bf16 %v568_v55, %v567_v53  ;;  %v958_v2 = vpack.c.bf16 %v584_v56, %v583_v54  ;;  %v425_v3 = vadd.f32 %v1219_v24, %v424_v63  ;;  %v489_v4 = vadd.f32 %v1219_v24, %v488_v0  ;;  %v1057_v5 = vpop.f32.mrb[6].mxu0  ;;  %v1073_v6 = vpop.f32.mrb[6].mxu1 }
 0x104   : > { %995 = vst [vmem:[%s1234_s13 + $0x8] sm:$0xff] %v923_v59   ;;  %1003 = vst [vmem:[%s1234_s13 + $0x48] sm:$0xff] %v963_v60   ;;  %v541_v7 = vmul.f32 0.2, %v433_v61  ;;  %v557_v8 = vmul.f32 0.2, %v497_v62  ;;  %v436_v9 = vadd.f32 %v1057_v5, %v1219_v24  ;;  %v500_v10 = vadd.f32 %v1073_v6, %v1219_v24 }
 0x105   : > { %v427_v11 = vpop.f32.mrb[7].mxu0  ;;  %v491_v12 = vpop.f32.mrb[7].mxu1  ;;  %919 = vst [vmem:[%s1234_s13] sm:$0xff] %v918_v1   ;;  %1002 = vst [vmem:[%s1234_s13 + $0x40] sm:$0xff] %v958_v2   ;;  %v539_v13 = vmul.f32 0.2, %v425_v3 }
 0x106   : > { %v555_v14 = vmul.f32 0.2, %v489_v4  ;;  %v428_v15 = vadd.f32 %v1219_v24, %v427_v11  ;;  %v492_v16 = vadd.f32 %v1219_v24, %v491_v12  ;;  %v542_v17 = vmul.f32 0.2, %v436_v9 }
 0x107   : > { %v558_v18 = vmul.f32 0.2, %v500_v10  ;;  %v573_v21 = vmax.f32 %v433_v61, %v541_v7  ;;  %v589_v22 = vmax.f32 %v497_v62, %v557_v8  ;;  %v571_v26 = vmax.f32 %v425_v3, %v539_v13 }
 0x108   : > { %v540_v19 = vmul.f32 0.2, %v428_v15  ;;  %v556_v20 = vmul.f32 0.2, %v492_v16  ;;  %v574_v23 = vmax.f32 %v436_v9, %v542_v17  ;;  %v587_v27 = vmax.f32 %v489_v4, %v555_v14 }
 0x109   : > { %v590_v25 = vmax.f32 %v500_v10, %v558_v18  ;;  %v1060_v30 = vpop.f32.mrb[8].mxu0  ;;  %v1076_v31 = vpop.f32.mrb[8].mxu1 }
 0x10a   : > { %v572_v28 = vmax.f32 %v428_v15, %v540_v19  ;;  %v588_v29 = vmax.f32 %v492_v16, %v556_v20  ;;  %v933_v32 = vpack.c.bf16 %v574_v23, %v573_v21  ;;  %v449_v34 = vadd.f32 %v1060_v30, %v1219_v24  ;;  %v440_v36 = vpop.f32.mrb[9].mxu0  ;;  %v504_v37 = vpop.f32.mrb[9].mxu1 }
 0x10b   : > { %v973_v33 = vpack.c.bf16 %v590_v25, %v589_v22  ;;  %v513_v35 = vadd.f32 %v1076_v31, %v1219_v24  ;;  %v441_v40 = vadd.f32 %v1219_v24, %v440_v36  ;;  %v505_v41 = vadd.f32 %v1219_v24, %v504_v37  ;;  %v1061_v42 = vpop.f32.mrb[10].mxu0  ;;  %v1077_v43 = vpop.f32.mrb[10].mxu1 }
 0x10c   : > { %v928_v38 = vpack.c.bf16 %v572_v28, %v571_v26  ;;  %v968_v39 = vpack.c.bf16 %v588_v29, %v587_v27  ;;  %997 = vst [vmem:[%s1234_s13 + $0x18] sm:$0xff] %v933_v32   ;;  %v545_v44 = vmul.f32 0.2, %v449_v34  ;;  %v452_v46 = vadd.f32 %v1061_v42, %v1219_v24  ;;  %v443_v48 = vpop.f32.mrb[11].mxu0  ;;  %v507_v49 = vpop.f32.mrb[11].mxu1 }
 0x10d   : > { %1005 = vst [vmem:[%s1234_s13 + $0x58] sm:$0xff] %v973_v33   ;;  %v561_v45 = vmul.f32 0.2, %v513_v35  ;;  %v516_v47 = vadd.f32 %v1077_v43, %v1219_v24  ;;  %v543_v50 = vmul.f32 0.2, %v441_v40  ;;  %v444_v52 = vadd.f32 %v1219_v24, %v443_v48 }
 0x10e   : > { %996 = vst [vmem:[%s1234_s13 + $0x10] sm:$0xff] %v928_v38   ;;  %1004 = vst [vmem:[%s1234_s13 + $0x50] sm:$0xff] %v968_v39   ;;  %v559_v51 = vmul.f32 0.2, %v505_v41  ;;  %v508_v53 = vadd.f32 %v1219_v24, %v507_v49  ;;  %v546_v54 = vmul.f32 0.2, %v452_v46  ;;  %v577_v58 = vmax.f32 %v449_v34, %v545_v44 }
 0x10f   : > { %v562_v55 = vmul.f32 0.2, %v516_v47  ;;  %v544_v56 = vmul.f32 0.2, %v444_v52  ;;  %v593_v59 = vmax.f32 %v513_v35, %v561_v45  ;;  %v575_v62 = vmax.f32 %v441_v40, %v543_v50 }
 0x110   : > { %v560_v57 = vmul.f32 0.2, %v508_v53  ;;  %v578_v60 = vmax.f32 %v452_v46, %v546_v54  ;;  %v591_v63 = vmax.f32 %v505_v41, %v559_v51 }
 0x111   : > { %v594_v61 = vmax.f32 %v516_v47, %v562_v55  ;;  %v576_v0 = vmax.f32 %v444_v52, %v544_v56  ;;  %v1064_v2 = vpop.f32.mrb[12].mxu0  ;;  %v1080_v3 = vpop.f32.mrb[12].mxu1 }
 0x112   : > { %v592_v1 = vmax.f32 %v508_v53, %v560_v57  ;;  %v943_v4 = vpack.c.bf16 %v578_v60, %v577_v58  ;;  %v465_v6 = vadd.f32 %v1064_v2, %v1219_v24  ;;  %v529_v7 = vadd.f32 %v1080_v3, %v1219_v24  ;;  %v456_v8 = vpop.f32.mrb[13].mxu0  ;;  %v520_v9 = vpop.f32.mrb[13].mxu1 }
 0x113   : > { %v983_v5 = vpack.c.bf16 %v594_v61, %v593_v59  ;;  %v938_v10 = vpack.c.bf16 %v576_v0, %v575_v62  ;;  %v457_v12 = vadd.f32 %v1219_v24, %v456_v8  ;;  %v521_v13 = vadd.f32 %v1219_v24, %v520_v9  ;;  %v1065_v14 = vpop.f32.mrb[14].mxu0  ;;  %v1081_v15 = vpop.f32.mrb[14].mxu1 }
 0x114   : > { %v978_v11 = vpack.c.bf16 %v592_v1, %v591_v63  ;;  %999 = vst [vmem:[%s1234_s13 + $0x28] sm:$0xff] %v943_v4   ;;  %v549_v16 = vmul.f32 0.2, %v465_v6  ;;  %v565_v17 = vmul.f32 0.2, %v529_v7  ;;  %v468_v18 = vadd.f32 %v1065_v14, %v1219_v24  ;;  %v459_v20 = vpop.f32.mrb[15].mxu0 }
 0x115   : > { %1007 = vst [vmem:[%s1234_s13 + $0x68] sm:$0xff] %v983_v5   ;;  %v532_v19 = vadd.f32 %v1081_v15, %v1219_v24  ;;  %v523_v21 = vpop.f32.mrb[15].mxu1  ;;  %998 = vst [vmem:[%s1234_s13 + $0x20] sm:$0xff] %v938_v10   ;;  %v547_v22 = vmul.f32 0.2, %v457_v12  ;;  %v460_v25 = vadd.f32 %v1219_v24, %v459_v20 }
 0x116   : > { %1006 = vst [vmem:[%s1234_s13 + $0x60] sm:$0xff] %v978_v11   ;;  %v563_v23 = vmul.f32 0.2, %v521_v13  ;;  %v524_v26 = vadd.f32 %v1219_v24, %v523_v21  ;;  %v550_v27 = vmul.f32 0.2, %v468_v18  ;;  %v581_v31 = vmax.f32 %v465_v6, %v549_v16 }
 0x117   : > { %v566_v28 = vmul.f32 0.2, %v532_v19  ;;  %v548_v29 = vmul.f32 0.2, %v460_v25  ;;  %v597_v32 = vmax.f32 %v529_v7, %v565_v17  ;;  %v579_v35 = vmax.f32 %v457_v12, %v547_v22 }
 0x118   : > { %v564_v30 = vmul.f32 0.2, %v524_v26  ;;  %v582_v33 = vmax.f32 %v468_v18, %v550_v27  ;;  %v595_v36 = vmax.f32 %v521_v13, %v563_v23 }
 0x119   : > { %v598_v34 = vmax.f32 %v532_v19, %v566_v28  ;;  %v580_v37 = vmax.f32 %v460_v25, %v548_v29 }
 0x11a   : > { %v596_v38 = vmax.f32 %v524_v26, %v564_v30  ;;  %v953_v39 = vpack.c.bf16 %v582_v33, %v581_v31 }
 0x11b   : > { %v993_v40 = vpack.c.bf16 %v598_v34, %v597_v32  ;;  %v948_v41 = vpack.c.bf16 %v580_v37, %v579_v35 }
 0x11c   : > { %v988_v24 = vpack.c.bf16 %v596_v38, %v595_v36  ;;  %1001 = vst [vmem:[%s1234_s13 + $0x38] sm:$0xff] %v953_v39  }
 0x11d   : > { %1009 = vst [vmem:[%s1234_s13 + $0x78] sm:$0xff] %v993_v40   ;;  %1000 = vst [vmem:[%s1234_s13 + $0x30] sm:$0xff] %v948_v41  }
 0x11e   : > { %1008 = vst [vmem:[%s1234_s13 + $0x70] sm:$0xff] %v988_v24  }
 0x11f PF: > { %s13_s12 = sadd.s32 1, %s1136_s12  }
 0x120   : > { %p10_p4 = scmp.ge.s32.totalorder %s13_s12, 4  }
 0x122   :  { %12 = sbr.rel (!%p10_p4) target bundleno = 1 (0x1), region = 62 }

// kernel: discriminator_forward.5
= control target key start
LH: loop header
LB: loop body
LE: loop exit
PB: predicated region body
PF: predicated region fallthrough
CT: control target
= control target key end

     0   :  { %s1670_s12 = smov 0   ;;  %s1949_s0 = inlined_call_operand.vmem [shape: bf16[128,1024], index: 0, kind: input, shape index: {}]   ;;  %s1950_s1 = inlined_call_operand.vmem [shape: bf16[1024,128], index: 1, kind: input, shape index: {}]   ;;  %s1951_s2 = inlined_call_operand.vmem [shape: f32[1,128], index: 2, kind: input, shape index: {}]   ;;  %s1952_s3 = inlined_call_operand.vmem [shape: bf16[128,128], index: 3, kind: output, shape index: {}]  }
   0x1 LB: > { %s1261_s13 = sadd.s32 4294967295, %s1648_s12   ;;  %p1265_p0 = scmp.ge.s32.totalorder %s1648_s12, 1  ;;  %s1648_s12 = sphi %s1670_s12, %s13_s12  }
   0x2   : > { %p139_p1 = scmp.lt.s32.totalorder %s1648_s12, 3 }
   0x4   : > { %p140_p2 = pnand %p1265_p0, %p139_p1 }
   0x5   : > { %v1578_v0 = vld [vmem:[%s1950_s1 + $0x40] sm:$0xff] (!%p140_p2)   ;;  %v1582_v4 = vld [vmem:[%s1950_s1 + $0x48] sm:$0xff] (!%p140_p2)   ;;  %v1586_v8 = vld [vmem:[%s1950_s1 + $0x50] sm:$0xff] (!%p140_p2)   ;;  %s1266_s21 = sshll.u32 (!%p140_p2), %s1261_s13, 3 }
   0x6   : > { %143 = sbr.rel (%p140_p2) target bundleno = 323 (0x143), region = 32  ;;  %v1579_v1 = vld [vmem:[%s1950_s1 + $0xc0] sm:$0xff] (!%p140_p2)   ;;  %1410 = vmatprep.subr.bf16.mxu0 (!%p140_p2), %v1578_v0  ;;  %v1583_v5 = vld [vmem:[%s1950_s1 + $0xc8] sm:$0xff] (!%p140_p2)   ;;  %v1587_v9 = vld [vmem:[%s1950_s1 + $0xd0] sm:$0xff] (!%p140_p2)   ;;  %p165_p3 = scmp.lt.s32.totalorder (!%p140_p2), %s1266_s21, 15 }
   0x7   : > { %v1580_v2 = vld [vmem:[%s1950_s1] sm:$0xff] (!%p140_p2)   ;;  %1450 = vmatprep.subr.bf16.mxu1 (!%p140_p2), %v1579_v1  ;;  %v1584_v6 = vld [vmem:[%s1950_s1 + $0x8] sm:$0xff] (!%p140_p2)   ;;  %v1588_v10 = vld [vmem:[%s1950_s1 + $0x10] sm:$0xff] (!%p140_p2)  }
   0x8   : > { %v1581_v3 = vld [vmem:[%s1950_s1 + $0x80] sm:$0xff] (!%p140_p2)   ;;  %1411 = vmatpush3.bf16.msra.mxu0 (!%p140_p2), %v1580_v2  ;;  %v1585_v7 = vld [vmem:[%s1950_s1 + $0x88] sm:$0xff] (!%p140_p2)   ;;  %v1589_v11 = vld [vmem:[%s1950_s1 + $0x90] sm:$0xff] (!%p140_p2)  }
   0x9   : > { %1451 = vmatpush3.bf16.msra.mxu1 (!%p140_p2), %v1581_v3  ;;  %1412 = vmatprep.subr.bf16.mxu0 (!%p140_p2), %v1582_v4  ;;  %v1590_v12 = vld [vmem:[%s1950_s1 + $0x58] sm:$0xff] (!%p140_p2)   ;;  %v1594_v16 = vld [vmem:[%s1950_s1 + $0x60] sm:$0xff] (!%p140_p2)   ;;  %v1598_v20 = vld [vmem:[%s1950_s1 + $0x68] sm:$0xff] (!%p140_p2)  }
   0xa   : > { %1452 = vmatprep.subr.bf16.mxu1 (!%p140_p2), %v1583_v5  ;;  %v1591_v13 = vld [vmem:[%s1950_s1 + $0xd8] sm:$0xff] (!%p140_p2)   ;;  %v1595_v17 = vld [vmem:[%s1950_s1 + $0xe0] sm:$0xff] (!%p140_p2)   ;;  %v1599_v21 = vld [vmem:[%s1950_s1 + $0xe8] sm:$0xff] (!%p140_p2)  }
   0xb   : > { %v1592_v14 = vld [vmem:[%s1950_s1 + $0x18] sm:$0xff] (!%p140_p2)   ;;  %v1596_v18 = vld [vmem:[%s1950_s1 + $0x20] sm:$0xff] (!%p140_p2)   ;;  %v1600_v22 = vld [vmem:[%s1950_s1 + $0x28] sm:$0xff] (!%p140_p2)  }
   0xc   : > { %1413 = vmatpush3.bf16.msra.mxu0 (!%p140_p2), %v1584_v6  ;;  %v1593_v15 = vld [vmem:[%s1950_s1 + $0x98] sm:$0xff] (!%p140_p2)   ;;  %v1597_v19 = vld [vmem:[%s1950_s1 + $0xa0] sm:$0xff] (!%p140_p2)   ;;  %v1601_v23 = vld [vmem:[%s1950_s1 + $0xa8] sm:$0xff] (!%p140_p2)  }
   0xd   : > { %1453 = vmatpush3.bf16.msra.mxu1 %v1585_v7  ;;  %1414 = vmatprep.subr.bf16.mxu0 %v1586_v8  ;;  %s1954_s21 = smov (!%p165_p3, %s1266_s21), 15  ;;  %v1602_v24 = vld [vmem:[%s1950_s1 + $0x70] sm:$0xff]   ;;  %v1606_v28 = vld [vmem:[%s1950_s1 + $0x78] sm:$0xff]   ;;  %v1610_v40 = vld [vmem:[%s1950_s1 + $0x140] sm:$0xff]  }
   0xe   : > { %1454 = vmatprep.subr.bf16.mxu1 %v1587_v9  ;;  %v1603_v25 = vld [vmem:[%s1950_s1 + $0xf0] sm:$0xff]   ;;  %s1378_s18 = sshll.u32 %s1954_s21, 5  ;;  %v1607_v29 = vld [vmem:[%s1950_s1 + $0xf8] sm:$0xff]   ;;  %v1611_v41 = vld [vmem:[%s1950_s1 + $0x1c0] sm:$0xff]  }
   0xf   : > { %v1604_v26 = vld [vmem:[%s1950_s1 + $0x30] sm:$0xff]   ;;  %s1776_s28 = scalar_lea.vmem %s1949_s0, %s1378_s18  ;;  %v1608_v30 = vld [vmem:[%s1950_s1 + $0x38] sm:$0xff]   ;;  %v1612_v42 = vld [vmem:[%s1950_s1 + $0x100] sm:$0xff]  }
  0x10   : > { %1415 = vmatpush3.bf16.msra.mxu0 %v1588_v10  ;;  %v1605_v27 = vld [vmem:[%s1950_s1 + $0xb0] sm:$0xff]   ;;  %v1609_v31 = vld [vmem:[%s1950_s1 + $0xb8] sm:$0xff]   ;;  %v178_v32 = vld [vmem:[%s1776_s28] sm:$0xff] }
  0x11   : > { %1455 = vmatpush3.bf16.msra.mxu1 %v1589_v11  ;;  %1416 = vmatprep.subr.bf16.mxu0 %v1590_v12  ;;  %v182_v33 = vld [vmem:[%s1776_s28 + $0x20] sm:$0xff]  ;;  %v179_v34 = vld [vmem:[%s1776_s28 + $0x8] sm:$0xff]  ;;  %v1618_v56 = vld [vmem:[%s1950_s1 + $0x150] sm:$0xff]  }
  0x12   : > { %1456 = vmatprep.subr.bf16.mxu1 %v1591_v13  ;;  %v1272_v35 = vcombine.low %v178_v32, %v182_v33  ;;  %v1273_v36 = vcombine.high %v178_v32, %v182_v33  ;;  %v183_v37 = vld [vmem:[%s1776_s28 + $0x28] sm:$0xff]  ;;  %v1613_v43 = vld [vmem:[%s1950_s1 + $0x180] sm:$0xff]   ;;  %v1619_v57 = vld [vmem:[%s1950_s1 + $0x1d0] sm:$0xff]  }
  0x13   : > { %v1274_v38 = vcombine.low %v179_v34, %v183_v37  ;;  %v1275_v39 = vcombine.high %v179_v34, %v183_v37  ;;  %v1614_v44 = vld [vmem:[%s1950_s1 + $0x148] sm:$0xff]   ;;  %v186_v48 = vld [vmem:[%s1776_s28 + $0x40] sm:$0xff]  ;;  %v1620_v58 = vld [vmem:[%s1950_s1 + $0x110] sm:$0xff]  }
  0x14   : > { %1417 = vmatpush3.bf16.msra.mxu0 %v1592_v14  ;;  %921 = vmatprep.mubr.bf16.mxu0 %v1273_v36  ;;  %v1615_v45 = vld [vmem:[%s1950_s1 + $0x1c8] sm:$0xff]   ;;  %v190_v49 = vld [vmem:[%s1776_s28 + $0x60] sm:$0xff]  ;;  %v1621_v59 = vld [vmem:[%s1950_s1 + $0x190] sm:$0xff]  }
  0x15   : > { %1457 = vmatpush3.bf16.msra.mxu1 %v1593_v15  ;;  %1418 = vmatprep.subr.bf16.mxu0 %v1594_v16  ;;  %v1616_v46 = vld [vmem:[%s1950_s1 + $0x108] sm:$0xff]   ;;  %v1281_v50 = vcombine.high %v186_v48, %v190_v49  ;;  %v1280_v53 = vcombine.low %v186_v48, %v190_v49  ;;  %v1622_v60 = vld [vmem:[%s1950_s1 + $0x158] sm:$0xff]   ;;  %v194_v0 = vld [vmem:[%s1776_s28 + $0x80] sm:$0xff] }
  0x16   : > { %1458 = vmatprep.subr.bf16.mxu1 %v1595_v17  ;;  %986 = vmatprep.mubr.bf16.mxu1 %v1275_v39  ;;  %v1617_v47 = vld [vmem:[%s1950_s1 + $0x188] sm:$0xff]   ;;  %v1623_v61 = vld [vmem:[%s1950_s1 + $0x1d8] sm:$0xff]   ;;  %v198_v1 = vld [vmem:[%s1776_s28 + $0xa0] sm:$0xff] }
  0x17   : > { %v187_v51 = vld [vmem:[%s1776_s28 + $0x48] sm:$0xff]  ;;  %v1624_v62 = vld [vmem:[%s1950_s1 + $0x118] sm:$0xff]   ;;  %v1289_v4 = vcombine.high %v194_v0, %v198_v1  ;;  %v1288_v6 = vcombine.low %v194_v0, %v198_v1  ;;  %v1626_v8 = vld [vmem:[%s1950_s1 + $0x160] sm:$0xff]  }
  0x18   : > { %1419 = vmatpush3.bf16.msra.mxu0 %v1596_v18  ;;  %v191_v52 = vld [vmem:[%s1776_s28 + $0x68] sm:$0xff]  ;;  %v1625_v63 = vld [vmem:[%s1950_s1 + $0x198] sm:$0xff]   ;;  %v1627_v9 = vld [vmem:[%s1950_s1 + $0x1e0] sm:$0xff]  }
  0x19   : > { %1459 = vmatpush3.bf16.msra.mxu1 %v1597_v19  ;;  %1420 = vmatprep.subr.bf16.mxu0 %v1598_v20  ;;  %v1283_v54 = vcombine.high %v187_v51, %v191_v52  ;;  %v1282_v55 = vcombine.low %v187_v51, %v191_v52  ;;  %v195_v2 = vld [vmem:[%s1776_s28 + $0x88] sm:$0xff]  ;;  %v1628_v10 = vld [vmem:[%s1950_s1 + $0x120] sm:$0xff]   ;;  %v180_v32 = vld [vmem:[%s1776_s28 + $0x10] sm:$0xff] }
  0x1a   : > { %1460 = vmatprep.subr.bf16.mxu1 %v1599_v21  ;;  %v199_v3 = vld [vmem:[%s1776_s28 + $0xa8] sm:$0xff]  ;;  %v1629_v11 = vld [vmem:[%s1950_s1 + $0x1a0] sm:$0xff]   ;;  %v184_v33 = vld [vmem:[%s1776_s28 + $0x30] sm:$0xff] }
  0x1b   : > { %v1291_v5 = vcombine.high %v195_v2, %v199_v3  ;;  %v1290_v7 = vcombine.low %v195_v2, %v199_v3  ;;  %v1630_v12 = vld [vmem:[%s1950_s1 + $0x168] sm:$0xff]   ;;  %v202_v16 = vld [vmem:[%s1776_s28 + $0xc0] sm:$0xff]  ;;  %v1276_v34 = vcombine.low %v180_v32, %v184_v33  ;;  %v181_v36 = vld [vmem:[%s1776_s28 + $0x18] sm:$0xff] }
  0x1c   : > { %1421 = vmatpush3.bf16.msra.mxu0 %v1600_v22  ;;  %v1631_v13 = vld [vmem:[%s1950_s1 + $0x1e8] sm:$0xff]   ;;  %v206_v17 = vld [vmem:[%s1776_s28 + $0xe0] sm:$0xff]  ;;  %v185_v37 = vld [vmem:[%s1776_s28 + $0x38] sm:$0xff] }
  0x1d   : > { %1461 = vmatpush3.bf16.msra.mxu1 %v1601_v23  ;;  %1422 = vmatprep.subr.bf16.mxu0 %v1602_v24  ;;  %v1632_v14 = vld [vmem:[%s1950_s1 + $0x128] sm:$0xff]   ;;  %v1297_v19 = vcombine.high %v202_v16, %v206_v17  ;;  %v1296_v21 = vcombine.low %v202_v16, %v206_v17  ;;  %v1634_v24 = vld [vmem:[%s1950_s1 + $0x170] sm:$0xff]   ;;  %v1278_v39 = vcombine.low %v181_v36, %v185_v37  ;;  %v197_v48 = vld [vmem:[%s1776_s28 + $0x98] sm:$0xff] }
  0x1e   : > { %1462 = vmatprep.subr.bf16.mxu1 %v1603_v25  ;;  %v1633_v15 = vld [vmem:[%s1950_s1 + $0x1a8] sm:$0xff]   ;;  %v1635_v25 = vld [vmem:[%s1950_s1 + $0x1f0] sm:$0xff]   ;;  %v201_v49 = vld [vmem:[%s1776_s28 + $0xb8] sm:$0xff] }
  0x1f   : > { %v203_v18 = vld [vmem:[%s1776_s28 + $0xc8] sm:$0xff]  ;;  %v1271_v2 = vld [vmem:[%s1951_s2] ss:$0 sm:$0xff] }
  0x20   : > { %1423 = vmatpush3.bf16.msra.mxu0 %v1604_v26  ;;  %v207_v20 = vld [vmem:[%s1776_s28 + $0xe8] sm:$0xff]  ;;  %v1636_v26 = vld [vmem:[%s1950_s1 + $0x130] sm:$0xff]  }
  0x21   : > { %1463 = vmatpush3.bf16.msra.mxu1 %v1605_v27  ;;  %1424 = vmatprep.subr.bf16.mxu0 %v1606_v28  ;;  %v1299_v22 = vcombine.high %v203_v18, %v207_v20  ;;  %v1298_v23 = vcombine.low %v203_v18, %v207_v20  ;;  %v1637_v27 = vld [vmem:[%s1950_s1 + $0x1b0] sm:$0xff]   ;;  %v1638_v28 = vld [vmem:[%s1950_s1 + $0x178] sm:$0xff]  }
  0x22   : > { %1464 = vmatprep.subr.bf16.mxu1 %v1607_v29  ;;  %v1639_v29 = vld [vmem:[%s1950_s1 + $0x1f8] sm:$0xff]  }
  0x24   : > { %1425 = vmatpush3.bf16.msra.mxu0 %v1608_v30  ;;  %v1640_v30 = vld [vmem:[%s1950_s1 + $0x138] sm:$0xff]  }
  0x25   : > { %1465 = vmatpush3.bf16.msra.mxu1 %v1609_v31  ;;  %1490 = vmatprep.subr.bf16.mxu0 %v1610_v40  ;;  %v1641_v31 = vld [vmem:[%s1950_s1 + $0x1b8] sm:$0xff]   ;;  %v1279_v40 = vcombine.high %v181_v36, %v185_v37 }
  0x26   : > { %1530 = vmatprep.subr.bf16.mxu1 %v1611_v41  ;;  %v192_v41 = vld [vmem:[%s1776_s28 + $0x70] sm:$0xff] }
  0x27   : > { %922 = vmatmul.mubr.bf16.vlgmr.msra.gmra.mrb[0].mxu0 %v1272_v35  ;;  %v1277_v35 = vcombine.high %v180_v32, %v184_v33 }
  0x28   : > { %987 = vmatmul.mubr.bf16.vlgmr.msra.gmra.mrb[0].mxu1 %v1274_v38  ;;  %1491 = vmatpush3.bf16.msra.mxu0 %v1612_v42  ;;  %v188_v38 = vld [vmem:[%s1776_s28 + $0x50] sm:$0xff]  ;;  %v189_v42 = vld [vmem:[%s1776_s28 + $0x58] sm:$0xff] }
  0x29   : > { %1531 = vmatpush3.bf16.msra.mxu1 %v1613_v43  ;;  %1492 = vmatprep.subr.bf16.mxu0 %v1614_v44  ;;  %v193_v43 = vld [vmem:[%s1776_s28 + $0x78] sm:$0xff]  ;;  %v1285_v44 = vcombine.high %v188_v38, %v192_v41 }
  0x2a   : > { %1532 = vmatprep.subr.bf16.mxu1 %v1615_v45  ;;  %929 = vmatprep.mubr.bf16.mxu0 %v1281_v50  ;;  %v1287_v45 = vcombine.high %v189_v42, %v193_v43  ;;  %v1284_v50 = vcombine.low %v188_v38, %v192_v41  ;;  %v1286_v51 = vcombine.low %v189_v42, %v193_v43 }
  0x2b   : > { %994 = vmatprep.mubr.bf16.mxu1 %v1283_v54  ;;  %v204_v54 = vld [vmem:[%s1776_s28 + $0xd0] sm:$0xff] }
  0x2c   : > { %1493 = vmatpush3.bf16.msra.mxu0 %v1616_v46  ;;  %v196_v46 = vld [vmem:[%s1776_s28 + $0x90] sm:$0xff] }
  0x2d   : > { %1533 = vmatpush3.bf16.msra.mxu1 %v1617_v47  ;;  %1494 = vmatprep.subr.bf16.mxu0 %v1618_v56  ;;  %v200_v47 = vld [vmem:[%s1776_s28 + $0xb0] sm:$0xff]  ;;  %v205_v56 = vld [vmem:[%s1776_s28 + $0xd8] sm:$0xff] }
  0x2e   : > { %1534 = vmatprep.subr.bf16.mxu1 %v1619_v57  ;;  %v1293_v52 = vcombine.high %v196_v46, %v200_v47  ;;  %v209_v57 = vld [vmem:[%s1776_s28 + $0xf8] sm:$0xff] }
  0x2f   : > { %930 = vmatmul.mubr.bf16.gmra.mrb[4].mxu0 %v1280_v53  ;;  %v1295_v53 = vcombine.high %v197_v48, %v201_v49 }
  0x30   : > { %995 = vmatmul.mubr.bf16.gmra.mrb[4].mxu1 %v1282_v55  ;;  %1495 = vmatpush3.bf16.msra.mxu0 %v1620_v58  ;;  %v208_v55 = vld [vmem:[%s1776_s28 + $0xf0] sm:$0xff]  ;;  %v1292_v58 = vcombine.low %v196_v46, %v200_v47  ;;  %s1270_s28 = sshll.u32 %s1954_s21, 2 }
  0x31   : > { %1535 = vmatpush3.bf16.msra.mxu1 %v1621_v59  ;;  %1496 = vmatprep.subr.bf16.mxu0 %v1622_v60  ;;  %v1294_v59 = vcombine.low %v197_v48, %v201_v49  ;;  %v1301_v60 = vcombine.high %v204_v54, %v208_v55  ;;  %s1935_s29 = scalar_lea.vmem %s1952_s3, %s1270_s28 }
  0x32   : > { %1536 = vmatprep.subr.bf16.mxu1 %v1623_v61  ;;  %937 = vmatprep.mubr.bf16.mxu0 %v1289_v4  ;;  %v1303_v61 = vcombine.high %v205_v56, %v209_v57 }
  0x33   : > { %1002 = vmatprep.mubr.bf16.mxu1 %v1291_v5 }
  0x34   : > { %1497 = vmatpush3.bf16.msra.mxu0 %v1624_v62  ;;  %v1300_v62 = vcombine.low %v204_v54, %v208_v55 }
  0x35   : > { %1537 = vmatpush3.bf16.msra.mxu1 %v1625_v63  ;;  %1498 = vmatprep.subr.bf16.mxu0 %v1626_v8  ;;  %v1302_v63 = vcombine.low %v205_v56, %v209_v57 }
  0x36   : > { %1538 = vmatprep.subr.bf16.mxu1 %v1627_v9 }
  0x37   : > { %938 = vmatmul.mubr.bf16.gmra.mrb[8].mxu0 %v1288_v6 }
  0x38   : > { %1003 = vmatmul.mubr.bf16.gmra.mrb[8].mxu1 %v1290_v7  ;;  %1499 = vmatpush3.bf16.msra.mxu0 %v1628_v10 }
  0x39   : > { %1539 = vmatpush3.bf16.msra.mxu1 %v1629_v11  ;;  %1500 = vmatprep.subr.bf16.mxu0 %v1630_v12 }
  0x3a   : > { %1540 = vmatprep.subr.bf16.mxu1 %v1631_v13  ;;  %945 = vmatprep.mubr.bf16.mxu0 %v1297_v19 }
  0x3b   : > { %1010 = vmatprep.mubr.bf16.mxu1 %v1299_v22 }
  0x3c   : > { %1501 = vmatpush3.bf16.msra.mxu0 %v1632_v14 }
  0x3d   : > { %1541 = vmatpush3.bf16.msra.mxu1 %v1633_v15  ;;  %1502 = vmatprep.subr.bf16.mxu0 %v1634_v24 }
  0x3e   : > { %1542 = vmatprep.subr.bf16.mxu1 %v1635_v25 }
  0x3f   : > { %946 = vmatmul.mubr.bf16.gmra.mrb[12].mxu0 %v1296_v21 }
  0x40   : > { %1011 = vmatmul.mubr.bf16.gmra.mrb[12].mxu1 %v1298_v23  ;;  %1503 = vmatpush3.bf16.msra.mxu0 %v1636_v26 }
  0x41   : > { %1543 = vmatpush3.bf16.msra.mxu1 %v1637_v27  ;;  %1504 = vmatprep.subr.bf16.mxu0 %v1638_v28 }
  0x42   : > { %1544 = vmatprep.subr.bf16.mxu1 %v1639_v29  ;;  %1051 = vmatprep.mubr.bf16.mxu0 %v1277_v35 }
  0x43   : > { %1116 = vmatprep.mubr.bf16.mxu1 %v1279_v40 }
  0x44   : > { %1505 = vmatpush3.bf16.msra.mxu0 %v1640_v30 }
  0x45   : > { %1545 = vmatpush3.bf16.msra.mxu1 %v1641_v31 }
  0x47   : > { %1052 = vmatmul.mubr.bf16.vlgmr.msra.gmra.mrb[16].mxu0 %v1276_v34 }
  0x48   : > { %1117 = vmatmul.mubr.bf16.vlgmr.msra.gmra.mrb[16].mxu1 %v1278_v39  ;;  %1059 = vmatprep.mubr.bf16.mxu0 %v1285_v44 }
  0x49   : > { %1124 = vmatprep.mubr.bf16.mxu1 %v1287_v45 }
  0x4f   : > { %1060 = vmatmul.mubr.bf16.gmra.mrb[20].mxu0 %v1284_v50 }
  0x50   : > { %1125 = vmatmul.mubr.bf16.gmra.mrb[20].mxu1 %v1286_v51  ;;  %1067 = vmatprep.mubr.bf16.mxu0 %v1293_v52 }
  0x51   : > { %1132 = vmatprep.mubr.bf16.mxu1 %v1295_v53 }
  0x57   : > { %1068 = vmatmul.mubr.bf16.gmra.mrb[24].mxu0 %v1292_v58 }
  0x58   : > { %1133 = vmatmul.mubr.bf16.gmra.mrb[24].mxu1 %v1294_v59  ;;  %1075 = vmatprep.mubr.bf16.mxu0 %v1301_v60 }
  0x59   : > { %1140 = vmatprep.mubr.bf16.mxu1 %v1303_v61 }
  0x5f   : > { %1076 = vmatmul.mubr.bf16.gmra.mrb[28].mxu0 %v1300_v62 }
  0x60   : > { %1141 = vmatmul.mubr.bf16.gmra.mrb[28].mxu1 %v1302_v63 }
  0xfa   : > { %v1426_v0 = vpop.f32.mrb[0].mxu0 }
  0xfb   : > { %v1466_v1 = vpop.f32.mrb[0].mxu1  ;;  %v1427_v3 = vpop.f32.mrb[1].mxu0 }
  0xfc   : > { %v1428_v4 = vadd.f32 %v1427_v3, %v1426_v0  ;;  %v1467_v5 = vpop.f32.mrb[1].mxu1  ;;  %v1429_v6 = vpop.f32.mrb[2].mxu0 }
  0xfd   : > { %v1468_v7 = vadd.f32 %v1467_v5, %v1466_v1  ;;  %v1469_v8 = vpop.f32.mrb[2].mxu1  ;;  %v1430_v9 = vpop.f32.mrb[3].mxu0 }
  0xfe   : > { %v924_v10 = vadd.f32 %v1428_v4, %v1271_v2  ;;  %v1431_v11 = vadd.f32 %v1430_v9, %v1429_v6  ;;  %v1470_v12 = vpop.f32.mrb[3].mxu1 }
  0xff   : > { %v1471_v13 = vadd.f32 %v1470_v12, %v1469_v8 }
 0x100   : > { %v989_v14 = vadd.f32 %v1468_v7, %v924_v10  ;;  %v927_v15 = vadd.f32 %v1431_v11, %v1271_v2 }
 0x102   : > { %v1915_v16 = vadd.f32 %v1471_v13, %v927_v15  ;;  %v1432_v17 = vpop.f32.mrb[4].mxu0 }
 0x103   : > { %v1472_v18 = vpop.f32.mrb[4].mxu1  ;;  %v1433_v19 = vpop.f32.mrb[5].mxu0 }
 0x104   : > { %v1434_v20 = vadd.f32 %v1433_v19, %v1432_v17  ;;  %v1473_v21 = vpop.f32.mrb[5].mxu1  ;;  %v1435_v22 = vpop.f32.mrb[6].mxu0 }
 0x105   : > { %v1474_v23 = vadd.f32 %v1473_v21, %v1472_v18  ;;  %v1475_v24 = vpop.f32.mrb[6].mxu1  ;;  %v1436_v25 = vpop.f32.mrb[7].mxu0 }
 0x106   : > { %v932_v26 = vadd.f32 %v1434_v20, %v1271_v2  ;;  %v1437_v27 = vadd.f32 %v1436_v25, %v1435_v22  ;;  %v1476_v28 = vpop.f32.mrb[7].mxu1 }
 0x107   : > { %v1477_v29 = vadd.f32 %v1476_v28, %v1475_v24 }
 0x108   : > { %v1917_v30 = vadd.f32 %v1474_v23, %v932_v26  ;;  %v935_v31 = vadd.f32 %v1437_v27, %v1271_v2 }
 0x10a   : > { %v1919_v32 = vadd.f32 %v1477_v29, %v935_v31  ;;  %v1438_v33 = vpop.f32.mrb[8].mxu0 }
 0x10b   : > { %v1478_v34 = vpop.f32.mrb[8].mxu1  ;;  %v1439_v35 = vpop.f32.mrb[9].mxu0 }
 0x10c   : > { %v1479_v36 = vpop.f32.mrb[9].mxu1  ;;  %v1440_v37 = vadd.f32 %v1439_v35, %v1438_v33  ;;  %v1441_v39 = vpop.f32.mrb[10].mxu0 }
 0x10d   : > { %v1480_v38 = vadd.f32 %v1479_v36, %v1478_v34  ;;  %v1481_v40 = vpop.f32.mrb[10].mxu1  ;;  %v1442_v41 = vpop.f32.mrb[11].mxu0 }
 0x10e   : > { %v1482_v42 = vpop.f32.mrb[11].mxu1  ;;  %v940_v43 = vadd.f32 %v1440_v37, %v1271_v2  ;;  %v1443_v44 = vadd.f32 %v1442_v41, %v1441_v39 }
 0x10f   : > { %v1483_v45 = vadd.f32 %v1482_v42, %v1481_v40 }
 0x110   : > { %v1921_v46 = vadd.f32 %v1480_v38, %v940_v43  ;;  %v943_v47 = vadd.f32 %v1443_v44, %v1271_v2 }
 0x112   : > { %v1923_v48 = vadd.f32 %v1483_v45, %v943_v47  ;;  %v1444_v49 = vpop.f32.mrb[12].mxu0 }
 0x113   : > { %v1484_v50 = vpop.f32.mrb[12].mxu1  ;;  %v1445_v51 = vpop.f32.mrb[13].mxu0 }
 0x114   : > { %v1446_v52 = vadd.f32 %v1445_v51, %v1444_v49  ;;  %v1485_v53 = vpop.f32.mrb[13].mxu1  ;;  %v1447_v54 = vpop.f32.mrb[14].mxu0 }
 0x115   : > { %v1486_v55 = vadd.f32 %v1485_v53, %v1484_v50  ;;  %v1487_v56 = vpop.f32.mrb[14].mxu1  ;;  %v1448_v57 = vpop.f32.mrb[15].mxu0 }
 0x116   : > { %v948_v58 = vadd.f32 %v1446_v52, %v1271_v2  ;;  %v1449_v59 = vadd.f32 %v1448_v57, %v1447_v54  ;;  %v1488_v60 = vpop.f32.mrb[15].mxu1 }
 0x117   : > { %v1489_v61 = vadd.f32 %v1488_v60, %v1487_v56 }
 0x118   : > { %v1925_v62 = vadd.f32 %v1486_v55, %v948_v58  ;;  %v951_v63 = vadd.f32 %v1449_v59, %v1271_v2 }
 0x11a   : > { %v1927_v0 = vadd.f32 %v1489_v61, %v951_v63  ;;  %v1506_v1 = vpop.f32.mrb[16].mxu0 }
 0x11b   : > { %v1546_v3 = vpop.f32.mrb[16].mxu1  ;;  %v1507_v4 = vpop.f32.mrb[17].mxu0 }
 0x11c   : > { %v1508_v5 = vadd.f32 %v1507_v4, %v1506_v1  ;;  %v1547_v6 = vpop.f32.mrb[17].mxu1  ;;  %v1509_v7 = vpop.f32.mrb[18].mxu0 }
 0x11d   : > { %v1548_v8 = vadd.f32 %v1547_v6, %v1546_v3  ;;  %v1549_v9 = vpop.f32.mrb[18].mxu1  ;;  %v1510_v10 = vpop.f32.mrb[19].mxu0 }
 0x11e   : > { %v1054_v11 = vadd.f32 %v1508_v5, %v989_v14  ;;  %v1511_v12 = vadd.f32 %v1510_v10, %v1509_v7  ;;  %v1550_v13 = vpop.f32.mrb[19].mxu1 }
 0x11f   : > { %v1551_v15 = vadd.f32 %v1550_v13, %v1549_v9 }
 0x120   : > { %v1119_v17 = vadd.f32 %v1548_v8, %v1054_v11  ;;  %v1057_v18 = vadd.f32 %v1511_v12, %v1915_v16 }
 0x122   : > { %v1149_v2 = vmul.f32 0.2, %v1119_v17  ;;  %v1122_v19 = vadd.f32 %v1551_v15, %v1057_v18  ;;  %v1512_v20 = vpop.f32.mrb[20].mxu0 }
 0x123   : > { %v1552_v21 = vpop.f32.mrb[20].mxu1  ;;  %v1513_v22 = vpop.f32.mrb[21].mxu0 }
 0x124   : > { %v1150_v23 = vmul.f32 0.2, %v1122_v19  ;;  %v1514_v24 = vadd.f32 %v1513_v22, %v1512_v20  ;;  %v1553_v25 = vpop.f32.mrb[21].mxu1  ;;  %v1515_v26 = vpop.f32.mrb[22].mxu0  ;;  %v1157_v14 = vmax.f32 %v1119_v17, %v1149_v2 }
 0x125   : > { %v1554_v27 = vadd.f32 %v1553_v25, %v1552_v21  ;;  %v1555_v28 = vpop.f32.mrb[22].mxu1  ;;  %v1516_v29 = vpop.f32.mrb[23].mxu0 }
 0x126   : > { %v1158_v31 = vmax.f32 %v1122_v19, %v1150_v23  ;;  %v1062_v33 = vadd.f32 %v1514_v24, %v1917_v30  ;;  %v1517_v34 = vadd.f32 %v1516_v29, %v1515_v26  ;;  %v1556_v35 = vpop.f32.mrb[23].mxu1 }
 0x127   : > { %v1557_v16 = vadd.f32 %v1556_v35, %v1555_v28 }
 0x128   : > { %v1390_v36 = vpack.c.bf16 %v1158_v31, %v1157_v14  ;;  %v1127_v37 = vadd.f32 %v1554_v27, %v1062_v33  ;;  %v1065_v38 = vadd.f32 %v1517_v34, %v1919_v32 }
 0x12a   : > { %1391 = vst [vmem:[%s1935_s29] sm:$0xff] %v1390_v36   ;;  %v1151_v39 = vmul.f32 0.2, %v1127_v37  ;;  %v1130_v40 = vadd.f32 %v1557_v16, %v1065_v38  ;;  %v1518_v41 = vpop.f32.mrb[24].mxu0 }
 0x12b   : > { %v1558_v42 = vpop.f32.mrb[24].mxu1  ;;  %v1519_v43 = vpop.f32.mrb[25].mxu0 }
 0x12c   : > { %v1152_v30 = vmul.f32 0.2, %v1130_v40  ;;  %v1520_v44 = vadd.f32 %v1519_v43, %v1518_v41  ;;  %v1559_v45 = vpop.f32.mrb[25].mxu1  ;;  %v1521_v47 = vpop.f32.mrb[26].mxu0  ;;  %v1159_v52 = vmax.f32 %v1127_v37, %v1151_v39 }
 0x12d   : > { %v1560_v49 = vadd.f32 %v1559_v45, %v1558_v42  ;;  %v1561_v50 = vpop.f32.mrb[26].mxu1  ;;  %v1522_v51 = vpop.f32.mrb[27].mxu0 }
 0x12e   : > { %v1160_v53 = vmax.f32 %v1130_v40, %v1152_v30  ;;  %v1070_v54 = vadd.f32 %v1520_v44, %v1921_v46  ;;  %v1523_v55 = vadd.f32 %v1522_v51, %v1521_v47  ;;  %v1562_v32 = vpop.f32.mrb[27].mxu1 }
 0x12f   : > { %v1563_v56 = vadd.f32 %v1562_v32, %v1561_v50 }
 0x130   : > { %v1395_v57 = vpack.c.bf16 %v1160_v53, %v1159_v52  ;;  %v1135_v58 = vadd.f32 %v1560_v49, %v1070_v54  ;;  %v1073_v59 = vadd.f32 %v1523_v55, %v1923_v48 }
 0x132   : > { %1407 = vst [vmem:[%s1935_s29 + $0x8] sm:$0xff] %v1395_v57   ;;  %v1153_v60 = vmul.f32 0.2, %v1135_v58  ;;  %v1138_v61 = vadd.f32 %v1563_v56, %v1073_v59  ;;  %v1524_v63 = vpop.f32.mrb[28].mxu0 }
 0x133   : > { %v1564_v1 = vpop.f32.mrb[28].mxu1  ;;  %v1525_v3 = vpop.f32.mrb[29].mxu0 }
 0x134   : > { %v1154_v4 = vmul.f32 0.2, %v1138_v61  ;;  %v1526_v5 = vadd.f32 %v1525_v3, %v1524_v63  ;;  %v1565_v6 = vpop.f32.mrb[29].mxu1  ;;  %v1527_v7 = vpop.f32.mrb[30].mxu0  ;;  %v1161_v10 = vmax.f32 %v1135_v58, %v1153_v60 }
 0x135   : > { %v1566_v8 = vadd.f32 %v1565_v6, %v1564_v1  ;;  %v1567_v46 = vpop.f32.mrb[30].mxu1  ;;  %v1528_v9 = vpop.f32.mrb[31].mxu0 }
 0x136   : > { %v1162_v11 = vmax.f32 %v1138_v61, %v1154_v4  ;;  %v1078_v12 = vadd.f32 %v1526_v5, %v1925_v62  ;;  %v1529_v48 = vadd.f32 %v1528_v9, %v1527_v7  ;;  %v1568_v13 = vpop.f32.mrb[31].mxu1 }
 0x137   : > { %v1569_v15 = vadd.f32 %v1568_v13, %v1567_v46 }
 0x138   : > { %v1400_v17 = vpack.c.bf16 %v1162_v11, %v1161_v10  ;;  %v1143_v18 = vadd.f32 %v1566_v8, %v1078_v12  ;;  %v1081_v2 = vadd.f32 %v1529_v48, %v1927_v0 }
 0x13a   : > { %1408 = vst [vmem:[%s1935_s29 + $0x10] sm:$0xff] %v1400_v17   ;;  %v1155_v19 = vmul.f32 0.2, %v1143_v18  ;;  %v1146_v20 = vadd.f32 %v1569_v15, %v1081_v2 }
 0x13c   : > { %v1156_v21 = vmul.f32 0.2, %v1146_v20  ;;  %v1163_v22 = vmax.f32 %v1143_v18, %v1155_v19 }
 0x13e   : > { %v1164_v23 = vmax.f32 %v1146_v20, %v1156_v21 }
 0x140   : > { %v1405_v24 = vpack.c.bf16 %v1164_v23, %v1163_v22 }
 0x142   : > { %1409 = vst [vmem:[%s1935_s29 + $0x18] sm:$0xff] %v1405_v24  }
 0x143 PF: > { %s13_s12 = sadd.s32 1, %s1648_s12  }
 0x144   : > { %p10_p4 = scmp.ge.s32.totalorder %s13_s12, 4  }
 0x146   :  { %12 = sbr.rel (!%p10_p4) target bundleno = 1 (0x1), region = 62 }

// kernel: discriminator_forward.6
= control target key start
LH: loop header
LB: loop body
LE: loop exit
PB: predicated region body
PF: predicated region fallthrough
CT: control target
= control target key end

     0   :  { %s2990_s12 = smov 0   ;;  %s3850_s0 = inlined_call_operand.vmem [shape: bf16[32,2048], index: 0, kind: input, shape index: {}]   ;;  %s3851_s1 = inlined_call_operand.vmem [shape: bf16[2048,256], index: 1, kind: input, shape index: {}]   ;;  %s3852_s2 = inlined_call_operand.vmem [shape: f32[1,256], index: 2, kind: input, shape index: {}]   ;;  %s3853_s3 = inlined_call_operand.vmem [shape: bf16[32,256], index: 3, kind: output, shape index: {}]  }
   0x1 LB: > { %s2247_s13 = sadd.s32 4294967295, %s2968_s12   ;;  %p2251_p0 = scmp.ge.s32.totalorder %s2968_s12, 1  ;;  %s2968_s12 = sphi %s2990_s12, %s13_s12  }
   0x2   : > { %p139_p1 = scmp.lt.s32.totalorder %s2968_s12, 3 }
   0x4   : > { %p140_p2 = pnand %p2251_p0, %p139_p1 }
   0x5   : > { %v2578_v0 = vld [vmem:[%s3851_s1 + $0x4] ss:$8 sps:$4 sm:$0xff] (!%p140_p2)   ;;  %v2582_v2 = vld [vmem:[%s3851_s1] ss:$8 sps:$4 sm:$0xff] (!%p140_p2)   ;;  %v2584_v4 = vld [vmem:[%s3851_s1 + $0x14] ss:$8 sps:$4 sm:$0xff] (!%p140_p2)  }
   0x6   : > { %143 = sbr.rel (%p140_p2) target bundleno = 488 (0x1e8), region = 32  ;;  %v2580_v1 = vld [vmem:[%s3851_s1 + $0x404] ss:$8 sps:$4 sm:$0xff] (!%p140_p2)   ;;  %1823 = vmatprep.subr.bf16.mxu1 (!%p140_p2), %v2578_v0  ;;  %v2583_v3 = vld [vmem:[%s3851_s1 + $0x400] ss:$8 sps:$4 sm:$0xff] (!%p140_p2)   ;;  %s2252_s24 = sshll.u32 (!%p140_p2), %s2247_s13, 1 }
   0x7   : > { %1995 = vmatprep.subr.bf16.mxu0 (!%p140_p2), %v2580_v1  ;;  %1824 = vmatpush1.bf16.msra.mxu1 (!%p140_p2), %v2582_v2  ;;  %v2586_v5 = vld [vmem:[%s3851_s1 + $0x414] ss:$8 sps:$4 sm:$0xff] (!%p140_p2)   ;;  %v2588_v6 = vld [vmem:[%s3851_s1 + $0x10] ss:$8 sps:$4 sm:$0xff] (!%p140_p2)   ;;  %v2590_v8 = vld [vmem:[%s3851_s1 + $0x24] ss:$8 sps:$4 sm:$0xff] (!%p140_p2)  }
   0x8   : > { %1996 = vmatpush1.bf16.msra.mxu0 (!%p140_p2), %v2583_v3  ;;  %1825 = vmatprep.subr.bf16.mxu1 (!%p140_p2), %v2584_v4  ;;  %v2589_v7 = vld [vmem:[%s3851_s1 + $0x410] ss:$8 sps:$4 sm:$0xff] (!%p140_p2)   ;;  %v2592_v9 = vld [vmem:[%s3851_s1 + $0x424] ss:$8 sps:$4 sm:$0xff] (!%p140_p2)   ;;  %v2594_v10 = vld [vmem:[%s3851_s1 + $0x20] ss:$8 sps:$4 sm:$0xff] (!%p140_p2)  }
   0x9   : > { %1997 = vmatprep.subr.bf16.mxu0 (!%p140_p2), %v2586_v5  ;;  %v2595_v11 = vld [vmem:[%s3851_s1 + $0x420] ss:$8 sps:$4 sm:$0xff] (!%p140_p2)   ;;  %v2596_v12 = vld [vmem:[%s3851_s1 + $0x34] ss:$8 sps:$4 sm:$0xff] (!%p140_p2)   ;;  %v2600_v14 = vld [vmem:[%s3851_s1 + $0x30] ss:$8 sps:$4 sm:$0xff] (!%p140_p2)  }
   0xa   : > { %v2598_v13 = vld [vmem:[%s3851_s1 + $0x434] ss:$8 sps:$4 sm:$0xff] (!%p140_p2)   ;;  %v2601_v15 = vld [vmem:[%s3851_s1 + $0x430] ss:$8 sps:$4 sm:$0xff] (!%p140_p2)   ;;  %v2602_v16 = vld [vmem:[%s3851_s1 + $0x44] ss:$8 sps:$4 sm:$0xff] (!%p140_p2)  }
   0xb   : > { %1826 = vmatpush1.bf16.msra.mxu1 (!%p140_p2), %v2588_v6  ;;  %v2604_v17 = vld [vmem:[%s3851_s1 + $0x444] ss:$8 sps:$4 sm:$0xff] (!%p140_p2)   ;;  %v2606_v18 = vld [vmem:[%s3851_s1 + $0x40] ss:$8 sps:$4 sm:$0xff] (!%p140_p2)   ;;  %v2608_v20 = vld [vmem:[%s3851_s1 + $0x54] ss:$8 sps:$4 sm:$0xff] (!%p140_p2)  }
   0xc   : > { %1998 = vmatpush1.bf16.msra.mxu0 (!%p140_p2), %v2589_v7  ;;  %1827 = vmatprep.subr.bf16.mxu1 (!%p140_p2), %v2590_v8  ;;  %v2607_v19 = vld [vmem:[%s3851_s1 + $0x440] ss:$8 sps:$4 sm:$0xff] (!%p140_p2)   ;;  %v2610_v21 = vld [vmem:[%s3851_s1 + $0x454] ss:$8 sps:$4 sm:$0xff] (!%p140_p2)   ;;  %v2612_v22 = vld [vmem:[%s3851_s1 + $0x50] ss:$8 sps:$4 sm:$0xff] (!%p140_p2)  }
   0xd   : > { %1999 = vmatprep.subr.bf16.mxu0 %v2592_v9  ;;  %v2613_v23 = vld [vmem:[%s3851_s1 + $0x450] ss:$8 sps:$4 sm:$0xff]   ;;  %v2614_v24 = vld [vmem:[%s3851_s1 + $0x64] ss:$8 sps:$4 sm:$0xff]   ;;  %v2618_v26 = vld [vmem:[%s3851_s1 + $0x60] ss:$8 sps:$4 sm:$0xff]  }
   0xe   : > { %v2616_v25 = vld [vmem:[%s3851_s1 + $0x464] ss:$8 sps:$4 sm:$0xff]   ;;  %v2619_v27 = vld [vmem:[%s3851_s1 + $0x460] ss:$8 sps:$4 sm:$0xff]   ;;  %v2620_v28 = vld [vmem:[%s3851_s1 + $0x74] ss:$8 sps:$4 sm:$0xff]  }
   0xf   : > { %1828 = vmatpush1.bf16.msra.mxu1 %v2594_v10  ;;  %v2622_v29 = vld [vmem:[%s3851_s1 + $0x474] ss:$8 sps:$4 sm:$0xff]   ;;  %v2624_v30 = vld [vmem:[%s3851_s1 + $0x70] ss:$8 sps:$4 sm:$0xff]   ;;  %v2626_v32 = vld [vmem:[%s3851_s1 + $0x84] ss:$8 sps:$4 sm:$0xff]  }
  0x10   : > { %2000 = vmatpush1.bf16.msra.mxu0 %v2595_v11  ;;  %1829 = vmatprep.subr.bf16.mxu1 %v2596_v12  ;;  %v2625_v31 = vld [vmem:[%s3851_s1 + $0x470] ss:$8 sps:$4 sm:$0xff]   ;;  %p166_p3 = scmp.lt.s32.totalorder %s2252_s24, 3  ;;  %v2628_v33 = vld [vmem:[%s3851_s1 + $0x484] ss:$8 sps:$4 sm:$0xff]  }
  0x11   : > { %2001 = vmatprep.subr.bf16.mxu0 %v2598_v13  ;;  %v2630_v34 = vld [vmem:[%s3851_s1 + $0x80] ss:$8 sps:$4 sm:$0xff]   ;;  %v2632_v36 = vld [vmem:[%s3851_s1 + $0x94] ss:$8 sps:$4 sm:$0xff]   ;;  %v2636_v38 = vld [vmem:[%s3851_s1 + $0x90] ss:$8 sps:$4 sm:$0xff]  }
  0x12   : > { %v2631_v35 = vld [vmem:[%s3851_s1 + $0x480] ss:$8 sps:$4 sm:$0xff]   ;;  %s3855_s24 = smov (!%p166_p3, %s2252_s24), 3  ;;  %v2634_v37 = vld [vmem:[%s3851_s1 + $0x494] ss:$8 sps:$4 sm:$0xff]  }
  0x13   : > { %1830 = vmatpush1.bf16.msra.mxu1 %v2600_v14  ;;  %v2637_v39 = vld [vmem:[%s3851_s1 + $0x490] ss:$8 sps:$4 sm:$0xff]   ;;  %v2638_v40 = vld [vmem:[%s3851_s1 + $0xa4] ss:$8 sps:$4 sm:$0xff]   ;;  %s2534_s21 = sshll.u32 %s3855_s24, 6  ;;  %s2535_s19 = sshll.u32 %s3855_s24, 3 }
  0x14   : > { %2002 = vmatpush1.bf16.msra.mxu0 %v2601_v15  ;;  %1831 = vmatprep.subr.bf16.mxu1 %v2602_v16  ;;  %v2640_v41 = vld [vmem:[%s3851_s1 + $0x4a4] ss:$8 sps:$4 sm:$0xff]   ;;  %v2642_v42 = vld [vmem:[%s3851_s1 + $0xa0] ss:$8 sps:$4 sm:$0xff]   ;;  %s3138_s4 = scalar_lea.vmem %s3850_s0, %s2534_s21  ;;  %v2644_v44 = vld [vmem:[%s3851_s1 + $0xb4] ss:$8 sps:$4 sm:$0xff]   ;;  %s177_s22 = scalar_lea.vmem %s3853_s3, %s2535_s19 }
  0x15   : > { %2003 = vmatprep.subr.bf16.mxu0 %v2604_v17  ;;  %v2643_v43 = vld [vmem:[%s3851_s1 + $0x4a0] ss:$8 sps:$4 sm:$0xff]   ;;  %v2646_v45 = vld [vmem:[%s3851_s1 + $0x4b4] ss:$8 sps:$4 sm:$0xff]   ;;  %v2648_v46 = vld [vmem:[%s3851_s1 + $0xb0] ss:$8 sps:$4 sm:$0xff]  }
  0x16   : > { %v2649_v47 = vld [vmem:[%s3851_s1 + $0x4b0] ss:$8 sps:$4 sm:$0xff]   ;;  %v179_v48 = vld [vmem:[%s3138_s4] sm:$0xff]  ;;  %v2656_v58 = vld [vmem:[%s3851_s1 + $0xd4] ss:$8 sps:$4 sm:$0xff]  }
  0x17   : > { %1832 = vmatpush1.bf16.msra.mxu1 %v2606_v18  ;;  %v187_v49 = vld [vmem:[%s3138_s4 + $0x40] sm:$0xff]  ;;  %v2658_v59 = vld [vmem:[%s3851_s1 + $0x4d4] ss:$8 sps:$4 sm:$0xff]   ;;  %v2660_v60 = vld [vmem:[%s3851_s1 + $0xd0] ss:$8 sps:$4 sm:$0xff]  }
  0x18   : > { %2004 = vmatpush1.bf16.msra.mxu0 %v2607_v19  ;;  %1833 = vmatprep.subr.bf16.mxu1 %v2608_v20  ;;  %v2650_v50 = vld [vmem:[%s3851_s1 + $0xc4] ss:$8 sps:$4 sm:$0xff]   ;;  %v2259_v52 = vcombine.high %v179_v48, %v187_v49  ;;  %v2654_v56 = vld [vmem:[%s3851_s1 + $0xc0] ss:$8 sps:$4 sm:$0xff]   ;;  %v2661_v61 = vld [vmem:[%s3851_s1 + $0x4d0] ss:$8 sps:$4 sm:$0xff]   ;;  %v2258_v8 = vcombine.low %v179_v48, %v187_v49 }
  0x19   : > { %2005 = vmatprep.subr.bf16.mxu0 %v2610_v21  ;;  %v2652_v51 = vld [vmem:[%s3851_s1 + $0x4c4] ss:$8 sps:$4 sm:$0xff]   ;;  %v2655_v57 = vld [vmem:[%s3851_s1 + $0x4c0] ss:$8 sps:$4 sm:$0xff]   ;;  %v2668_v2 = vld [vmem:[%s3851_s1 + $0xf4] ss:$8 sps:$4 sm:$0xff]  }
  0x1a   : > { %v183_v53 = vld [vmem:[%s3138_s4 + $0x20] sm:$0xff]  ;;  %1855 = vmatprep.mubr.bf16.mxu1 %v2259_v52  ;;  %v2670_v3 = vld [vmem:[%s3851_s1 + $0x4f4] ss:$8 sps:$4 sm:$0xff]   ;;  %v2672_v4 = vld [vmem:[%s3851_s1 + $0xf0] ss:$8 sps:$4 sm:$0xff]  }
  0x1b   : > { %1834 = vmatpush1.bf16.msra.mxu1 %v2612_v22  ;;  %v191_v54 = vld [vmem:[%s3138_s4 + $0x60] sm:$0xff]  ;;  %v2673_v5 = vld [vmem:[%s3851_s1 + $0x4f0] ss:$8 sps:$4 sm:$0xff]   ;;  %v2682_v12 = vld [vmem:[%s3851_s1 + $0x114] ss:$8 sps:$4 sm:$0xff]  }
  0x1c   : > { %2006 = vmatpush1.bf16.msra.mxu0 %v2613_v23  ;;  %1835 = vmatprep.subr.bf16.mxu1 %v2614_v24  ;;  %v2267_v55 = vcombine.high %v183_v53, %v191_v54  ;;  %v2662_v62 = vld [vmem:[%s3851_s1 + $0xe4] ss:$8 sps:$4 sm:$0xff]   ;;  %v2666_v0 = vld [vmem:[%s3851_s1 + $0xe0] ss:$8 sps:$4 sm:$0xff]   ;;  %v2266_v10 = vcombine.low %v183_v53, %v191_v54  ;;  %v2685_v13 = vld [vmem:[%s3851_s1 + $0x514] ss:$8 sps:$4 sm:$0xff]  }
  0x1d   : > { %2007 = vmatprep.subr.bf16.mxu0 %v2616_v25  ;;  %v2664_v63 = vld [vmem:[%s3851_s1 + $0x4e4] ss:$8 sps:$4 sm:$0xff]   ;;  %v2667_v1 = vld [vmem:[%s3851_s1 + $0x4e0] ss:$8 sps:$4 sm:$0xff]   ;;  %v2680_v14 = vld [vmem:[%s3851_s1 + $0x110] ss:$8 sps:$4 sm:$0xff]  }
  0x1e   : > { %2027 = vmatprep.mubr.bf16.mxu0 %v2267_v55  ;;  %v2676_v6 = vld [vmem:[%s3851_s1 + $0x104] ss:$8 sps:$4 sm:$0xff]   ;;  %v2674_v9 = vld [vmem:[%s3851_s1 + $0x100] ss:$8 sps:$4 sm:$0xff]   ;;  %v2683_v15 = vld [vmem:[%s3851_s1 + $0x510] ss:$8 sps:$4 sm:$0xff]  }
  0x1f   : > { %1836 = vmatpush1.bf16.msra.mxu1 %v2618_v26  ;;  %v2679_v7 = vld [vmem:[%s3851_s1 + $0x504] ss:$8 sps:$4 sm:$0xff]   ;;  %v2677_v11 = vld [vmem:[%s3851_s1 + $0x500] ss:$8 sps:$4 sm:$0xff]   ;;  %v2694_v20 = vld [vmem:[%s3851_s1 + $0x134] ss:$8 sps:$4 sm:$0xff]  }
  0x20   : > { %2008 = vmatpush1.bf16.msra.mxu0 %v2619_v27  ;;  %1837 = vmatprep.subr.bf16.mxu1 %v2620_v28  ;;  %v2688_v16 = vld [vmem:[%s3851_s1 + $0x124] ss:$8 sps:$4 sm:$0xff]   ;;  %v2686_v18 = vld [vmem:[%s3851_s1 + $0x120] ss:$8 sps:$4 sm:$0xff]   ;;  %v2697_v21 = vld [vmem:[%s3851_s1 + $0x534] ss:$8 sps:$4 sm:$0xff]  }
  0x21   : > { %2009 = vmatprep.subr.bf16.mxu0 %v2622_v29  ;;  %v2691_v17 = vld [vmem:[%s3851_s1 + $0x524] ss:$8 sps:$4 sm:$0xff]   ;;  %v2689_v19 = vld [vmem:[%s3851_s1 + $0x520] ss:$8 sps:$4 sm:$0xff]   ;;  %v2692_v22 = vld [vmem:[%s3851_s1 + $0x130] ss:$8 sps:$4 sm:$0xff]  }
  0x22   : > { %v2695_v23 = vld [vmem:[%s3851_s1 + $0x530] ss:$8 sps:$4 sm:$0xff]   ;;  %v2700_v24 = vld [vmem:[%s3851_s1 + $0x144] ss:$8 sps:$4 sm:$0xff]   ;;  %v2698_v26 = vld [vmem:[%s3851_s1 + $0x140] ss:$8 sps:$4 sm:$0xff]  }
  0x23   : > { %1838 = vmatpush1.bf16.msra.mxu1 %v2624_v30  ;;  %v2703_v25 = vld [vmem:[%s3851_s1 + $0x544] ss:$8 sps:$4 sm:$0xff]   ;;  %v2701_v27 = vld [vmem:[%s3851_s1 + $0x540] ss:$8 sps:$4 sm:$0xff]   ;;  %v2706_v28 = vld [vmem:[%s3851_s1 + $0x154] ss:$8 sps:$4 sm:$0xff]  }
  0x24   : > { %2010 = vmatpush1.bf16.msra.mxu0 %v2625_v31  ;;  %1839 = vmatprep.subr.bf16.mxu1 %v2626_v32  ;;  %v2709_v29 = vld [vmem:[%s3851_s1 + $0x554] ss:$8 sps:$4 sm:$0xff]   ;;  %v2704_v30 = vld [vmem:[%s3851_s1 + $0x150] ss:$8 sps:$4 sm:$0xff]   ;;  %v2712_v32 = vld [vmem:[%s3851_s1 + $0x164] ss:$8 sps:$4 sm:$0xff]  }
  0x25   : > { %2011 = vmatprep.subr.bf16.mxu0 %v2628_v33  ;;  %v2707_v31 = vld [vmem:[%s3851_s1 + $0x550] ss:$8 sps:$4 sm:$0xff]   ;;  %v2715_v33 = vld [vmem:[%s3851_s1 + $0x564] ss:$8 sps:$4 sm:$0xff]   ;;  %v2722_v48 = vld [vmem:[%s3851_s1 + $0x180] ss:$8 sps:$4 sm:$0xff]  }
  0x26   : > { %v2725_v49 = vld [vmem:[%s3851_s1 + $0x580] ss:$8 sps:$4 sm:$0xff]   ;;  %v2728_v52 = vld [vmem:[%s3851_s1 + $0x190] ss:$8 sps:$4 sm:$0xff]   ;;  %v2736_v54 = vld [vmem:[%s3851_s1 + $0x1a4] ss:$8 sps:$4 sm:$0xff]  }
  0x27   : > { %1840 = vmatpush1.bf16.msra.mxu1 %v2630_v34  ;;  %v2710_v34 = vld [vmem:[%s3851_s1 + $0x160] ss:$8 sps:$4 sm:$0xff]   ;;  %v2731_v53 = vld [vmem:[%s3851_s1 + $0x590] ss:$8 sps:$4 sm:$0xff]   ;;  %v2739_v55 = vld [vmem:[%s3851_s1 + $0x5a4] ss:$8 sps:$4 sm:$0xff]  }
  0x28   : > { %2012 = vmatpush1.bf16.msra.mxu0 %v2631_v35  ;;  %1841 = vmatprep.subr.bf16.mxu1 %v2632_v36  ;;  %v2713_v35 = vld [vmem:[%s3851_s1 + $0x560] ss:$8 sps:$4 sm:$0xff]  }
  0x29   : > { %2013 = vmatprep.subr.bf16.mxu0 %v2634_v37  ;;  %v3289_v36 = vld [vmem:[%s3138_s4 + $0x8] sm:$0xff] }
  0x2a   : > { %v3292_v37 = vld [vmem:[%s3138_s4 + $0x48] sm:$0xff] }
  0x2b   : > { %1842 = vmatpush1.bf16.msra.mxu1 %v2636_v38  ;;  %v2718_v38 = vld [vmem:[%s3851_s1 + $0x174] ss:$8 sps:$4 sm:$0xff]  }
  0x2c   : > { %2014 = vmatpush1.bf16.msra.mxu0 %v2637_v39  ;;  %1843 = vmatprep.subr.bf16.mxu1 %v2638_v40  ;;  %v2721_v39 = vld [vmem:[%s3851_s1 + $0x574] ss:$8 sps:$4 sm:$0xff]   ;;  %v2261_v40 = vcombine.high %v3289_v36, %v3292_v37 }
  0x2d   : > { %2015 = vmatprep.subr.bf16.mxu0 %v2640_v41  ;;  %v3303_v41 = vld [vmem:[%s3138_s4 + $0x28] sm:$0xff] }
  0x2f   : > { %1844 = vmatpush1.bf16.msra.mxu1 %v2642_v42  ;;  %v3306_v42 = vld [vmem:[%s3138_s4 + $0x68] sm:$0xff] }
  0x30   : > { %2016 = vmatpush1.bf16.msra.mxu0 %v2643_v43  ;;  %1845 = vmatprep.subr.bf16.mxu1 %v2644_v44  ;;  %v2269_v43 = vcombine.high %v3303_v41, %v3306_v42  ;;  %v2716_v44 = vld [vmem:[%s3851_s1 + $0x170] ss:$8 sps:$4 sm:$0xff]  }
  0x31   : > { %2017 = vmatprep.subr.bf16.mxu0 %v2646_v45  ;;  %v2719_v45 = vld [vmem:[%s3851_s1 + $0x570] ss:$8 sps:$4 sm:$0xff]  }
  0x33   : > { %1846 = vmatpush1.bf16.msra.mxu1 %v2648_v46  ;;  %v2724_v46 = vld [vmem:[%s3851_s1 + $0x184] ss:$8 sps:$4 sm:$0xff]  }
  0x34   : > { %2018 = vmatpush1.bf16.msra.mxu0 %v2649_v47  ;;  %1847 = vmatprep.subr.bf16.mxu1 %v2650_v50  ;;  %v2727_v47 = vld [vmem:[%s3851_s1 + $0x584] ss:$8 sps:$4 sm:$0xff]   ;;  %v2730_v50 = vld [vmem:[%s3851_s1 + $0x194] ss:$8 sps:$4 sm:$0xff]  }
  0x35   : > { %2019 = vmatprep.subr.bf16.mxu0 %v2652_v51  ;;  %v2733_v51 = vld [vmem:[%s3851_s1 + $0x594] ss:$8 sps:$4 sm:$0xff]  }
  0x37   : > { %1848 = vmatpush1.bf16.msra.mxu1 %v2654_v56  ;;  %v2734_v56 = vld [vmem:[%s3851_s1 + $0x1a0] ss:$8 sps:$4 sm:$0xff]  }
  0x38   : > { %2020 = vmatpush1.bf16.msra.mxu0 %v2655_v57  ;;  %1849 = vmatprep.subr.bf16.mxu1 %v2656_v58  ;;  %v2737_v57 = vld [vmem:[%s3851_s1 + $0x5a0] ss:$8 sps:$4 sm:$0xff]   ;;  %v2742_v58 = vld [vmem:[%s3851_s1 + $0x1b4] ss:$8 sps:$4 sm:$0xff]  }
  0x39   : > { %2021 = vmatprep.subr.bf16.mxu0 %v2658_v59  ;;  %v2745_v59 = vld [vmem:[%s3851_s1 + $0x5b4] ss:$8 sps:$4 sm:$0xff]  }
  0x3b   : > { %1850 = vmatpush1.bf16.msra.mxu1 %v2660_v60  ;;  %v2740_v60 = vld [vmem:[%s3851_s1 + $0x1b0] ss:$8 sps:$4 sm:$0xff]  }
  0x3c   : > { %2022 = vmatpush1.bf16.msra.mxu0 %v2661_v61  ;;  %1851 = vmatprep.subr.bf16.mxu1 %v2662_v62  ;;  %v2743_v61 = vld [vmem:[%s3851_s1 + $0x5b0] ss:$8 sps:$4 sm:$0xff]   ;;  %v2748_v62 = vld [vmem:[%s3851_s1 + $0x1c4] ss:$8 sps:$4 sm:$0xff]  }
  0x3d   : > { %2023 = vmatprep.subr.bf16.mxu0 %v2664_v63  ;;  %v2751_v63 = vld [vmem:[%s3851_s1 + $0x5c4] ss:$8 sps:$4 sm:$0xff]  }
  0x3f   : > { %1852 = vmatpush1.bf16.msra.mxu1 %v2666_v0  ;;  %v2746_v0 = vld [vmem:[%s3851_s1 + $0x1c0] ss:$8 sps:$4 sm:$0xff]  }
  0x40   : > { %2024 = vmatpush1.bf16.msra.mxu0 %v2667_v1  ;;  %1853 = vmatprep.subr.bf16.mxu1 %v2668_v2  ;;  %v2749_v1 = vld [vmem:[%s3851_s1 + $0x5c0] ss:$8 sps:$4 sm:$0xff]   ;;  %v2754_v2 = vld [vmem:[%s3851_s1 + $0x1d4] ss:$8 sps:$4 sm:$0xff]  }
  0x41   : > { %2025 = vmatprep.subr.bf16.mxu0 %v2670_v3  ;;  %v2757_v3 = vld [vmem:[%s3851_s1 + $0x5d4] ss:$8 sps:$4 sm:$0xff]  }
  0x43   : > { %1854 = vmatpush1.bf16.msra.mxu1 %v2672_v4  ;;  %v2752_v4 = vld [vmem:[%s3851_s1 + $0x1d0] ss:$8 sps:$4 sm:$0xff]  }
  0x44   : > { %2026 = vmatpush1.bf16.msra.mxu0 %v2673_v5  ;;  %1866 = vmatprep.subr.bf16.mxu1 %v2676_v6  ;;  %v2755_v5 = vld [vmem:[%s3851_s1 + $0x5d0] ss:$8 sps:$4 sm:$0xff]   ;;  %v2760_v6 = vld [vmem:[%s3851_s1 + $0x1e4] ss:$8 sps:$4 sm:$0xff]  }
  0x45   : > { %2038 = vmatprep.subr.bf16.mxu0 %v2679_v7  ;;  %v2763_v7 = vld [vmem:[%s3851_s1 + $0x5e4] ss:$8 sps:$4 sm:$0xff]  }
  0x46   : > { %1856 = vmatmul.mubr.bf16.vlgmr.msra.gmra.mrb[0].mxu1 %v2258_v8  ;;  %v2758_v8 = vld [vmem:[%s3851_s1 + $0x1e0] ss:$8 sps:$4 sm:$0xff]  }
  0x47   : > { %2028 = vmatmul.mubr.bf16.vlgmr.msra.gmra.mrb[0].mxu0 %v2266_v10  ;;  %1867 = vmatpush1.bf16.msra.mxu1 %v2674_v9  ;;  %v2761_v9 = vld [vmem:[%s3851_s1 + $0x5e0] ss:$8 sps:$4 sm:$0xff]   ;;  %v2766_v10 = vld [vmem:[%s3851_s1 + $0x1f4] ss:$8 sps:$4 sm:$0xff]  }
  0x48   : > { %2039 = vmatpush1.bf16.msra.mxu0 %v2677_v11  ;;  %1868 = vmatprep.subr.bf16.mxu1 %v2682_v12  ;;  %v2769_v11 = vld [vmem:[%s3851_s1 + $0x5f4] ss:$8 sps:$4 sm:$0xff]   ;;  %v2764_v12 = vld [vmem:[%s3851_s1 + $0x1f0] ss:$8 sps:$4 sm:$0xff]  }
  0x49   : > { %2040 = vmatprep.subr.bf16.mxu0 %v2685_v13  ;;  %1898 = vmatprep.mubr.bf16.mxu1 %v2261_v40  ;;  %v2767_v13 = vld [vmem:[%s3851_s1 + $0x5f0] ss:$8 sps:$4 sm:$0xff]   ;;  %v2794_v40 = vld [vmem:[%s3851_s1 + $0x240] ss:$8 sps:$4 sm:$0xff]  }
  0x4a   : > { %2070 = vmatprep.mubr.bf16.mxu0 %v2269_v43  ;;  %v2805_v43 = vld [vmem:[%s3851_s1 + $0x654] ss:$8 sps:$4 sm:$0xff]  }
  0x4b   : > { %1869 = vmatpush1.bf16.msra.mxu1 %v2680_v14  ;;  %v2772_v14 = vld [vmem:[%s3851_s1 + $0x204] ss:$8 sps:$4 sm:$0xff]  }
  0x4c   : > { %2041 = vmatpush1.bf16.msra.mxu0 %v2683_v15  ;;  %1870 = vmatprep.subr.bf16.mxu1 %v2688_v16  ;;  %v2775_v15 = vld [vmem:[%s3851_s1 + $0x604] ss:$8 sps:$4 sm:$0xff]   ;;  %v2260_v16 = vcombine.low %v3289_v36, %v3292_v37  ;;  %v2788_v36 = vld [vmem:[%s3851_s1 + $0x230] ss:$8 sps:$4 sm:$0xff]  }
  0x4d   : > { %2042 = vmatprep.subr.bf16.mxu0 %v2691_v17  ;;  %v2770_v17 = vld [vmem:[%s3851_s1 + $0x200] ss:$8 sps:$4 sm:$0xff]   ;;  %v2791_v37 = vld [vmem:[%s3851_s1 + $0x630] ss:$8 sps:$4 sm:$0xff]  }
  0x4f   : > { %1871 = vmatpush1.bf16.msra.mxu1 %v2686_v18  ;;  %v2268_v18 = vcombine.low %v3303_v41, %v3306_v42  ;;  %v2797_v41 = vld [vmem:[%s3851_s1 + $0x640] ss:$8 sps:$4 sm:$0xff]   ;;  %v2802_v42 = vld [vmem:[%s3851_s1 + $0x254] ss:$8 sps:$4 sm:$0xff]  }
  0x50   : > { %2043 = vmatpush1.bf16.msra.mxu0 %v2689_v19  ;;  %1872 = vmatprep.subr.bf16.mxu1 %v2694_v20  ;;  %v2773_v19 = vld [vmem:[%s3851_s1 + $0x600] ss:$8 sps:$4 sm:$0xff]   ;;  %v2778_v20 = vld [vmem:[%s3851_s1 + $0x214] ss:$8 sps:$4 sm:$0xff]  }
  0x51   : > { %2044 = vmatprep.subr.bf16.mxu0 %v2697_v21  ;;  %v2781_v21 = vld [vmem:[%s3851_s1 + $0x614] ss:$8 sps:$4 sm:$0xff]  }
  0x53   : > { %1873 = vmatpush1.bf16.msra.mxu1 %v2692_v22  ;;  %v2776_v22 = vld [vmem:[%s3851_s1 + $0x210] ss:$8 sps:$4 sm:$0xff]  }
  0x54   : > { %2045 = vmatpush1.bf16.msra.mxu0 %v2695_v23  ;;  %1874 = vmatprep.subr.bf16.mxu1 %v2700_v24  ;;  %v2779_v23 = vld [vmem:[%s3851_s1 + $0x610] ss:$8 sps:$4 sm:$0xff]  }
  0x55   : > { %2046 = vmatprep.subr.bf16.mxu0 %v2703_v25  ;;  %v3441_v24 = vld [vmem:[%s3138_s4 + $0x10] sm:$0xff] }
  0x56   : > { %v3444_v25 = vld [vmem:[%s3138_s4 + $0x50] sm:$0xff] }
  0x57   : > { %1875 = vmatpush1.bf16.msra.mxu1 %v2698_v26  ;;  %v2784_v26 = vld [vmem:[%s3851_s1 + $0x224] ss:$8 sps:$4 sm:$0xff]  }
  0x58   : > { %2047 = vmatpush1.bf16.msra.mxu0 %v2701_v27  ;;  %1876 = vmatprep.subr.bf16.mxu1 %v2706_v28  ;;  %v2787_v27 = vld [vmem:[%s3851_s1 + $0x624] ss:$8 sps:$4 sm:$0xff]   ;;  %v2263_v28 = vcombine.high %v3441_v24, %v3444_v25 }
  0x59   : > { %2048 = vmatprep.subr.bf16.mxu0 %v2709_v29  ;;  %v3455_v29 = vld [vmem:[%s3138_s4 + $0x30] sm:$0xff] }
  0x5b   : > { %1877 = vmatpush1.bf16.msra.mxu1 %v2704_v30  ;;  %v3458_v30 = vld [vmem:[%s3138_s4 + $0x70] sm:$0xff] }
  0x5c   : > { %2049 = vmatpush1.bf16.msra.mxu0 %v2707_v31  ;;  %1878 = vmatprep.subr.bf16.mxu1 %v2712_v32  ;;  %v2271_v31 = vcombine.high %v3455_v29, %v3458_v30  ;;  %v2782_v32 = vld [vmem:[%s3851_s1 + $0x220] ss:$8 sps:$4 sm:$0xff]  }
  0x5d   : > { %2050 = vmatprep.subr.bf16.mxu0 %v2715_v33  ;;  %v2785_v33 = vld [vmem:[%s3851_s1 + $0x620] ss:$8 sps:$4 sm:$0xff]  }
  0x5f   : > { %1879 = vmatpush1.bf16.msra.mxu1 %v2710_v34  ;;  %v2790_v34 = vld [vmem:[%s3851_s1 + $0x234] ss:$8 sps:$4 sm:$0xff]  }
  0x60   : > { %2051 = vmatpush1.bf16.msra.mxu0 %v2713_v35  ;;  %1880 = vmatprep.subr.bf16.mxu1 %v2718_v38  ;;  %v2793_v35 = vld [vmem:[%s3851_s1 + $0x634] ss:$8 sps:$4 sm:$0xff]   ;;  %v2796_v38 = vld [vmem:[%s3851_s1 + $0x244] ss:$8 sps:$4 sm:$0xff]  }
  0x61   : > { %2052 = vmatprep.subr.bf16.mxu0 %v2721_v39  ;;  %v2799_v39 = vld [vmem:[%s3851_s1 + $0x644] ss:$8 sps:$4 sm:$0xff]  }
  0x63   : > { %1881 = vmatpush1.bf16.msra.mxu1 %v2716_v44  ;;  %v2800_v44 = vld [vmem:[%s3851_s1 + $0x250] ss:$8 sps:$4 sm:$0xff]  }
  0x64   : > { %2053 = vmatpush1.bf16.msra.mxu0 %v2719_v45  ;;  %1882 = vmatprep.subr.bf16.mxu1 %v2724_v46  ;;  %v2803_v45 = vld [vmem:[%s3851_s1 + $0x650] ss:$8 sps:$4 sm:$0xff]   ;;  %v2808_v46 = vld [vmem:[%s3851_s1 + $0x264] ss:$8 sps:$4 sm:$0xff]  }
  0x65   : > { %2054 = vmatprep.subr.bf16.mxu0 %v2727_v47  ;;  %v2811_v47 = vld [vmem:[%s3851_s1 + $0x664] ss:$8 sps:$4 sm:$0xff]  }
  0x67   : > { %1883 = vmatpush1.bf16.msra.mxu1 %v2722_v48  ;;  %v2806_v48 = vld [vmem:[%s3851_s1 + $0x260] ss:$8 sps:$4 sm:$0xff]  }
  0x68   : > { %2055 = vmatpush1.bf16.msra.mxu0 %v2725_v49  ;;  %1884 = vmatprep.subr.bf16.mxu1 %v2730_v50  ;;  %v2809_v49 = vld [vmem:[%s3851_s1 + $0x660] ss:$8 sps:$4 sm:$0xff]   ;;  %v2814_v50 = vld [vmem:[%s3851_s1 + $0x274] ss:$8 sps:$4 sm:$0xff]  }
  0x69   : > { %2056 = vmatprep.subr.bf16.mxu0 %v2733_v51  ;;  %v2817_v51 = vld [vmem:[%s3851_s1 + $0x674] ss:$8 sps:$4 sm:$0xff]  }
  0x6b   : > { %1885 = vmatpush1.bf16.msra.mxu1 %v2728_v52  ;;  %v2812_v52 = vld [vmem:[%s3851_s1 + $0x270] ss:$8 sps:$4 sm:$0xff]  }
  0x6c   : > { %2057 = vmatpush1.bf16.msra.mxu0 %v2731_v53  ;;  %1886 = vmatprep.subr.bf16.mxu1 %v2736_v54  ;;  %v2815_v53 = vld [vmem:[%s3851_s1 + $0x670] ss:$8 sps:$4 sm:$0xff]   ;;  %v2820_v54 = vld [vmem:[%s3851_s1 + $0x284] ss:$8 sps:$4 sm:$0xff]  }
  0x6d   : > { %2058 = vmatprep.subr.bf16.mxu0 %v2739_v55  ;;  %v2823_v55 = vld [vmem:[%s3851_s1 + $0x684] ss:$8 sps:$4 sm:$0xff]  }
  0x6f   : > { %1887 = vmatpush1.bf16.msra.mxu1 %v2734_v56  ;;  %v2818_v56 = vld [vmem:[%s3851_s1 + $0x280] ss:$8 sps:$4 sm:$0xff]  }
  0x70   : > { %2059 = vmatpush1.bf16.msra.mxu0 %v2737_v57  ;;  %1888 = vmatprep.subr.bf16.mxu1 %v2742_v58  ;;  %v2821_v57 = vld [vmem:[%s3851_s1 + $0x680] ss:$8 sps:$4 sm:$0xff]   ;;  %v2826_v58 = vld [vmem:[%s3851_s1 + $0x294] ss:$8 sps:$4 sm:$0xff]  }
  0x71   : > { %2060 = vmatprep.subr.bf16.mxu0 %v2745_v59  ;;  %v2829_v59 = vld [vmem:[%s3851_s1 + $0x694] ss:$8 sps:$4 sm:$0xff]  }
  0x73   : > { %1889 = vmatpush1.bf16.msra.mxu1 %v2740_v60  ;;  %v2824_v60 = vld [vmem:[%s3851_s1 + $0x290] ss:$8 sps:$4 sm:$0xff]  }
  0x74   : > { %2061 = vmatpush1.bf16.msra.mxu0 %v2743_v61  ;;  %1890 = vmatprep.subr.bf16.mxu1 %v2748_v62  ;;  %v2827_v61 = vld [vmem:[%s3851_s1 + $0x690] ss:$8 sps:$4 sm:$0xff]   ;;  %v2832_v62 = vld [vmem:[%s3851_s1 + $0x2a4] ss:$8 sps:$4 sm:$0xff]  }
  0x75   : > { %2062 = vmatprep.subr.bf16.mxu0 %v2751_v63  ;;  %v2835_v63 = vld [vmem:[%s3851_s1 + $0x6a4] ss:$8 sps:$4 sm:$0xff]  }
  0x77   : > { %1891 = vmatpush1.bf16.msra.mxu1 %v2746_v0  ;;  %v2830_v0 = vld [vmem:[%s3851_s1 + $0x2a0] ss:$8 sps:$4 sm:$0xff]  }
  0x78   : > { %2063 = vmatpush1.bf16.msra.mxu0 %v2749_v1  ;;  %1892 = vmatprep.subr.bf16.mxu1 %v2754_v2  ;;  %v2833_v1 = vld [vmem:[%s3851_s1 + $0x6a0] ss:$8 sps:$4 sm:$0xff]   ;;  %v2838_v2 = vld [vmem:[%s3851_s1 + $0x2b4] ss:$8 sps:$4 sm:$0xff]  }
  0x79   : > { %2064 = vmatprep.subr.bf16.mxu0 %v2757_v3  ;;  %v2841_v3 = vld [vmem:[%s3851_s1 + $0x6b4] ss:$8 sps:$4 sm:$0xff]  }
  0x7b   : > { %1893 = vmatpush1.bf16.msra.mxu1 %v2752_v4  ;;  %v2836_v4 = vld [vmem:[%s3851_s1 + $0x2b0] ss:$8 sps:$4 sm:$0xff]  }
  0x7c   : > { %2065 = vmatpush1.bf16.msra.mxu0 %v2755_v5  ;;  %1894 = vmatprep.subr.bf16.mxu1 %v2760_v6  ;;  %v2839_v5 = vld [vmem:[%s3851_s1 + $0x6b0] ss:$8 sps:$4 sm:$0xff]   ;;  %v2844_v6 = vld [vmem:[%s3851_s1 + $0x2c4] ss:$8 sps:$4 sm:$0xff]  }
  0x7d   : > { %2066 = vmatprep.subr.bf16.mxu0 %v2763_v7  ;;  %v2847_v7 = vld [vmem:[%s3851_s1 + $0x6c4] ss:$8 sps:$4 sm:$0xff]  }
  0x7f   : > { %1895 = vmatpush1.bf16.msra.mxu1 %v2758_v8  ;;  %v2842_v8 = vld [vmem:[%s3851_s1 + $0x2c0] ss:$8 sps:$4 sm:$0xff]  }
  0x80   : > { %2067 = vmatpush1.bf16.msra.mxu0 %v2761_v9  ;;  %1896 = vmatprep.subr.bf16.mxu1 %v2766_v10  ;;  %v2845_v9 = vld [vmem:[%s3851_s1 + $0x6c0] ss:$8 sps:$4 sm:$0xff]   ;;  %v2850_v10 = vld [vmem:[%s3851_s1 + $0x2d4] ss:$8 sps:$4 sm:$0xff]  }
  0x81   : > { %2068 = vmatprep.subr.bf16.mxu0 %v2769_v11  ;;  %v2853_v11 = vld [vmem:[%s3851_s1 + $0x6d4] ss:$8 sps:$4 sm:$0xff]  }
  0x83   : > { %1897 = vmatpush1.bf16.msra.mxu1 %v2764_v12  ;;  %v2848_v12 = vld [vmem:[%s3851_s1 + $0x2d0] ss:$8 sps:$4 sm:$0xff]  }
  0x84   : > { %2069 = vmatpush1.bf16.msra.mxu0 %v2767_v13  ;;  %1909 = vmatprep.subr.bf16.mxu1 %v2772_v14  ;;  %v2851_v13 = vld [vmem:[%s3851_s1 + $0x6d0] ss:$8 sps:$4 sm:$0xff]   ;;  %v2856_v14 = vld [vmem:[%s3851_s1 + $0x2e4] ss:$8 sps:$4 sm:$0xff]  }
  0x85   : > { %2081 = vmatprep.subr.bf16.mxu0 %v2775_v15  ;;  %v2859_v15 = vld [vmem:[%s3851_s1 + $0x6e4] ss:$8 sps:$4 sm:$0xff]  }
  0x86   : > { %1899 = vmatmul.mubr.bf16.vlgmr.msra.gmra.mrb[0].mxu1 %v2260_v16  ;;  %v2854_v16 = vld [vmem:[%s3851_s1 + $0x2e0] ss:$8 sps:$4 sm:$0xff]  }
  0x87   : > { %2071 = vmatmul.mubr.bf16.vlgmr.msra.gmra.mrb[0].mxu0 %v2268_v18  ;;  %1910 = vmatpush1.bf16.msra.mxu1 %v2770_v17  ;;  %v2857_v17 = vld [vmem:[%s3851_s1 + $0x6e0] ss:$8 sps:$4 sm:$0xff]   ;;  %v2862_v18 = vld [vmem:[%s3851_s1 + $0x2f4] ss:$8 sps:$4 sm:$0xff]  }
  0x88   : > { %2082 = vmatpush1.bf16.msra.mxu0 %v2773_v19  ;;  %1911 = vmatprep.subr.bf16.mxu1 %v2778_v20  ;;  %v2865_v19 = vld [vmem:[%s3851_s1 + $0x6f4] ss:$8 sps:$4 sm:$0xff]   ;;  %v2860_v20 = vld [vmem:[%s3851_s1 + $0x2f0] ss:$8 sps:$4 sm:$0xff]  }
  0x89   : > { %2083 = vmatprep.subr.bf16.mxu0 %v2781_v21  ;;  %1941 = vmatprep.mubr.bf16.mxu1 %v2263_v28  ;;  %v2863_v21 = vld [vmem:[%s3851_s1 + $0x6f0] ss:$8 sps:$4 sm:$0xff]   ;;  %v2270_v28 = vcombine.low %v3455_v29, %v3458_v30 }
  0x8a   : > { %2113 = vmatprep.mubr.bf16.mxu0 %v2271_v31  ;;  %v3638_v31 = vld [vmem:[%s3138_s4 + $0x58] sm:$0xff] }
  0x8b   : > { %1912 = vmatpush1.bf16.msra.mxu1 %v2776_v22  ;;  %v2868_v22 = vld [vmem:[%s3851_s1 + $0x304] ss:$8 sps:$4 sm:$0xff]  }
  0x8c   : > { %2084 = vmatpush1.bf16.msra.mxu0 %v2779_v23  ;;  %1913 = vmatprep.subr.bf16.mxu1 %v2784_v26  ;;  %v2871_v23 = vld [vmem:[%s3851_s1 + $0x704] ss:$8 sps:$4 sm:$0xff]   ;;  %v3631_v26 = vld [vmem:[%s3138_s4 + $0x18] sm:$0xff] }
  0x8d   : > { %2085 = vmatprep.subr.bf16.mxu0 %v2787_v27  ;;  %v2262_v27 = vcombine.low %v3441_v24, %v3444_v25  ;;  %v2874_v24 = vld [vmem:[%s3851_s1 + $0x314] ss:$8 sps:$4 sm:$0xff]   ;;  %v2265_v29 = vcombine.high %v3631_v26, %v3638_v31 }
  0x8e   : > { %v2877_v25 = vld [vmem:[%s3851_s1 + $0x714] ss:$8 sps:$4 sm:$0xff]  }
  0x8f   : > { %1914 = vmatpush1.bf16.msra.mxu1 %v2782_v32  ;;  %v3641_v32 = vld [vmem:[%s3138_s4 + $0x38] sm:$0xff] }
  0x90   : > { %2086 = vmatpush1.bf16.msra.mxu0 %v2785_v33  ;;  %1915 = vmatprep.subr.bf16.mxu1 %v2790_v34  ;;  %v3644_v33 = vld [vmem:[%s3138_s4 + $0x78] sm:$0xff]  ;;  %v2866_v34 = vld [vmem:[%s3851_s1 + $0x300] ss:$8 sps:$4 sm:$0xff]  }
  0x91   : > { %2087 = vmatprep.subr.bf16.mxu0 %v2793_v35  ;;  %v2869_v35 = vld [vmem:[%s3851_s1 + $0x700] ss:$8 sps:$4 sm:$0xff]   ;;  %v2273_v30 = vcombine.high %v3641_v32, %v3644_v33 }
  0x93   : > { %1916 = vmatpush1.bf16.msra.mxu1 %v2788_v36  ;;  %v2872_v36 = vld [vmem:[%s3851_s1 + $0x310] ss:$8 sps:$4 sm:$0xff]  }
  0x94   : > { %2088 = vmatpush1.bf16.msra.mxu0 %v2791_v37  ;;  %1917 = vmatprep.subr.bf16.mxu1 %v2796_v38  ;;  %v2875_v37 = vld [vmem:[%s3851_s1 + $0x710] ss:$8 sps:$4 sm:$0xff]   ;;  %v2880_v38 = vld [vmem:[%s3851_s1 + $0x324] ss:$8 sps:$4 sm:$0xff]  }
  0x95   : > { %2089 = vmatprep.subr.bf16.mxu0 %v2799_v39  ;;  %v2883_v39 = vld [vmem:[%s3851_s1 + $0x724] ss:$8 sps:$4 sm:$0xff]  }
  0x97   : > { %1918 = vmatpush1.bf16.msra.mxu1 %v2794_v40  ;;  %v2878_v40 = vld [vmem:[%s3851_s1 + $0x320] ss:$8 sps:$4 sm:$0xff]  }
  0x98   : > { %2090 = vmatpush1.bf16.msra.mxu0 %v2797_v41  ;;  %1919 = vmatprep.subr.bf16.mxu1 %v2802_v42  ;;  %v2881_v41 = vld [vmem:[%s3851_s1 + $0x720] ss:$8 sps:$4 sm:$0xff]   ;;  %v2886_v42 = vld [vmem:[%s3851_s1 + $0x334] ss:$8 sps:$4 sm:$0xff]  }
  0x99   : > { %2091 = vmatprep.subr.bf16.mxu0 %v2805_v43  ;;  %v2889_v43 = vld [vmem:[%s3851_s1 + $0x734] ss:$8 sps:$4 sm:$0xff]  }
  0x9b   : > { %1920 = vmatpush1.bf16.msra.mxu1 %v2800_v44  ;;  %v2884_v44 = vld [vmem:[%s3851_s1 + $0x330] ss:$8 sps:$4 sm:$0xff]  }
  0x9c   : > { %2092 = vmatpush1.bf16.msra.mxu0 %v2803_v45  ;;  %1921 = vmatprep.subr.bf16.mxu1 %v2808_v46  ;;  %v2887_v45 = vld [vmem:[%s3851_s1 + $0x730] ss:$8 sps:$4 sm:$0xff]   ;;  %v2892_v46 = vld [vmem:[%s3851_s1 + $0x344] ss:$8 sps:$4 sm:$0xff]  }
  0x9d   : > { %2093 = vmatprep.subr.bf16.mxu0 %v2811_v47  ;;  %v2895_v47 = vld [vmem:[%s3851_s1 + $0x744] ss:$8 sps:$4 sm:$0xff]  }
  0x9f   : > { %1922 = vmatpush1.bf16.msra.mxu1 %v2806_v48  ;;  %v2890_v48 = vld [vmem:[%s3851_s1 + $0x340] ss:$8 sps:$4 sm:$0xff]  }
  0xa0   : > { %2094 = vmatpush1.bf16.msra.mxu0 %v2809_v49  ;;  %1923 = vmatprep.subr.bf16.mxu1 %v2814_v50  ;;  %v2893_v49 = vld [vmem:[%s3851_s1 + $0x740] ss:$8 sps:$4 sm:$0xff]   ;;  %v2898_v50 = vld [vmem:[%s3851_s1 + $0x354] ss:$8 sps:$4 sm:$0xff]  }
  0xa1   : > { %2095 = vmatprep.subr.bf16.mxu0 %v2817_v51  ;;  %v2901_v51 = vld [vmem:[%s3851_s1 + $0x754] ss:$8 sps:$4 sm:$0xff]  }
  0xa3   : > { %1924 = vmatpush1.bf16.msra.mxu1 %v2812_v52  ;;  %v2896_v52 = vld [vmem:[%s3851_s1 + $0x350] ss:$8 sps:$4 sm:$0xff]  }
  0xa4   : > { %2096 = vmatpush1.bf16.msra.mxu0 %v2815_v53  ;;  %1925 = vmatprep.subr.bf16.mxu1 %v2820_v54  ;;  %v2899_v53 = vld [vmem:[%s3851_s1 + $0x750] ss:$8 sps:$4 sm:$0xff]   ;;  %v2904_v54 = vld [vmem:[%s3851_s1 + $0x364] ss:$8 sps:$4 sm:$0xff]  }
  0xa5   : > { %2097 = vmatprep.subr.bf16.mxu0 %v2823_v55  ;;  %v2907_v55 = vld [vmem:[%s3851_s1 + $0x764] ss:$8 sps:$4 sm:$0xff]  }
  0xa7   : > { %1926 = vmatpush1.bf16.msra.mxu1 %v2818_v56  ;;  %v2902_v56 = vld [vmem:[%s3851_s1 + $0x360] ss:$8 sps:$4 sm:$0xff]  }
  0xa8   : > { %2098 = vmatpush1.bf16.msra.mxu0 %v2821_v57  ;;  %1927 = vmatprep.subr.bf16.mxu1 %v2826_v58  ;;  %v2905_v57 = vld [vmem:[%s3851_s1 + $0x760] ss:$8 sps:$4 sm:$0xff]   ;;  %v2910_v58 = vld [vmem:[%s3851_s1 + $0x374] ss:$8 sps:$4 sm:$0xff]  }
  0xa9   : > { %2099 = vmatprep.subr.bf16.mxu0 %v2829_v59  ;;  %v2913_v59 = vld [vmem:[%s3851_s1 + $0x774] ss:$8 sps:$4 sm:$0xff]  }
  0xab   : > { %1928 = vmatpush1.bf16.msra.mxu1 %v2824_v60  ;;  %v2908_v60 = vld [vmem:[%s3851_s1 + $0x370] ss:$8 sps:$4 sm:$0xff]  }
  0xac   : > { %2100 = vmatpush1.bf16.msra.mxu0 %v2827_v61  ;;  %1929 = vmatprep.subr.bf16.mxu1 %v2832_v62  ;;  %v2911_v61 = vld [vmem:[%s3851_s1 + $0x770] ss:$8 sps:$4 sm:$0xff]   ;;  %v2916_v62 = vld [vmem:[%s3851_s1 + $0x384] ss:$8 sps:$4 sm:$0xff]  }
  0xad   : > { %2101 = vmatprep.subr.bf16.mxu0 %v2835_v63  ;;  %v2919_v63 = vld [vmem:[%s3851_s1 + $0x784] ss:$8 sps:$4 sm:$0xff]  }
  0xaf   : > { %1930 = vmatpush1.bf16.msra.mxu1 %v2830_v0  ;;  %v2914_v0 = vld [vmem:[%s3851_s1 + $0x380] ss:$8 sps:$4 sm:$0xff]  }
  0xb0   : > { %2102 = vmatpush1.bf16.msra.mxu0 %v2833_v1  ;;  %1931 = vmatprep.subr.bf16.mxu1 %v2838_v2  ;;  %v2917_v1 = vld [vmem:[%s3851_s1 + $0x780] ss:$8 sps:$4 sm:$0xff]   ;;  %v2922_v2 = vld [vmem:[%s3851_s1 + $0x394] ss:$8 sps:$4 sm:$0xff]  }
  0xb1   : > { %2103 = vmatprep.subr.bf16.mxu0 %v2841_v3  ;;  %v2925_v3 = vld [vmem:[%s3851_s1 + $0x794] ss:$8 sps:$4 sm:$0xff]  }
  0xb3   : > { %1932 = vmatpush1.bf16.msra.mxu1 %v2836_v4  ;;  %v2920_v4 = vld [vmem:[%s3851_s1 + $0x390] ss:$8 sps:$4 sm:$0xff]  }
  0xb4   : > { %2104 = vmatpush1.bf16.msra.mxu0 %v2839_v5  ;;  %1933 = vmatprep.subr.bf16.mxu1 %v2844_v6  ;;  %v2923_v5 = vld [vmem:[%s3851_s1 + $0x790] ss:$8 sps:$4 sm:$0xff]   ;;  %v2928_v6 = vld [vmem:[%s3851_s1 + $0x3a4] ss:$8 sps:$4 sm:$0xff]  }
  0xb5   : > { %2105 = vmatprep.subr.bf16.mxu0 %v2847_v7  ;;  %v2931_v7 = vld [vmem:[%s3851_s1 + $0x7a4] ss:$8 sps:$4 sm:$0xff]  }
  0xb7   : > { %1934 = vmatpush1.bf16.msra.mxu1 %v2842_v8  ;;  %v2926_v8 = vld [vmem:[%s3851_s1 + $0x3a0] ss:$8 sps:$4 sm:$0xff]  }
  0xb8   : > { %2106 = vmatpush1.bf16.msra.mxu0 %v2845_v9  ;;  %1935 = vmatprep.subr.bf16.mxu1 %v2850_v10  ;;  %v2929_v9 = vld [vmem:[%s3851_s1 + $0x7a0] ss:$8 sps:$4 sm:$0xff]   ;;  %v2934_v10 = vld [vmem:[%s3851_s1 + $0x3b4] ss:$8 sps:$4 sm:$0xff]  }
  0xb9   : > { %2107 = vmatprep.subr.bf16.mxu0 %v2853_v11  ;;  %v2937_v11 = vld [vmem:[%s3851_s1 + $0x7b4] ss:$8 sps:$4 sm:$0xff]  }
  0xbb   : > { %1936 = vmatpush1.bf16.msra.mxu1 %v2848_v12  ;;  %v2932_v12 = vld [vmem:[%s3851_s1 + $0x3b0] ss:$8 sps:$4 sm:$0xff]  }
  0xbc   : > { %2108 = vmatpush1.bf16.msra.mxu0 %v2851_v13  ;;  %1937 = vmatprep.subr.bf16.mxu1 %v2856_v14  ;;  %v2935_v13 = vld [vmem:[%s3851_s1 + $0x7b0] ss:$8 sps:$4 sm:$0xff]   ;;  %v2940_v14 = vld [vmem:[%s3851_s1 + $0x3c4] ss:$8 sps:$4 sm:$0xff]  }
  0xbd   : > { %2109 = vmatprep.subr.bf16.mxu0 %v2859_v15  ;;  %v2943_v15 = vld [vmem:[%s3851_s1 + $0x7c4] ss:$8 sps:$4 sm:$0xff]  }
  0xbf   : > { %1938 = vmatpush1.bf16.msra.mxu1 %v2854_v16  ;;  %v2938_v16 = vld [vmem:[%s3851_s1 + $0x3c0] ss:$8 sps:$4 sm:$0xff]  }
  0xc0   : > { %2110 = vmatpush1.bf16.msra.mxu0 %v2857_v17  ;;  %1939 = vmatprep.subr.bf16.mxu1 %v2862_v18  ;;  %v2941_v17 = vld [vmem:[%s3851_s1 + $0x7c0] ss:$8 sps:$4 sm:$0xff]   ;;  %v2946_v18 = vld [vmem:[%s3851_s1 + $0x3d4] ss:$8 sps:$4 sm:$0xff]  }
  0xc1   : > { %2111 = vmatprep.subr.bf16.mxu0 %v2865_v19  ;;  %v2949_v19 = vld [vmem:[%s3851_s1 + $0x7d4] ss:$8 sps:$4 sm:$0xff]  }
  0xc3   : > { %1940 = vmatpush1.bf16.msra.mxu1 %v2860_v20  ;;  %v2944_v20 = vld [vmem:[%s3851_s1 + $0x3d0] ss:$8 sps:$4 sm:$0xff]  }
  0xc4   : > { %2112 = vmatpush1.bf16.msra.mxu0 %v2863_v21  ;;  %1952 = vmatprep.subr.bf16.mxu1 %v2868_v22  ;;  %v2947_v21 = vld [vmem:[%s3851_s1 + $0x7d0] ss:$8 sps:$4 sm:$0xff]   ;;  %v2952_v22 = vld [vmem:[%s3851_s1 + $0x3e4] ss:$8 sps:$4 sm:$0xff]  }
  0xc5   : > { %2124 = vmatprep.subr.bf16.mxu0 %v2871_v23  ;;  %v2955_v23 = vld [vmem:[%s3851_s1 + $0x7e4] ss:$8 sps:$4 sm:$0xff]  }
  0xc6   : > { %1942 = vmatmul.mubr.bf16.vlgmr.msra.gmra.mrb[0].mxu1 %v2262_v27  ;;  %v2950_v27 = vld [vmem:[%s3851_s1 + $0x3e0] ss:$8 sps:$4 sm:$0xff]  }
  0xc7   : > { %2114 = vmatmul.mubr.bf16.vlgmr.msra.gmra.mrb[0].mxu0 %v2270_v28  ;;  %1953 = vmatpush1.bf16.msra.mxu1 %v2866_v34  ;;  %v2953_v28 = vld [vmem:[%s3851_s1 + $0x7e0] ss:$8 sps:$4 sm:$0xff]   ;;  %v2958_v34 = vld [vmem:[%s3851_s1 + $0x3f4] ss:$8 sps:$4 sm:$0xff]  }
  0xc8   : > { %2125 = vmatpush1.bf16.msra.mxu0 %v2869_v35  ;;  %1954 = vmatprep.subr.bf16.mxu1 %v2874_v24  ;;  %v2961_v35 = vld [vmem:[%s3851_s1 + $0x7f4] ss:$8 sps:$4 sm:$0xff]   ;;  %v2956_v24 = vld [vmem:[%s3851_s1 + $0x3f0] ss:$8 sps:$4 sm:$0xff]  }
  0xc9   : > { %2126 = vmatprep.subr.bf16.mxu0 %v2877_v25  ;;  %1984 = vmatprep.mubr.bf16.mxu1 %v2265_v29  ;;  %v2959_v25 = vld [vmem:[%s3851_s1 + $0x7f0] ss:$8 sps:$4 sm:$0xff]   ;;  %v2264_v29 = vcombine.low %v3631_v26, %v3638_v31 }
  0xca   : > { %2156 = vmatprep.mubr.bf16.mxu0 %v2273_v30  ;;  %v2272_v30 = vcombine.low %v3641_v32, %v3644_v33 }
  0xcb   : > { %1955 = vmatpush1.bf16.msra.mxu1 %v2872_v36  ;;  %v453_v36 = vlaneseq }
  0xcc   : > { %2127 = vmatpush1.bf16.msra.mxu0 %v2875_v37  ;;  %1956 = vmatprep.subr.bf16.mxu1 %v2880_v38 }
  0xcd   : > { %2128 = vmatprep.subr.bf16.mxu0 %v2883_v39  ;;  %v454_v37 = vshrl.u32 %v453_v36, 7  ;;  %v451_v39 = vld [vmem:[%s3852_s2] sm:$0x3] }
  0xcf   : > { %1957 = vmatpush1.bf16.msra.mxu1 %v2878_v40  ;;  %v455_v38 = vsub.s32 0, %v454_v37  ;;  %v459_v40 = vsub.s32 1, %v454_v37 }
  0xd0   : > { %2129 = vmatpush1.bf16.msra.mxu0 %v2881_v41  ;;  %1958 = vmatprep.subr.bf16.mxu1 %v2886_v42 }
  0xd1   : > { %2130 = vmatprep.subr.bf16.mxu0 %v2889_v43  ;;  %v456_v41 = vrot.slane %v451_v39, %v455_v38  ;;  %v460_v42 = vrot.slane %v451_v39, %v459_v40 }
  0xd3   : > { %1959 = vmatpush1.bf16.msra.mxu1 %v2884_v44 }
  0xd4   : > { %2131 = vmatpush1.bf16.msra.mxu0 %v2887_v45  ;;  %1960 = vmatprep.subr.bf16.mxu1 %v2892_v46 }
  0xd5   : > { %2132 = vmatprep.subr.bf16.mxu0 %v2895_v47 }
  0xd7   : > { %1961 = vmatpush1.bf16.msra.mxu1 %v2890_v48 }
  0xd8   : > { %2133 = vmatpush1.bf16.msra.mxu0 %v2893_v49  ;;  %1962 = vmatprep.subr.bf16.mxu1 %v2898_v50 }
  0xd9   : > { %2134 = vmatprep.subr.bf16.mxu0 %v2901_v51 }
  0xdb   : > { %1963 = vmatpush1.bf16.msra.mxu1 %v2896_v52 }
  0xdc   : > { %2135 = vmatpush1.bf16.msra.mxu0 %v2899_v53  ;;  %1964 = vmatprep.subr.bf16.mxu1 %v2904_v54 }
  0xdd   : > { %2136 = vmatprep.subr.bf16.mxu0 %v2907_v55 }
  0xdf   : > { %1965 = vmatpush1.bf16.msra.mxu1 %v2902_v56 }
  0xe0   : > { %2137 = vmatpush1.bf16.msra.mxu0 %v2905_v57  ;;  %1966 = vmatprep.subr.bf16.mxu1 %v2910_v58 }
  0xe1   : > { %2138 = vmatprep.subr.bf16.mxu0 %v2913_v59 }
  0xe3   : > { %1967 = vmatpush1.bf16.msra.mxu1 %v2908_v60 }
  0xe4   : > { %2139 = vmatpush1.bf16.msra.mxu0 %v2911_v61  ;;  %1968 = vmatprep.subr.bf16.mxu1 %v2916_v62 }
  0xe5   : > { %2140 = vmatprep.subr.bf16.mxu0 %v2919_v63 }
  0xe7   : > { %1969 = vmatpush1.bf16.msra.mxu1 %v2914_v0 }
  0xe8   : > { %2141 = vmatpush1.bf16.msra.mxu0 %v2917_v1  ;;  %1970 = vmatprep.subr.bf16.mxu1 %v2922_v2 }
  0xe9   : > { %2142 = vmatprep.subr.bf16.mxu0 %v2925_v3 }
  0xeb   : > { %1971 = vmatpush1.bf16.msra.mxu1 %v2920_v4 }
  0xec   : > { %2143 = vmatpush1.bf16.msra.mxu0 %v2923_v5  ;;  %1972 = vmatprep.subr.bf16.mxu1 %v2928_v6 }
  0xed   : > { %2144 = vmatprep.subr.bf16.mxu0 %v2931_v7 }
  0xef   : > { %1973 = vmatpush1.bf16.msra.mxu1 %v2926_v8 }
  0xf0   : > { %2145 = vmatpush1.bf16.msra.mxu0 %v2929_v9  ;;  %1974 = vmatprep.subr.bf16.mxu1 %v2934_v10 }
  0xf1   : > { %2146 = vmatprep.subr.bf16.mxu0 %v2937_v11 }
  0xf3   : > { %1975 = vmatpush1.bf16.msra.mxu1 %v2932_v12 }
  0xf4   : > { %2147 = vmatpush1.bf16.msra.mxu0 %v2935_v13  ;;  %1976 = vmatprep.subr.bf16.mxu1 %v2940_v14 }
  0xf5   : > { %2148 = vmatprep.subr.bf16.mxu0 %v2943_v15 }
  0xf7   : > { %1977 = vmatpush1.bf16.msra.mxu1 %v2938_v16 }
  0xf8   : > { %2149 = vmatpush1.bf16.msra.mxu0 %v2941_v17  ;;  %1978 = vmatprep.subr.bf16.mxu1 %v2946_v18 }
  0xf9   : > { %2150 = vmatprep.subr.bf16.mxu0 %v2949_v19 }
  0xfb   : > { %1979 = vmatpush1.bf16.msra.mxu1 %v2944_v20 }
  0xfc   : > { %2151 = vmatpush1.bf16.msra.mxu0 %v2947_v21  ;;  %1980 = vmatprep.subr.bf16.mxu1 %v2952_v22 }
  0xfd   : > { %2152 = vmatprep.subr.bf16.mxu0 %v2955_v23 }
  0xff   : > { %1981 = vmatpush1.bf16.msra.mxu1 %v2950_v27 }
 0x100   : > { %2153 = vmatpush1.bf16.msra.mxu0 %v2953_v28  ;;  %1982 = vmatprep.subr.bf16.mxu1 %v2958_v34 }
 0x101   : > { %2154 = vmatprep.subr.bf16.mxu0 %v2961_v35 }
 0x103   : > { %1983 = vmatpush1.bf16.msra.mxu1 %v2956_v24 }
 0x104   : > { %2155 = vmatpush1.bf16.msra.mxu0 %v2959_v25 }
 0x106   : > { %1985 = vmatmul.mubr.bf16.vlgmr.msra.gmra.mrb[0].mxu1 %v2264_v29 }
 0x107   : > { %2157 = vmatmul.mubr.bf16.vlgmr.msra.gmra.mrb[0].mxu0 %v2272_v30 }
 0x1d9   : > { %v1986_v43 = vpop.f32.mrb[0].mxu1 }
 0x1da   : > { %v2158_v26 = vpop.f32.mrb[0].mxu0  ;;  %v2538_v31 = vadd.f32 %v1986_v43, %v456_v41  ;;  %v1988_v44 = vpop.f32.mrb[1].mxu1 }
 0x1db   : > { %v2160_v32 = vpop.f32.mrb[1].mxu0  ;;  %v2540_v33 = vadd.f32 %v1988_v44, %v460_v42  ;;  %v1990_v45 = vpop.f32.mrb[2].mxu1 }
 0x1dc   : > { %v2162_v46 = vpop.f32.mrb[2].mxu0  ;;  %v2539_v47 = vadd.f32 %v2538_v31, %v2158_v26  ;;  %v2542_v48 = vadd.f32 %v1990_v45, %v456_v41  ;;  %v1992_v49 = vpop.f32.mrb[3].mxu1 }
 0x1dd   : > { %v2164_v50 = vpop.f32.mrb[3].mxu0  ;;  %v2541_v51 = vadd.f32 %v2540_v33, %v2160_v32  ;;  %v2544_v52 = vadd.f32 %v1992_v49, %v460_v42 }
 0x1de   : > { %v2167_v53 = vmul.f32 0.2, %v2539_v47  ;;  %v2543_v54 = vadd.f32 %v2542_v48, %v2162_v46 }
 0x1df   : > { %v2168_v55 = vmul.f32 0.2, %v2541_v51  ;;  %v2545_v56 = vadd.f32 %v2544_v52, %v2164_v50 }
 0x1e0   : > { %v2171_v57 = vmax.f32 %v2539_v47, %v2167_v53  ;;  %v2169_v58 = vmul.f32 0.2, %v2543_v54 }
 0x1e1   : > { %v2172_v59 = vmax.f32 %v2541_v51, %v2168_v55  ;;  %v2170_v60 = vmul.f32 0.2, %v2545_v56 }
 0x1e2   : > { %v2173_v61 = vmax.f32 %v2543_v54, %v2169_v58 }
 0x1e3   : > { %v2536_v62 = vpack.c.bf16 %v2172_v59, %v2171_v57  ;;  %v2174_v63 = vmax.f32 %v2545_v56, %v2170_v60 }
 0x1e5   : > { %2187 = vst [vmem:[%s177_s22] sm:$0xff] %v2536_v62  ;;  %v2537_v0 = vpack.c.bf16 %v2174_v63, %v2173_v61 }
 0x1e7   : > { %2188 = vst [vmem:[%s177_s22 + $0x8] sm:$0xff] %v2537_v0 }
 0x1e8 PF: > { %s13_s12 = sadd.s32 1, %s2968_s12  }
 0x1e9   : > { %p10_p4 = scmp.ge.s32.totalorder %s13_s12, 4  }
 0x1eb   :  { %12 = sbr.rel (!%p10_p4) target bundleno = 1 (0x1), region = 62 }

// kernel: discriminator_forward.7
= control target key start
LH: loop header
LB: loop body
LE: loop exit
PB: predicated region body
PF: predicated region fallthrough
CT: control target
= control target key end

     0   :  { %s4105_s12 = smov 0   ;;  %s4933_s0 = inlined_call_operand.vmem [shape: bf16[32,4096], index: 0, kind: input, shape index: {}]   ;;  %s4934_s1 = inlined_call_operand.vmem [shape: bf16[4096,128], index: 1, kind: input, shape index: {}]   ;;  %s4935_s2 = inlined_call_operand.vmem [shape: f32[1,128], index: 2, kind: input, shape index: {}]   ;;  %s4936_s3 = inlined_call_operand.vmem [shape: f32[32,128], index: 3, kind: output, shape index: {}]  }
   0x1 LB: > { %s3151_s13 = sadd.s32 4294967295, %s4083_s12   ;;  %p3155_p0 = scmp.ge.s32.totalorder %s4083_s12, 1  ;;  %s4083_s12 = sphi %s4105_s12, %s13_s12  }
   0x2   : > { %p139_p1 = scmp.lt.s32.totalorder %s4083_s12, 3 }
   0x4   : > { %p140_p2 = pnand %p3155_p0, %p139_p1 }
   0x5   : > { %v3813_v0 = vld [vmem:[%s4934_s1 + $0x40] sm:$0xff] (!%p140_p2)   ;;  %v3817_v4 = vld [vmem:[%s4934_s1 + $0x48] sm:$0xff] (!%p140_p2)   ;;  %v3821_v8 = vld [vmem:[%s4934_s1 + $0x50] sm:$0xff] (!%p140_p2)   ;;  %s3156_s21 = sshll.u32 (!%p140_p2), %s3151_s13, 1 }
   0x6   : > { %143 = sbr.rel (%p140_p2) target bundleno = 513 (0x201), region = 32  ;;  %v3814_v1 = vld [vmem:[%s4934_s1 + $0xc0] sm:$0xff] (!%p140_p2)   ;;  %3453 = vmatprep.subr.bf16.mxu0 (!%p140_p2), %v3813_v0  ;;  %v3818_v5 = vld [vmem:[%s4934_s1 + $0xc8] sm:$0xff] (!%p140_p2)   ;;  %v3822_v9 = vld [vmem:[%s4934_s1 + $0xd0] sm:$0xff] (!%p140_p2)   ;;  %p165_p3 = scmp.lt.s32.totalorder (!%p140_p2), %s3156_s21, 3 }
   0x7   : > { %v3815_v2 = vld [vmem:[%s4934_s1] sm:$0xff] (!%p140_p2)   ;;  %3475 = vmatprep.subr.bf16.mxu1 (!%p140_p2), %v3814_v1  ;;  %v3819_v6 = vld [vmem:[%s4934_s1 + $0x8] sm:$0xff] (!%p140_p2)   ;;  %v3823_v10 = vld [vmem:[%s4934_s1 + $0x10] sm:$0xff] (!%p140_p2)  }
   0x8   : > { %v3816_v3 = vld [vmem:[%s4934_s1 + $0x80] sm:$0xff] (!%p140_p2)   ;;  %3454 = vmatpush3.bf16.msra.mxu0 (!%p140_p2), %v3815_v2  ;;  %v3820_v7 = vld [vmem:[%s4934_s1 + $0x88] sm:$0xff] (!%p140_p2)   ;;  %v3824_v11 = vld [vmem:[%s4934_s1 + $0x90] sm:$0xff] (!%p140_p2)  }
   0x9   : > { %3476 = vmatpush3.bf16.msra.mxu1 (!%p140_p2), %v3816_v3  ;;  %3455 = vmatprep.subr.bf16.mxu0 (!%p140_p2), %v3817_v4  ;;  %v3825_v12 = vld [vmem:[%s4934_s1 + $0x58] sm:$0xff] (!%p140_p2)   ;;  %v3829_v16 = vld [vmem:[%s4934_s1 + $0x60] sm:$0xff] (!%p140_p2)   ;;  %v3833_v20 = vld [vmem:[%s4934_s1 + $0x68] sm:$0xff] (!%p140_p2)  }
   0xa   : > { %3477 = vmatprep.subr.bf16.mxu1 (!%p140_p2), %v3818_v5  ;;  %v3826_v13 = vld [vmem:[%s4934_s1 + $0xd8] sm:$0xff] (!%p140_p2)   ;;  %v3830_v17 = vld [vmem:[%s4934_s1 + $0xe0] sm:$0xff] (!%p140_p2)   ;;  %v3834_v21 = vld [vmem:[%s4934_s1 + $0xe8] sm:$0xff] (!%p140_p2)  }
   0xb   : > { %v3827_v14 = vld [vmem:[%s4934_s1 + $0x18] sm:$0xff] (!%p140_p2)   ;;  %v3831_v18 = vld [vmem:[%s4934_s1 + $0x20] sm:$0xff] (!%p140_p2)   ;;  %v3835_v22 = vld [vmem:[%s4934_s1 + $0x28] sm:$0xff] (!%p140_p2)  }
   0xc   : > { %3456 = vmatpush3.bf16.msra.mxu0 (!%p140_p2), %v3819_v6  ;;  %v3828_v15 = vld [vmem:[%s4934_s1 + $0x98] sm:$0xff] (!%p140_p2)   ;;  %v3832_v19 = vld [vmem:[%s4934_s1 + $0xa0] sm:$0xff] (!%p140_p2)   ;;  %v3836_v23 = vld [vmem:[%s4934_s1 + $0xa8] sm:$0xff] (!%p140_p2)  }
   0xd   : > { %3478 = vmatpush3.bf16.msra.mxu1 %v3820_v7  ;;  %3457 = vmatprep.subr.bf16.mxu0 %v3821_v8  ;;  %s4938_s21 = smov (!%p165_p3, %s3156_s21), 3  ;;  %v3837_v24 = vld [vmem:[%s4934_s1 + $0x70] sm:$0xff]   ;;  %v3841_v28 = vld [vmem:[%s4934_s1 + $0x78] sm:$0xff]   ;;  %v3845_v40 = vld [vmem:[%s4934_s1 + $0x140] sm:$0xff]  }
   0xe   : > { %3479 = vmatprep.subr.bf16.mxu1 %v3822_v9  ;;  %v3838_v25 = vld [vmem:[%s4934_s1 + $0xf0] sm:$0xff]   ;;  %s3452_s18 = sshll.u32 %s4938_s21, 7  ;;  %v3842_v29 = vld [vmem:[%s4934_s1 + $0xf8] sm:$0xff]   ;;  %v3846_v41 = vld [vmem:[%s4934_s1 + $0x1c0] sm:$0xff]  }
   0xf   : > { %v3839_v26 = vld [vmem:[%s4934_s1 + $0x30] sm:$0xff]   ;;  %s4211_s28 = scalar_lea.vmem %s4933_s0, %s3452_s18  ;;  %v3843_v30 = vld [vmem:[%s4934_s1 + $0x38] sm:$0xff]   ;;  %v3847_v42 = vld [vmem:[%s4934_s1 + $0x100] sm:$0xff]  }
  0x10   : > { %3458 = vmatpush3.bf16.msra.mxu0 %v3823_v10  ;;  %v3840_v27 = vld [vmem:[%s4934_s1 + $0xb0] sm:$0xff]   ;;  %v3844_v31 = vld [vmem:[%s4934_s1 + $0xb8] sm:$0xff]   ;;  %v178_v32 = vld [vmem:[%s4211_s28] sm:$0xff] }
  0x11   : > { %3480 = vmatpush3.bf16.msra.mxu1 %v3824_v11  ;;  %3459 = vmatprep.subr.bf16.mxu0 %v3825_v12  ;;  %v194_v33 = vld [vmem:[%s4211_s28 + $0x80] sm:$0xff]  ;;  %v179_v34 = vld [vmem:[%s4211_s28 + $0x8] sm:$0xff]  ;;  %v3853_v48 = vld [vmem:[%s4934_s1 + $0x150] sm:$0xff]  }
  0x12   : > { %3481 = vmatprep.subr.bf16.mxu1 %v3826_v13  ;;  %v3162_v35 = vcombine.low %v178_v32, %v194_v33  ;;  %v3163_v36 = vcombine.high %v178_v32, %v194_v33  ;;  %v195_v37 = vld [vmem:[%s4211_s28 + $0x88] sm:$0xff]  ;;  %v3848_v43 = vld [vmem:[%s4934_s1 + $0x180] sm:$0xff]   ;;  %v3854_v49 = vld [vmem:[%s4934_s1 + $0x1d0] sm:$0xff]  }
  0x13   : > { %v3164_v38 = vcombine.low %v179_v34, %v195_v37  ;;  %v3165_v39 = vcombine.high %v179_v34, %v195_v37  ;;  %v3849_v44 = vld [vmem:[%s4934_s1 + $0x148] sm:$0xff]   ;;  %v3855_v50 = vld [vmem:[%s4934_s1 + $0x110] sm:$0xff]   ;;  %v3857_v52 = vld [vmem:[%s4934_s1 + $0x158] sm:$0xff]  }
  0x14   : > { %3460 = vmatpush3.bf16.msra.mxu0 %v3827_v14  ;;  %2457 = vmatprep.mubr.bf16.mxu0 %v3163_v36  ;;  %v3850_v45 = vld [vmem:[%s4934_s1 + $0x1c8] sm:$0xff]   ;;  %v3856_v51 = vld [vmem:[%s4934_s1 + $0x190] sm:$0xff]   ;;  %v3858_v53 = vld [vmem:[%s4934_s1 + $0x1d8] sm:$0xff]  }
  0x15   : > { %3482 = vmatpush3.bf16.msra.mxu1 %v3828_v15  ;;  %3461 = vmatprep.subr.bf16.mxu0 %v3829_v16  ;;  %v3851_v46 = vld [vmem:[%s4934_s1 + $0x108] sm:$0xff]   ;;  %v3859_v54 = vld [vmem:[%s4934_s1 + $0x118] sm:$0xff]   ;;  %v3861_v56 = vld [vmem:[%s4934_s1 + $0x160] sm:$0xff]  }
  0x16   : > { %3483 = vmatprep.subr.bf16.mxu1 %v3830_v17  ;;  %2498 = vmatprep.mubr.bf16.mxu1 %v3165_v39  ;;  %v3852_v47 = vld [vmem:[%s4934_s1 + $0x188] sm:$0xff]   ;;  %v3860_v55 = vld [vmem:[%s4934_s1 + $0x198] sm:$0xff]   ;;  %v3862_v57 = vld [vmem:[%s4934_s1 + $0x1e0] sm:$0xff]  }
  0x17   : > { %v3863_v58 = vld [vmem:[%s4934_s1 + $0x120] sm:$0xff]   ;;  %v3865_v60 = vld [vmem:[%s4934_s1 + $0x168] sm:$0xff]   ;;  %v3869_v0 = vld [vmem:[%s4934_s1 + $0x170] sm:$0xff]  }
  0x18   : > { %3462 = vmatpush3.bf16.msra.mxu0 %v3831_v18  ;;  %v3864_v59 = vld [vmem:[%s4934_s1 + $0x1a0] sm:$0xff]   ;;  %v3866_v61 = vld [vmem:[%s4934_s1 + $0x1e8] sm:$0xff]   ;;  %v3870_v1 = vld [vmem:[%s4934_s1 + $0x1f0] sm:$0xff]  }
  0x19   : > { %3484 = vmatpush3.bf16.msra.mxu1 %v3832_v19  ;;  %3463 = vmatprep.subr.bf16.mxu0 %v3833_v20  ;;  %v3867_v62 = vld [vmem:[%s4934_s1 + $0x128] sm:$0xff]   ;;  %v3871_v2 = vld [vmem:[%s4934_s1 + $0x130] sm:$0xff]   ;;  %v3873_v4 = vld [vmem:[%s4934_s1 + $0x178] sm:$0xff]  }
  0x1a   : > { %3485 = vmatprep.subr.bf16.mxu1 %v3834_v21  ;;  %v3868_v63 = vld [vmem:[%s4934_s1 + $0x1a8] sm:$0xff]   ;;  %v3872_v3 = vld [vmem:[%s4934_s1 + $0x1b0] sm:$0xff]   ;;  %v3874_v5 = vld [vmem:[%s4934_s1 + $0x1f8] sm:$0xff]  }
  0x1b   : > { %v3875_v6 = vld [vmem:[%s4934_s1 + $0x138] sm:$0xff]   ;;  %v180_v8 = vld [vmem:[%s4211_s28 + $0x10] sm:$0xff]  ;;  %v3877_v16 = vld [vmem:[%s4934_s1 + $0x240] sm:$0xff]  }
  0x1c   : > { %3464 = vmatpush3.bf16.msra.mxu0 %v3835_v22  ;;  %v3876_v7 = vld [vmem:[%s4934_s1 + $0x1b8] sm:$0xff]   ;;  %v196_v9 = vld [vmem:[%s4211_s28 + $0x90] sm:$0xff]  ;;  %v3878_v17 = vld [vmem:[%s4934_s1 + $0x2c0] sm:$0xff]  }
  0x1d   : > { %3486 = vmatpush3.bf16.msra.mxu1 %v3836_v23  ;;  %3465 = vmatprep.subr.bf16.mxu0 %v3837_v24  ;;  %v3166_v10 = vcombine.low %v180_v8, %v196_v9  ;;  %v3167_v11 = vcombine.high %v180_v8, %v196_v9  ;;  %v181_v12 = vld [vmem:[%s4211_s28 + $0x18] sm:$0xff]  ;;  %v3879_v18 = vld [vmem:[%s4934_s1 + $0x200] sm:$0xff]   ;;  %v3881_v20 = vld [vmem:[%s4934_s1 + $0x248] sm:$0xff]  }
  0x1e   : > { %3487 = vmatprep.subr.bf16.mxu1 %v3838_v25  ;;  %v197_v13 = vld [vmem:[%s4211_s28 + $0x98] sm:$0xff]  ;;  %v3880_v19 = vld [vmem:[%s4934_s1 + $0x280] sm:$0xff]   ;;  %v3882_v21 = vld [vmem:[%s4934_s1 + $0x2c8] sm:$0xff]  }
  0x1f   : > { %v3168_v14 = vcombine.low %v181_v12, %v197_v13  ;;  %v3169_v15 = vcombine.high %v181_v12, %v197_v13  ;;  %v3883_v22 = vld [vmem:[%s4934_s1 + $0x208] sm:$0xff]   ;;  %v3885_v24 = vld [vmem:[%s4934_s1 + $0x250] sm:$0xff]   ;;  %v3893_v32 = vld [vmem:[%s4934_s1 + $0x260] sm:$0xff]  }
  0x20   : > { %3466 = vmatpush3.bf16.msra.mxu0 %v3839_v26  ;;  %v3884_v23 = vld [vmem:[%s4934_s1 + $0x288] sm:$0xff]   ;;  %v3886_v25 = vld [vmem:[%s4934_s1 + $0x2d0] sm:$0xff]   ;;  %v3894_v33 = vld [vmem:[%s4934_s1 + $0x2e0] sm:$0xff]  }
  0x21   : > { %3488 = vmatpush3.bf16.msra.mxu1 %v3840_v27  ;;  %3467 = vmatprep.subr.bf16.mxu0 %v3841_v28  ;;  %v3887_v26 = vld [vmem:[%s4934_s1 + $0x210] sm:$0xff]   ;;  %v3889_v28 = vld [vmem:[%s4934_s1 + $0x258] sm:$0xff]   ;;  %v3895_v34 = vld [vmem:[%s4934_s1 + $0x220] sm:$0xff]  }
  0x22   : > { %3489 = vmatprep.subr.bf16.mxu1 %v3842_v29  ;;  %v3888_v27 = vld [vmem:[%s4934_s1 + $0x290] sm:$0xff]   ;;  %v3890_v29 = vld [vmem:[%s4934_s1 + $0x2d8] sm:$0xff]   ;;  %v3897_v36 = vld [vmem:[%s4934_s1 + $0x268] sm:$0xff]  }
  0x23   : > { %v3898_v37 = vld [vmem:[%s4934_s1 + $0x2e8] sm:$0xff]   ;;  %v3925_v8 = vld [vmem:[%s4934_s1 + $0x360] sm:$0xff]  }
  0x24   : > { %3468 = vmatpush3.bf16.msra.mxu0 %v3843_v30  ;;  %v3891_v30 = vld [vmem:[%s4934_s1 + $0x218] sm:$0xff]   ;;  %v3900_v39 = vld [vmem:[%s4934_s1 + $0x2a8] sm:$0xff]   ;;  %v3926_v9 = vld [vmem:[%s4934_s1 + $0x3e0] sm:$0xff]  }
  0x25   : > { %3490 = vmatpush3.bf16.msra.mxu1 %v3844_v31  ;;  %3497 = vmatprep.subr.bf16.mxu0 %v3845_v40  ;;  %v3892_v31 = vld [vmem:[%s4934_s1 + $0x298] sm:$0xff]   ;;  %v3901_v40 = vld [vmem:[%s4934_s1 + $0x270] sm:$0xff]   ;;  %v3929_v12 = vld [vmem:[%s4934_s1 + $0x368] sm:$0xff]  }
  0x26   : > { %3519 = vmatprep.subr.bf16.mxu1 %v3846_v41  ;;  %v3902_v41 = vld [vmem:[%s4934_s1 + $0x2f0] sm:$0xff]   ;;  %v3930_v13 = vld [vmem:[%s4934_s1 + $0x3e8] sm:$0xff]  }
  0x27   : > { %2458 = vmatmul.mubr.bf16.vlgmr.msra.gmra.mrb[0].mxu0 %v3162_v35  ;;  %v3896_v35 = vld [vmem:[%s4934_s1 + $0x2a0] sm:$0xff]  }
  0x28   : > { %2499 = vmatmul.mubr.bf16.vlgmr.msra.gmra.mrb[0].mxu1 %v3164_v38  ;;  %3498 = vmatpush3.bf16.msra.mxu0 %v3847_v42  ;;  %v3899_v38 = vld [vmem:[%s4934_s1 + $0x228] sm:$0xff]   ;;  %v3903_v42 = vld [vmem:[%s4934_s1 + $0x230] sm:$0xff]  }
  0x29   : > { %3520 = vmatpush3.bf16.msra.mxu1 %v3848_v43  ;;  %3499 = vmatprep.subr.bf16.mxu0 %v3849_v44  ;;  %v3904_v43 = vld [vmem:[%s4934_s1 + $0x2b0] sm:$0xff]   ;;  %v3905_v44 = vld [vmem:[%s4934_s1 + $0x278] sm:$0xff]  }
  0x2a   : > { %3521 = vmatprep.subr.bf16.mxu1 %v3850_v45  ;;  %2539 = vmatprep.mubr.bf16.mxu0 %v3167_v11  ;;  %v3906_v45 = vld [vmem:[%s4934_s1 + $0x2f8] sm:$0xff]   ;;  %v3928_v11 = vld [vmem:[%s4934_s1 + $0x3a0] sm:$0xff]  }
  0x2b   : > { %2580 = vmatprep.mubr.bf16.mxu1 %v3169_v15  ;;  %v3932_v15 = vld [vmem:[%s4934_s1 + $0x3a8] sm:$0xff]  }
  0x2c   : > { %3500 = vmatpush3.bf16.msra.mxu0 %v3851_v46  ;;  %v3907_v46 = vld [vmem:[%s4934_s1 + $0x238] sm:$0xff]  }
  0x2d   : > { %3522 = vmatpush3.bf16.msra.mxu1 %v3852_v47  ;;  %3501 = vmatprep.subr.bf16.mxu0 %v3853_v48  ;;  %v3908_v47 = vld [vmem:[%s4934_s1 + $0x2b8] sm:$0xff]   ;;  %v182_v48 = vld [vmem:[%s4211_s28 + $0x20] sm:$0xff] }
  0x2e   : > { %3523 = vmatprep.subr.bf16.mxu1 %v3854_v49  ;;  %v198_v49 = vld [vmem:[%s4211_s28 + $0xa0] sm:$0xff] }
  0x30   : > { %3502 = vmatpush3.bf16.msra.mxu0 %v3855_v50  ;;  %v183_v50 = vld [vmem:[%s4211_s28 + $0x28] sm:$0xff] }
  0x31   : > { %3524 = vmatpush3.bf16.msra.mxu1 %v3856_v51  ;;  %3503 = vmatprep.subr.bf16.mxu0 %v3857_v52  ;;  %v199_v51 = vld [vmem:[%s4211_s28 + $0xa8] sm:$0xff]  ;;  %v3170_v52 = vcombine.low %v182_v48, %v198_v49 }
  0x32   : > { %3525 = vmatprep.subr.bf16.mxu1 %v3858_v53  ;;  %v3171_v53 = vcombine.high %v182_v48, %v198_v49  ;;  %v3957_v48 = vld [vmem:[%s4934_s1 + $0x460] sm:$0xff]  }
  0x33   : > { %v3958_v49 = vld [vmem:[%s4934_s1 + $0x4e0] sm:$0xff]  }
  0x34   : > { %3504 = vmatpush3.bf16.msra.mxu0 %v3859_v54  ;;  %v3172_v54 = vcombine.low %v183_v50, %v199_v51 }
  0x35   : > { %3526 = vmatpush3.bf16.msra.mxu1 %v3860_v55  ;;  %3505 = vmatprep.subr.bf16.mxu0 %v3861_v56  ;;  %v3173_v55 = vcombine.high %v183_v50, %v199_v51  ;;  %v3909_v56 = vld [vmem:[%s4934_s1 + $0x340] sm:$0xff]  }
  0x36   : > { %3527 = vmatprep.subr.bf16.mxu1 %v3862_v57  ;;  %v3910_v57 = vld [vmem:[%s4934_s1 + $0x3c0] sm:$0xff]  }
  0x37   : > { %v3959_v50 = vld [vmem:[%s4934_s1 + $0x420] sm:$0xff]  }
  0x38   : > { %3506 = vmatpush3.bf16.msra.mxu0 %v3863_v58  ;;  %v3911_v58 = vld [vmem:[%s4934_s1 + $0x300] sm:$0xff]  }
  0x39   : > { %3528 = vmatpush3.bf16.msra.mxu1 %v3864_v59  ;;  %3507 = vmatprep.subr.bf16.mxu0 %v3865_v60  ;;  %v3912_v59 = vld [vmem:[%s4934_s1 + $0x380] sm:$0xff]   ;;  %v3913_v60 = vld [vmem:[%s4934_s1 + $0x348] sm:$0xff]  }
  0x3a   : > { %3529 = vmatprep.subr.bf16.mxu1 %v3866_v61  ;;  %v3914_v61 = vld [vmem:[%s4934_s1 + $0x3c8] sm:$0xff]   ;;  %v3960_v51 = vld [vmem:[%s4934_s1 + $0x4a0] sm:$0xff]  }
  0x3c   : > { %3508 = vmatpush3.bf16.msra.mxu0 %v3867_v62  ;;  %v3915_v62 = vld [vmem:[%s4934_s1 + $0x308] sm:$0xff]  }
  0x3d   : > { %3530 = vmatpush3.bf16.msra.mxu1 %v3868_v63  ;;  %3509 = vmatprep.subr.bf16.mxu0 %v3869_v0  ;;  %v3916_v63 = vld [vmem:[%s4934_s1 + $0x388] sm:$0xff]   ;;  %v3917_v0 = vld [vmem:[%s4934_s1 + $0x350] sm:$0xff]  }
  0x3e   : > { %3531 = vmatprep.subr.bf16.mxu1 %v3870_v1  ;;  %v3918_v1 = vld [vmem:[%s4934_s1 + $0x3d0] sm:$0xff]  }
  0x40   : > { %3510 = vmatpush3.bf16.msra.mxu0 %v3871_v2  ;;  %v3919_v2 = vld [vmem:[%s4934_s1 + $0x310] sm:$0xff]  }
  0x41   : > { %3532 = vmatpush3.bf16.msra.mxu1 %v3872_v3  ;;  %3511 = vmatprep.subr.bf16.mxu0 %v3873_v4  ;;  %v3920_v3 = vld [vmem:[%s4934_s1 + $0x390] sm:$0xff]   ;;  %v3921_v4 = vld [vmem:[%s4934_s1 + $0x358] sm:$0xff]  }
  0x42   : > { %3533 = vmatprep.subr.bf16.mxu1 %v3874_v5  ;;  %v3922_v5 = vld [vmem:[%s4934_s1 + $0x3d8] sm:$0xff]  }
  0x44   : > { %3512 = vmatpush3.bf16.msra.mxu0 %v3875_v6  ;;  %v3923_v6 = vld [vmem:[%s4934_s1 + $0x318] sm:$0xff]  }
  0x45   : > { %3534 = vmatpush3.bf16.msra.mxu1 %v3876_v7  ;;  %3541 = vmatprep.subr.bf16.mxu0 %v3877_v16  ;;  %v3924_v7 = vld [vmem:[%s4934_s1 + $0x398] sm:$0xff]   ;;  %v3933_v16 = vld [vmem:[%s4934_s1 + $0x370] sm:$0xff]  }
  0x46   : > { %3563 = vmatprep.subr.bf16.mxu1 %v3878_v17  ;;  %v3934_v17 = vld [vmem:[%s4934_s1 + $0x3f0] sm:$0xff]  }
  0x47   : > { %2540 = vmatmul.mubr.bf16.vlgmr.msra.gmra.mrb[4].mxu0 %v3166_v10  ;;  %v3927_v10 = vld [vmem:[%s4934_s1 + $0x320] sm:$0xff]  }
  0x48   : > { %2581 = vmatmul.mubr.bf16.vlgmr.msra.gmra.mrb[4].mxu1 %v3168_v14  ;;  %3542 = vmatpush3.bf16.msra.mxu0 %v3879_v18  ;;  %v3931_v14 = vld [vmem:[%s4934_s1 + $0x328] sm:$0xff]   ;;  %v3935_v18 = vld [vmem:[%s4934_s1 + $0x330] sm:$0xff]  }
  0x49   : > { %3564 = vmatpush3.bf16.msra.mxu1 %v3880_v19  ;;  %3543 = vmatprep.subr.bf16.mxu0 %v3881_v20  ;;  %v3936_v19 = vld [vmem:[%s4934_s1 + $0x3b0] sm:$0xff]   ;;  %v3937_v20 = vld [vmem:[%s4934_s1 + $0x378] sm:$0xff]  }
  0x4a   : > { %3565 = vmatprep.subr.bf16.mxu1 %v3882_v21  ;;  %2621 = vmatprep.mubr.bf16.mxu0 %v3171_v53  ;;  %v3938_v21 = vld [vmem:[%s4934_s1 + $0x3f8] sm:$0xff]   ;;  %v3962_v53 = vld [vmem:[%s4934_s1 + $0x4e8] sm:$0xff]  }
  0x4b   : > { %2662 = vmatprep.mubr.bf16.mxu1 %v3173_v55  ;;  %v3964_v55 = vld [vmem:[%s4934_s1 + $0x4a8] sm:$0xff]  }
  0x4c   : > { %3544 = vmatpush3.bf16.msra.mxu0 %v3883_v22  ;;  %v3939_v22 = vld [vmem:[%s4934_s1 + $0x338] sm:$0xff]  }
  0x4d   : > { %3566 = vmatpush3.bf16.msra.mxu1 %v3884_v23  ;;  %3545 = vmatprep.subr.bf16.mxu0 %v3885_v24  ;;  %v3940_v23 = vld [vmem:[%s4934_s1 + $0x3b8] sm:$0xff]   ;;  %v184_v24 = vld [vmem:[%s4211_s28 + $0x30] sm:$0xff] }
  0x4e   : > { %3567 = vmatprep.subr.bf16.mxu1 %v3886_v25  ;;  %v200_v25 = vld [vmem:[%s4211_s28 + $0xb0] sm:$0xff] }
  0x50   : > { %3546 = vmatpush3.bf16.msra.mxu0 %v3887_v26  ;;  %v185_v26 = vld [vmem:[%s4211_s28 + $0x38] sm:$0xff] }
  0x51   : > { %3568 = vmatpush3.bf16.msra.mxu1 %v3888_v27  ;;  %3547 = vmatprep.subr.bf16.mxu0 %v3889_v28  ;;  %v3174_v27 = vcombine.low %v184_v24, %v200_v25  ;;  %v3175_v28 = vcombine.high %v184_v24, %v200_v25  ;;  %v3989_v24 = vld [vmem:[%s4934_s1 + $0x560] sm:$0xff]  }
  0x52   : > { %3569 = vmatprep.subr.bf16.mxu1 %v3890_v29  ;;  %v201_v29 = vld [vmem:[%s4211_s28 + $0xb8] sm:$0xff]  ;;  %v3990_v25 = vld [vmem:[%s4934_s1 + $0x5e0] sm:$0xff]  }
  0x54   : > { %3548 = vmatpush3.bf16.msra.mxu0 %v3891_v30  ;;  %v3176_v30 = vcombine.low %v185_v26, %v201_v29 }
  0x55   : > { %3570 = vmatpush3.bf16.msra.mxu1 %v3892_v31  ;;  %3549 = vmatprep.subr.bf16.mxu0 %v3893_v32  ;;  %v3177_v31 = vcombine.high %v185_v26, %v201_v29  ;;  %v3941_v32 = vld [vmem:[%s4934_s1 + $0x440] sm:$0xff]   ;;  %v3994_v29 = vld [vmem:[%s4934_s1 + $0x5e8] sm:$0xff]  }
  0x56   : > { %3571 = vmatprep.subr.bf16.mxu1 %v3894_v33  ;;  %v3942_v33 = vld [vmem:[%s4934_s1 + $0x4c0] sm:$0xff]  }
  0x57   : > { %v3991_v26 = vld [vmem:[%s4934_s1 + $0x520] sm:$0xff]  }
  0x58   : > { %3550 = vmatpush3.bf16.msra.mxu0 %v3895_v34  ;;  %v3943_v34 = vld [vmem:[%s4934_s1 + $0x400] sm:$0xff]  }
  0x59   : > { %3572 = vmatpush3.bf16.msra.mxu1 %v3896_v35  ;;  %3551 = vmatprep.subr.bf16.mxu0 %v3897_v36  ;;  %v3944_v35 = vld [vmem:[%s4934_s1 + $0x480] sm:$0xff]   ;;  %v3945_v36 = vld [vmem:[%s4934_s1 + $0x448] sm:$0xff]  }
  0x5a   : > { %3573 = vmatprep.subr.bf16.mxu1 %v3898_v37  ;;  %v3946_v37 = vld [vmem:[%s4934_s1 + $0x4c8] sm:$0xff]  }
  0x5c   : > { %3552 = vmatpush3.bf16.msra.mxu0 %v3899_v38  ;;  %v3947_v38 = vld [vmem:[%s4934_s1 + $0x408] sm:$0xff]  }
  0x5d   : > { %3574 = vmatpush3.bf16.msra.mxu1 %v3900_v39  ;;  %3553 = vmatprep.subr.bf16.mxu0 %v3901_v40  ;;  %v3948_v39 = vld [vmem:[%s4934_s1 + $0x488] sm:$0xff]   ;;  %v3949_v40 = vld [vmem:[%s4934_s1 + $0x450] sm:$0xff]  }
  0x5e   : > { %3575 = vmatprep.subr.bf16.mxu1 %v3902_v41  ;;  %v3950_v41 = vld [vmem:[%s4934_s1 + $0x4d0] sm:$0xff]  }
  0x60   : > { %3554 = vmatpush3.bf16.msra.mxu0 %v3903_v42  ;;  %v3951_v42 = vld [vmem:[%s4934_s1 + $0x410] sm:$0xff]  }
  0x61   : > { %3576 = vmatpush3.bf16.msra.mxu1 %v3904_v43  ;;  %3555 = vmatprep.subr.bf16.mxu0 %v3905_v44  ;;  %v3952_v43 = vld [vmem:[%s4934_s1 + $0x490] sm:$0xff]   ;;  %v3953_v44 = vld [vmem:[%s4934_s1 + $0x458] sm:$0xff]  }
  0x62   : > { %3577 = vmatprep.subr.bf16.mxu1 %v3906_v45  ;;  %v3954_v45 = vld [vmem:[%s4934_s1 + $0x4d8] sm:$0xff]  }
  0x64   : > { %3556 = vmatpush3.bf16.msra.mxu0 %v3907_v46  ;;  %v3955_v46 = vld [vmem:[%s4934_s1 + $0x418] sm:$0xff]  }
  0x65   : > { %3578 = vmatpush3.bf16.msra.mxu1 %v3908_v47  ;;  %3585 = vmatprep.subr.bf16.mxu0 %v3909_v56  ;;  %v3956_v47 = vld [vmem:[%s4934_s1 + $0x498] sm:$0xff]   ;;  %v3965_v56 = vld [vmem:[%s4934_s1 + $0x470] sm:$0xff]  }
  0x66   : > { %3607 = vmatprep.subr.bf16.mxu1 %v3910_v57  ;;  %v3966_v57 = vld [vmem:[%s4934_s1 + $0x4f0] sm:$0xff]  }
  0x67   : > { %2622 = vmatmul.mubr.bf16.vlgmr.msra.gmra.mrb[8].mxu0 %v3170_v52  ;;  %v3961_v52 = vld [vmem:[%s4934_s1 + $0x468] sm:$0xff]  }
  0x68   : > { %2663 = vmatmul.mubr.bf16.vlgmr.msra.gmra.mrb[8].mxu1 %v3172_v54  ;;  %3586 = vmatpush3.bf16.msra.mxu0 %v3911_v58  ;;  %v3963_v54 = vld [vmem:[%s4934_s1 + $0x428] sm:$0xff]   ;;  %v3967_v58 = vld [vmem:[%s4934_s1 + $0x430] sm:$0xff]  }
  0x69   : > { %3608 = vmatpush3.bf16.msra.mxu1 %v3912_v59  ;;  %3587 = vmatprep.subr.bf16.mxu0 %v3913_v60  ;;  %v3968_v59 = vld [vmem:[%s4934_s1 + $0x4b0] sm:$0xff]   ;;  %v3969_v60 = vld [vmem:[%s4934_s1 + $0x478] sm:$0xff]  }
  0x6a   : > { %3609 = vmatprep.subr.bf16.mxu1 %v3914_v61  ;;  %2703 = vmatprep.mubr.bf16.mxu0 %v3175_v28  ;;  %v3970_v61 = vld [vmem:[%s4934_s1 + $0x4f8] sm:$0xff]   ;;  %v3993_v28 = vld [vmem:[%s4934_s1 + $0x568] sm:$0xff]  }
  0x6b   : > { %2744 = vmatprep.mubr.bf16.mxu1 %v3177_v31  ;;  %v3996_v31 = vld [vmem:[%s4934_s1 + $0x5a8] sm:$0xff]  }
  0x6c   : > { %3588 = vmatpush3.bf16.msra.mxu0 %v3915_v62  ;;  %v3971_v62 = vld [vmem:[%s4934_s1 + $0x438] sm:$0xff]  }
  0x6d   : > { %3610 = vmatpush3.bf16.msra.mxu1 %v3916_v63  ;;  %3589 = vmatprep.subr.bf16.mxu0 %v3917_v0  ;;  %v3972_v63 = vld [vmem:[%s4934_s1 + $0x4b8] sm:$0xff]   ;;  %v186_v0 = vld [vmem:[%s4211_s28 + $0x40] sm:$0xff] }
  0x6e   : > { %3611 = vmatprep.subr.bf16.mxu1 %v3918_v1  ;;  %v202_v1 = vld [vmem:[%s4211_s28 + $0xc0] sm:$0xff] }
  0x70   : > { %3590 = vmatpush3.bf16.msra.mxu0 %v3919_v2  ;;  %v3178_v2 = vcombine.low %v186_v0, %v202_v1 }
  0x71   : > { %3612 = vmatpush3.bf16.msra.mxu1 %v3920_v3  ;;  %3591 = vmatprep.subr.bf16.mxu0 %v3921_v4  ;;  %v3179_v3 = vcombine.high %v186_v0, %v202_v1  ;;  %v187_v4 = vld [vmem:[%s4211_s28 + $0x48] sm:$0xff]  ;;  %v4021_v0 = vld [vmem:[%s4934_s1 + $0x660] sm:$0xff]  }
  0x72   : > { %3613 = vmatprep.subr.bf16.mxu1 %v3922_v5  ;;  %v203_v5 = vld [vmem:[%s4211_s28 + $0xc8] sm:$0xff]  ;;  %v4022_v1 = vld [vmem:[%s4934_s1 + $0x6e0] sm:$0xff]  }
  0x74   : > { %3592 = vmatpush3.bf16.msra.mxu0 %v3923_v6  ;;  %v3180_v6 = vcombine.low %v187_v4, %v203_v5 }
  0x75   : > { %3614 = vmatpush3.bf16.msra.mxu1 %v3924_v7  ;;  %3593 = vmatprep.subr.bf16.mxu0 %v3925_v8  ;;  %v3181_v7 = vcombine.high %v187_v4, %v203_v5  ;;  %v3973_v8 = vld [vmem:[%s4934_s1 + $0x540] sm:$0xff]   ;;  %v4025_v4 = vld [vmem:[%s4934_s1 + $0x668] sm:$0xff]  }
  0x76   : > { %3615 = vmatprep.subr.bf16.mxu1 %v3926_v9  ;;  %v3974_v9 = vld [vmem:[%s4934_s1 + $0x5c0] sm:$0xff]   ;;  %v4026_v5 = vld [vmem:[%s4934_s1 + $0x6e8] sm:$0xff]  }
  0x78   : > { %3594 = vmatpush3.bf16.msra.mxu0 %v3927_v10  ;;  %v3975_v10 = vld [vmem:[%s4934_s1 + $0x500] sm:$0xff]  }
  0x79   : > { %3616 = vmatpush3.bf16.msra.mxu1 %v3928_v11  ;;  %3595 = vmatprep.subr.bf16.mxu0 %v3929_v12  ;;  %v3976_v11 = vld [vmem:[%s4934_s1 + $0x580] sm:$0xff]   ;;  %v3977_v12 = vld [vmem:[%s4934_s1 + $0x548] sm:$0xff]  }
  0x7a   : > { %3617 = vmatprep.subr.bf16.mxu1 %v3930_v13  ;;  %v3978_v13 = vld [vmem:[%s4934_s1 + $0x5c8] sm:$0xff]  }
  0x7c   : > { %3596 = vmatpush3.bf16.msra.mxu0 %v3931_v14  ;;  %v3979_v14 = vld [vmem:[%s4934_s1 + $0x508] sm:$0xff]  }
  0x7d   : > { %3618 = vmatpush3.bf16.msra.mxu1 %v3932_v15  ;;  %3597 = vmatprep.subr.bf16.mxu0 %v3933_v16  ;;  %v3980_v15 = vld [vmem:[%s4934_s1 + $0x588] sm:$0xff]   ;;  %v3981_v16 = vld [vmem:[%s4934_s1 + $0x550] sm:$0xff]  }
  0x7e   : > { %3619 = vmatprep.subr.bf16.mxu1 %v3934_v17  ;;  %v3982_v17 = vld [vmem:[%s4934_s1 + $0x5d0] sm:$0xff]  }
  0x80   : > { %3598 = vmatpush3.bf16.msra.mxu0 %v3935_v18  ;;  %v3983_v18 = vld [vmem:[%s4934_s1 + $0x510] sm:$0xff]  }
  0x81   : > { %3620 = vmatpush3.bf16.msra.mxu1 %v3936_v19  ;;  %3599 = vmatprep.subr.bf16.mxu0 %v3937_v20  ;;  %v3984_v19 = vld [vmem:[%s4934_s1 + $0x590] sm:$0xff]   ;;  %v3985_v20 = vld [vmem:[%s4934_s1 + $0x558] sm:$0xff]  }
  0x82   : > { %3621 = vmatprep.subr.bf16.mxu1 %v3938_v21  ;;  %v3986_v21 = vld [vmem:[%s4934_s1 + $0x5d8] sm:$0xff]  }
  0x84   : > { %3600 = vmatpush3.bf16.msra.mxu0 %v3939_v22  ;;  %v3987_v22 = vld [vmem:[%s4934_s1 + $0x518] sm:$0xff]  }
  0x85   : > { %3622 = vmatpush3.bf16.msra.mxu1 %v3940_v23  ;;  %3629 = vmatprep.subr.bf16.mxu0 %v3941_v32  ;;  %v3988_v23 = vld [vmem:[%s4934_s1 + $0x598] sm:$0xff]   ;;  %v3997_v32 = vld [vmem:[%s4934_s1 + $0x570] sm:$0xff]  }
  0x86   : > { %3651 = vmatprep.subr.bf16.mxu1 %v3942_v33  ;;  %v3998_v33 = vld [vmem:[%s4934_s1 + $0x5f0] sm:$0xff]  }
  0x87   : > { %2704 = vmatmul.mubr.bf16.vlgmr.msra.gmra.mrb[12].mxu0 %v3174_v27  ;;  %v3992_v27 = vld [vmem:[%s4934_s1 + $0x5a0] sm:$0xff]  }
  0x88   : > { %2745 = vmatmul.mubr.bf16.vlgmr.msra.gmra.mrb[12].mxu1 %v3176_v30  ;;  %3630 = vmatpush3.bf16.msra.mxu0 %v3943_v34  ;;  %v3995_v30 = vld [vmem:[%s4934_s1 + $0x528] sm:$0xff]   ;;  %v3999_v34 = vld [vmem:[%s4934_s1 + $0x530] sm:$0xff]  }
  0x89   : > { %3652 = vmatpush3.bf16.msra.mxu1 %v3944_v35  ;;  %3631 = vmatprep.subr.bf16.mxu0 %v3945_v36  ;;  %v4000_v35 = vld [vmem:[%s4934_s1 + $0x5b0] sm:$0xff]   ;;  %v4001_v36 = vld [vmem:[%s4934_s1 + $0x578] sm:$0xff]  }
  0x8a   : > { %3653 = vmatprep.subr.bf16.mxu1 %v3946_v37  ;;  %2785 = vmatprep.mubr.bf16.mxu0 %v3179_v3  ;;  %v4002_v37 = vld [vmem:[%s4934_s1 + $0x5f8] sm:$0xff]   ;;  %v4024_v3 = vld [vmem:[%s4934_s1 + $0x6a0] sm:$0xff]  }
  0x8b   : > { %2826 = vmatprep.mubr.bf16.mxu1 %v3181_v7  ;;  %v4028_v7 = vld [vmem:[%s4934_s1 + $0x6a8] sm:$0xff]  }
  0x8c   : > { %3632 = vmatpush3.bf16.msra.mxu0 %v3947_v38  ;;  %v4003_v38 = vld [vmem:[%s4934_s1 + $0x538] sm:$0xff]  }
  0x8d   : > { %3654 = vmatpush3.bf16.msra.mxu1 %v3948_v39  ;;  %3633 = vmatprep.subr.bf16.mxu0 %v3949_v40  ;;  %v4004_v39 = vld [vmem:[%s4934_s1 + $0x5b8] sm:$0xff]   ;;  %v188_v40 = vld [vmem:[%s4211_s28 + $0x50] sm:$0xff] }
  0x8e   : > { %3655 = vmatprep.subr.bf16.mxu1 %v3950_v41  ;;  %v204_v41 = vld [vmem:[%s4211_s28 + $0xd0] sm:$0xff] }
  0x90   : > { %3634 = vmatpush3.bf16.msra.mxu0 %v3951_v42  ;;  %v189_v42 = vld [vmem:[%s4211_s28 + $0x58] sm:$0xff] }
  0x91   : > { %3656 = vmatpush3.bf16.msra.mxu1 %v3952_v43  ;;  %3635 = vmatprep.subr.bf16.mxu0 %v3953_v44  ;;  %v205_v43 = vld [vmem:[%s4211_s28 + $0xd8] sm:$0xff]  ;;  %v3182_v44 = vcombine.low %v188_v40, %v204_v41 }
  0x92   : > { %3657 = vmatprep.subr.bf16.mxu1 %v3954_v45  ;;  %v3183_v45 = vcombine.high %v188_v40, %v204_v41  ;;  %v4052_v41 = vld [vmem:[%s4934_s1 + $0x798] sm:$0xff]  }
  0x94   : > { %3636 = vmatpush3.bf16.msra.mxu0 %v3955_v46  ;;  %v3184_v46 = vcombine.low %v189_v42, %v205_v43 }
  0x95   : > { %3658 = vmatpush3.bf16.msra.mxu1 %v3956_v47  ;;  %3637 = vmatprep.subr.bf16.mxu0 %v3957_v48  ;;  %v3185_v47 = vcombine.high %v189_v42, %v205_v43  ;;  %v4005_v48 = vld [vmem:[%s4934_s1 + $0x640] sm:$0xff]  }
  0x96   : > { %3659 = vmatprep.subr.bf16.mxu1 %v3958_v49  ;;  %v4006_v49 = vld [vmem:[%s4934_s1 + $0x6c0] sm:$0xff]  }
  0x97   : > { %v4053_v43 = vld [vmem:[%s4934_s1 + $0x760] sm:$0xff]  }
  0x98   : > { %3638 = vmatpush3.bf16.msra.mxu0 %v3959_v50  ;;  %v4007_v50 = vld [vmem:[%s4934_s1 + $0x600] sm:$0xff]  }
  0x99   : > { %3660 = vmatpush3.bf16.msra.mxu1 %v3960_v51  ;;  %3639 = vmatprep.subr.bf16.mxu0 %v3961_v52  ;;  %v4008_v51 = vld [vmem:[%s4934_s1 + $0x680] sm:$0xff]   ;;  %v4009_v52 = vld [vmem:[%s4934_s1 + $0x648] sm:$0xff]  }
  0x9a   : > { %3661 = vmatprep.subr.bf16.mxu1 %v3962_v53  ;;  %v4010_v53 = vld [vmem:[%s4934_s1 + $0x6c8] sm:$0xff]  }
  0x9c   : > { %3640 = vmatpush3.bf16.msra.mxu0 %v3963_v54  ;;  %v4011_v54 = vld [vmem:[%s4934_s1 + $0x608] sm:$0xff]  }
  0x9d   : > { %3662 = vmatpush3.bf16.msra.mxu1 %v3964_v55  ;;  %3641 = vmatprep.subr.bf16.mxu0 %v3965_v56  ;;  %v4012_v55 = vld [vmem:[%s4934_s1 + $0x688] sm:$0xff]   ;;  %v4013_v56 = vld [vmem:[%s4934_s1 + $0x650] sm:$0xff]  }
  0x9e   : > { %3663 = vmatprep.subr.bf16.mxu1 %v3966_v57  ;;  %v4014_v57 = vld [vmem:[%s4934_s1 + $0x6d0] sm:$0xff]  }
  0xa0   : > { %3642 = vmatpush3.bf16.msra.mxu0 %v3967_v58  ;;  %v4015_v58 = vld [vmem:[%s4934_s1 + $0x610] sm:$0xff]  }
  0xa1   : > { %3664 = vmatpush3.bf16.msra.mxu1 %v3968_v59  ;;  %3643 = vmatprep.subr.bf16.mxu0 %v3969_v60  ;;  %v4016_v59 = vld [vmem:[%s4934_s1 + $0x690] sm:$0xff]   ;;  %v4017_v60 = vld [vmem:[%s4934_s1 + $0x658] sm:$0xff]  }
  0xa2   : > { %3665 = vmatprep.subr.bf16.mxu1 %v3970_v61  ;;  %v4018_v61 = vld [vmem:[%s4934_s1 + $0x6d8] sm:$0xff]  }
  0xa4   : > { %3644 = vmatpush3.bf16.msra.mxu0 %v3971_v62  ;;  %v4019_v62 = vld [vmem:[%s4934_s1 + $0x618] sm:$0xff]  }
  0xa5   : > { %3666 = vmatpush3.bf16.msra.mxu1 %v3972_v63  ;;  %3673 = vmatprep.subr.bf16.mxu0 %v3973_v8  ;;  %v4020_v63 = vld [vmem:[%s4934_s1 + $0x698] sm:$0xff]   ;;  %v4029_v8 = vld [vmem:[%s4934_s1 + $0x670] sm:$0xff]  }
  0xa6   : > { %3695 = vmatprep.subr.bf16.mxu1 %v3974_v9  ;;  %v4030_v9 = vld [vmem:[%s4934_s1 + $0x6f0] sm:$0xff]  }
  0xa7   : > { %2786 = vmatmul.mubr.bf16.vlgmr.msra.gmra.mrb[16].mxu0 %v3178_v2  ;;  %v4023_v2 = vld [vmem:[%s4934_s1 + $0x620] sm:$0xff]  }
  0xa8   : > { %2827 = vmatmul.mubr.bf16.vlgmr.msra.gmra.mrb[16].mxu1 %v3180_v6  ;;  %3674 = vmatpush3.bf16.msra.mxu0 %v3975_v10  ;;  %v4027_v6 = vld [vmem:[%s4934_s1 + $0x628] sm:$0xff]   ;;  %v4031_v10 = vld [vmem:[%s4934_s1 + $0x630] sm:$0xff]  }
  0xa9   : > { %3696 = vmatpush3.bf16.msra.mxu1 %v3976_v11  ;;  %3675 = vmatprep.subr.bf16.mxu0 %v3977_v12  ;;  %v4032_v11 = vld [vmem:[%s4934_s1 + $0x6b0] sm:$0xff]   ;;  %v4033_v12 = vld [vmem:[%s4934_s1 + $0x678] sm:$0xff]  }
  0xaa   : > { %3697 = vmatprep.subr.bf16.mxu1 %v3978_v13  ;;  %2867 = vmatprep.mubr.bf16.mxu0 %v3183_v45  ;;  %v4034_v13 = vld [vmem:[%s4934_s1 + $0x6f8] sm:$0xff]  }
  0xab   : > { %2908 = vmatprep.mubr.bf16.mxu1 %v3185_v47 }
  0xac   : > { %3676 = vmatpush3.bf16.msra.mxu0 %v3979_v14  ;;  %v4035_v14 = vld [vmem:[%s4934_s1 + $0x638] sm:$0xff]  }
  0xad   : > { %3698 = vmatpush3.bf16.msra.mxu1 %v3980_v15  ;;  %3677 = vmatprep.subr.bf16.mxu0 %v3981_v16  ;;  %v4036_v15 = vld [vmem:[%s4934_s1 + $0x6b8] sm:$0xff]   ;;  %v190_v16 = vld [vmem:[%s4211_s28 + $0x60] sm:$0xff] }
  0xae   : > { %3699 = vmatprep.subr.bf16.mxu1 %v3982_v17  ;;  %v206_v17 = vld [vmem:[%s4211_s28 + $0xe0] sm:$0xff] }
  0xb0   : > { %3678 = vmatpush3.bf16.msra.mxu0 %v3983_v18  ;;  %v191_v18 = vld [vmem:[%s4211_s28 + $0x68] sm:$0xff] }
  0xb1   : > { %3700 = vmatpush3.bf16.msra.mxu1 %v3984_v19  ;;  %3679 = vmatprep.subr.bf16.mxu0 %v3985_v20  ;;  %v3186_v19 = vcombine.low %v190_v16, %v206_v17  ;;  %v3187_v20 = vcombine.high %v190_v16, %v206_v17 }
  0xb2   : > { %3701 = vmatprep.subr.bf16.mxu1 %v3986_v21  ;;  %v207_v21 = vld [vmem:[%s4211_s28 + $0xe8] sm:$0xff] }
  0xb4   : > { %3680 = vmatpush3.bf16.msra.mxu0 %v3987_v22  ;;  %v3188_v22 = vcombine.low %v191_v18, %v207_v21 }
  0xb5   : > { %3702 = vmatpush3.bf16.msra.mxu1 %v3988_v23  ;;  %3681 = vmatprep.subr.bf16.mxu0 %v3989_v24  ;;  %v3189_v23 = vcombine.high %v191_v18, %v207_v21  ;;  %v4037_v24 = vld [vmem:[%s4934_s1 + $0x740] sm:$0xff]  }
  0xb6   : > { %3703 = vmatprep.subr.bf16.mxu1 %v3990_v25  ;;  %v4038_v25 = vld [vmem:[%s4934_s1 + $0x7c0] sm:$0xff]  }
  0xb8   : > { %3682 = vmatpush3.bf16.msra.mxu0 %v3991_v26  ;;  %v4039_v26 = vld [vmem:[%s4934_s1 + $0x700] sm:$0xff]  }
  0xb9   : > { %3704 = vmatpush3.bf16.msra.mxu1 %v3992_v27  ;;  %3683 = vmatprep.subr.bf16.mxu0 %v3993_v28  ;;  %v4040_v27 = vld [vmem:[%s4934_s1 + $0x780] sm:$0xff]   ;;  %v4041_v28 = vld [vmem:[%s4934_s1 + $0x748] sm:$0xff]  }
  0xba   : > { %3705 = vmatprep.subr.bf16.mxu1 %v3994_v29  ;;  %v4042_v29 = vld [vmem:[%s4934_s1 + $0x7c8] sm:$0xff]  }
  0xbc   : > { %3684 = vmatpush3.bf16.msra.mxu0 %v3995_v30  ;;  %v4043_v30 = vld [vmem:[%s4934_s1 + $0x708] sm:$0xff]  }
  0xbd   : > { %3706 = vmatpush3.bf16.msra.mxu1 %v3996_v31  ;;  %3685 = vmatprep.subr.bf16.mxu0 %v3997_v32  ;;  %v4044_v31 = vld [vmem:[%s4934_s1 + $0x788] sm:$0xff]   ;;  %v4045_v32 = vld [vmem:[%s4934_s1 + $0x750] sm:$0xff]  }
  0xbe   : > { %3707 = vmatprep.subr.bf16.mxu1 %v3998_v33  ;;  %v4046_v33 = vld [vmem:[%s4934_s1 + $0x7d0] sm:$0xff]  }
  0xc0   : > { %3686 = vmatpush3.bf16.msra.mxu0 %v3999_v34  ;;  %v4047_v34 = vld [vmem:[%s4934_s1 + $0x710] sm:$0xff]  }
  0xc1   : > { %3708 = vmatpush3.bf16.msra.mxu1 %v4000_v35  ;;  %3687 = vmatprep.subr.bf16.mxu0 %v4001_v36  ;;  %v4048_v35 = vld [vmem:[%s4934_s1 + $0x790] sm:$0xff]   ;;  %v4049_v36 = vld [vmem:[%s4934_s1 + $0x758] sm:$0xff]  }
  0xc2   : > { %3709 = vmatprep.subr.bf16.mxu1 %v4002_v37  ;;  %v4050_v37 = vld [vmem:[%s4934_s1 + $0x7d8] sm:$0xff]  }
  0xc4   : > { %3688 = vmatpush3.bf16.msra.mxu0 %v4003_v38 }
  0xc5   : > { %3710 = vmatpush3.bf16.msra.mxu1 %v4004_v39  ;;  %3717 = vmatprep.subr.bf16.mxu0 %v4005_v48  ;;  %v4051_v39 = vld [vmem:[%s4934_s1 + $0x718] sm:$0xff]  }
  0xc6   : > { %3739 = vmatprep.subr.bf16.mxu1 %v4006_v49  ;;  %v4055_v49 = vld [vmem:[%s4934_s1 + $0x720] sm:$0xff]  }
  0xc7   : > { %2868 = vmatmul.mubr.bf16.vlgmr.msra.gmra.mrb[20].mxu0 %v3182_v44 }
  0xc8   : > { %2909 = vmatmul.mubr.bf16.vlgmr.msra.gmra.mrb[20].mxu1 %v3184_v46  ;;  %3718 = vmatpush3.bf16.msra.mxu0 %v4007_v50  ;;  %v4054_v46 = vld [vmem:[%s4934_s1 + $0x7e0] sm:$0xff]  }
  0xc9   : > { %3740 = vmatpush3.bf16.msra.mxu1 %v4008_v51  ;;  %3719 = vmatprep.subr.bf16.mxu0 %v4009_v52  ;;  %v4056_v51 = vld [vmem:[%s4934_s1 + $0x7a0] sm:$0xff]  }
  0xca   : > { %3741 = vmatprep.subr.bf16.mxu1 %v4010_v53  ;;  %2949 = vmatprep.mubr.bf16.mxu0 %v3187_v20  ;;  %v3161_v52 = vld [vmem:[%s4935_s2] ss:$0 sm:$0xff] }
  0xcb   : > { %2990 = vmatprep.mubr.bf16.mxu1 %v3189_v23 }
  0xcc   : > { %3720 = vmatpush3.bf16.msra.mxu0 %v4011_v54 }
  0xcd   : > { %3742 = vmatpush3.bf16.msra.mxu1 %v4012_v55  ;;  %3721 = vmatprep.subr.bf16.mxu0 %v4013_v56  ;;  %v4057_v55 = vld [vmem:[%s4934_s1 + $0x768] sm:$0xff]  }
  0xce   : > { %3743 = vmatprep.subr.bf16.mxu1 %v4014_v57 }
  0xd0   : > { %3722 = vmatpush3.bf16.msra.mxu0 %v4015_v58  ;;  %v4058_v58 = vld [vmem:[%s4934_s1 + $0x7e8] sm:$0xff]  }
  0xd1   : > { %3744 = vmatpush3.bf16.msra.mxu1 %v4016_v59  ;;  %3723 = vmatprep.subr.bf16.mxu0 %v4017_v60 }
  0xd2   : > { %3745 = vmatprep.subr.bf16.mxu1 %v4018_v61  ;;  %v4059_v61 = vld [vmem:[%s4934_s1 + $0x728] sm:$0xff]  }
  0xd4   : > { %3724 = vmatpush3.bf16.msra.mxu0 %v4019_v62 }
  0xd5   : > { %3746 = vmatpush3.bf16.msra.mxu1 %v4020_v63  ;;  %3725 = vmatprep.subr.bf16.mxu0 %v4021_v0  ;;  %v4060_v63 = vld [vmem:[%s4934_s1 + $0x7a8] sm:$0xff]  }
  0xd6   : > { %3747 = vmatprep.subr.bf16.mxu1 %v4022_v1  ;;  %v4061_v1 = vld [vmem:[%s4934_s1 + $0x770] sm:$0xff]  }
  0xd8   : > { %3726 = vmatpush3.bf16.msra.mxu0 %v4023_v2  ;;  %v4062_v2 = vld [vmem:[%s4934_s1 + $0x7f0] sm:$0xff]  }
  0xd9   : > { %3748 = vmatpush3.bf16.msra.mxu1 %v4024_v3  ;;  %3727 = vmatprep.subr.bf16.mxu0 %v4025_v4  ;;  %v4063_v3 = vld [vmem:[%s4934_s1 + $0x730] sm:$0xff]  }
  0xda   : > { %3749 = vmatprep.subr.bf16.mxu1 %v4026_v5  ;;  %v4064_v4 = vld [vmem:[%s4934_s1 + $0x7b0] sm:$0xff]   ;;  %v4065_v5 = vld [vmem:[%s4934_s1 + $0x778] sm:$0xff]  }
  0xdc   : > { %3728 = vmatpush3.bf16.msra.mxu0 %v4027_v6  ;;  %v4066_v6 = vld [vmem:[%s4934_s1 + $0x7f8] sm:$0xff]  }
  0xdd   : > { %3750 = vmatpush3.bf16.msra.mxu1 %v4028_v7  ;;  %3729 = vmatprep.subr.bf16.mxu0 %v4029_v8  ;;  %v4067_v7 = vld [vmem:[%s4934_s1 + $0x738] sm:$0xff]  }
  0xde   : > { %3751 = vmatprep.subr.bf16.mxu1 %v4030_v9  ;;  %v4068_v8 = vld [vmem:[%s4934_s1 + $0x7b8] sm:$0xff]   ;;  %v192_v9 = vld [vmem:[%s4211_s28 + $0x70] sm:$0xff] }
  0xe0   : > { %3730 = vmatpush3.bf16.msra.mxu0 %v4031_v10  ;;  %v208_v10 = vld [vmem:[%s4211_s28 + $0xf0] sm:$0xff] }
  0xe1   : > { %3752 = vmatpush3.bf16.msra.mxu1 %v4032_v11  ;;  %3731 = vmatprep.subr.bf16.mxu0 %v4033_v12  ;;  %v193_v11 = vld [vmem:[%s4211_s28 + $0x78] sm:$0xff] }
  0xe2   : > { %3753 = vmatprep.subr.bf16.mxu1 %v4034_v13  ;;  %v209_v12 = vld [vmem:[%s4211_s28 + $0xf8] sm:$0xff]  ;;  %v3190_v13 = vcombine.low %v192_v9, %v208_v10  ;;  %s3160_s28 = sshll.u32 %s4938_s21, 3 }
  0xe3   : > { %v3193_v16 = vcombine.high %v193_v11, %v209_v12  ;;  %s175_s29 = scalar_lea.vmem %s4936_s3, %s3160_s28 }
  0xe4   : > { %3732 = vmatpush3.bf16.msra.mxu0 %v4035_v14  ;;  %v3191_v14 = vcombine.high %v192_v9, %v208_v10 }
  0xe5   : > { %3754 = vmatpush3.bf16.msra.mxu1 %v4036_v15  ;;  %3761 = vmatprep.subr.bf16.mxu0 %v4037_v24  ;;  %v3192_v15 = vcombine.low %v193_v11, %v209_v12 }
  0xe6   : > { %3783 = vmatprep.subr.bf16.mxu1 %v4038_v25 }
  0xe7   : > { %2950 = vmatmul.mubr.bf16.vlgmr.msra.gmra.mrb[24].mxu0 %v3186_v19 }
  0xe8   : > { %2991 = vmatmul.mubr.bf16.vlgmr.msra.gmra.mrb[24].mxu1 %v3188_v22  ;;  %3762 = vmatpush3.bf16.msra.mxu0 %v4039_v26 }
  0xe9   : > { %3784 = vmatpush3.bf16.msra.mxu1 %v4040_v27  ;;  %3763 = vmatprep.subr.bf16.mxu0 %v4041_v28 }
  0xea   : > { %3785 = vmatprep.subr.bf16.mxu1 %v4042_v29  ;;  %3031 = vmatprep.mubr.bf16.mxu0 %v3191_v14 }
  0xeb   : > { %3072 = vmatprep.mubr.bf16.mxu1 %v3193_v16 }
  0xec   : > { %3764 = vmatpush3.bf16.msra.mxu0 %v4043_v30 }
  0xed   : > { %3786 = vmatpush3.bf16.msra.mxu1 %v4044_v31  ;;  %3765 = vmatprep.subr.bf16.mxu0 %v4045_v32 }
  0xee   : > { %3787 = vmatprep.subr.bf16.mxu1 %v4046_v33 }
  0xf0   : > { %3766 = vmatpush3.bf16.msra.mxu0 %v4047_v34 }
  0xf1   : > { %3788 = vmatpush3.bf16.msra.mxu1 %v4048_v35  ;;  %3767 = vmatprep.subr.bf16.mxu0 %v4049_v36 }
  0xf2   : > { %3789 = vmatprep.subr.bf16.mxu1 %v4050_v37 }
  0xf4   : > { %3768 = vmatpush3.bf16.msra.mxu0 %v4051_v39 }
  0xf5   : > { %3790 = vmatpush3.bf16.msra.mxu1 %v4052_v41  ;;  %3769 = vmatprep.subr.bf16.mxu0 %v4053_v43 }
  0xf6   : > { %3791 = vmatprep.subr.bf16.mxu1 %v4054_v46 }
  0xf8   : > { %3770 = vmatpush3.bf16.msra.mxu0 %v4055_v49 }
  0xf9   : > { %3792 = vmatpush3.bf16.msra.mxu1 %v4056_v51  ;;  %3771 = vmatprep.subr.bf16.mxu0 %v4057_v55 }
  0xfa   : > { %v3469_v38 = vpop.f32.mrb[0].mxu0  ;;  %3793 = vmatprep.subr.bf16.mxu1 %v4058_v58 }
  0xfb   : > { %v3491_v40 = vpop.f32.mrb[0].mxu1  ;;  %v3470_v42 = vpop.f32.mrb[1].mxu0 }
  0xfc   : > { %v3471_v44 = vadd.f32 %v3470_v42, %v3469_v38  ;;  %v3492_v45 = vpop.f32.mrb[1].mxu1  ;;  %v3472_v48 = vpop.f32.mrb[2].mxu0  ;;  %3772 = vmatpush3.bf16.msra.mxu0 %v4059_v61 }
  0xfd   : > { %v3493_v47 = vadd.f32 %v3492_v45, %v3491_v40  ;;  %v3494_v50 = vpop.f32.mrb[2].mxu1  ;;  %v3473_v53 = vpop.f32.mrb[3].mxu0  ;;  %3794 = vmatpush3.bf16.msra.mxu1 %v4060_v63  ;;  %3773 = vmatprep.subr.bf16.mxu0 %v4061_v1 }
  0xfe   : > { %v2460_v54 = vadd.f32 %v3471_v44, %v3161_v52  ;;  %v3474_v56 = vadd.f32 %v3473_v53, %v3472_v48  ;;  %v3495_v57 = vpop.f32.mrb[3].mxu1  ;;  %3795 = vmatprep.subr.bf16.mxu1 %v4062_v2 }
  0xff   : > { %v3496_v59 = vadd.f32 %v3495_v57, %v3494_v50 }
 0x100   : > { %v2501_v60 = vadd.f32 %v3493_v47, %v2460_v54  ;;  %v2463_v62 = vadd.f32 %v3474_v56, %v3161_v52  ;;  %3774 = vmatpush3.bf16.msra.mxu0 %v4063_v3 }
 0x101   : > { %3796 = vmatpush3.bf16.msra.mxu1 %v4064_v4  ;;  %3775 = vmatprep.subr.bf16.mxu0 %v4065_v5 }
 0x102   : > { %v2504_v0 = vadd.f32 %v3496_v59, %v2463_v62  ;;  %3797 = vmatprep.subr.bf16.mxu1 %v4066_v6 }
 0x104   : > { %3776 = vmatpush3.bf16.msra.mxu0 %v4067_v7 }
 0x105   : > { %3798 = vmatpush3.bf16.msra.mxu1 %v4068_v8 }
 0x107   : > { %3032 = vmatmul.mubr.bf16.vlgmr.msra.gmra.mrb[28].mxu0 %v3190_v13 }
 0x108   : > { %3073 = vmatmul.mubr.bf16.vlgmr.msra.gmra.mrb[28].mxu1 %v3192_v15 }
 0x11a   : > { %v3513_v17 = vpop.f32.mrb[4].mxu0 }
 0x11b   : > { %v3535_v18 = vpop.f32.mrb[4].mxu1  ;;  %v3514_v19 = vpop.f32.mrb[5].mxu0 }
 0x11c   : > { %v3515_v20 = vadd.f32 %v3514_v19, %v3513_v17  ;;  %v3536_v21 = vpop.f32.mrb[5].mxu1  ;;  %v3516_v22 = vpop.f32.mrb[6].mxu0 }
 0x11d   : > { %v3537_v23 = vadd.f32 %v3536_v21, %v3535_v18  ;;  %v3538_v24 = vpop.f32.mrb[6].mxu1  ;;  %v3517_v25 = vpop.f32.mrb[7].mxu0 }
 0x11e   : > { %v2542_v26 = vadd.f32 %v3515_v20, %v2501_v60  ;;  %v3518_v27 = vadd.f32 %v3517_v25, %v3516_v22  ;;  %v3539_v28 = vpop.f32.mrb[7].mxu1 }
 0x11f   : > { %v3540_v29 = vadd.f32 %v3539_v28, %v3538_v24 }
 0x120   : > { %v2583_v30 = vadd.f32 %v3537_v23, %v2542_v26  ;;  %v2545_v31 = vadd.f32 %v3518_v27, %v2504_v0 }
 0x122   : > { %v2586_v32 = vadd.f32 %v3540_v29, %v2545_v31 }
 0x13a   : > { %v3557_v33 = vpop.f32.mrb[8].mxu0 }
 0x13b   : > { %v3579_v34 = vpop.f32.mrb[8].mxu1  ;;  %v3558_v35 = vpop.f32.mrb[9].mxu0 }
 0x13c   : > { %v3580_v36 = vpop.f32.mrb[9].mxu1  ;;  %v3559_v37 = vadd.f32 %v3558_v35, %v3557_v33  ;;  %v3560_v39 = vpop.f32.mrb[10].mxu0 }
 0x13d   : > { %v3581_v38 = vadd.f32 %v3580_v36, %v3579_v34  ;;  %v3582_v40 = vpop.f32.mrb[10].mxu1  ;;  %v3561_v41 = vpop.f32.mrb[11].mxu0 }
 0x13e   : > { %v3583_v42 = vpop.f32.mrb[11].mxu1  ;;  %v2624_v43 = vadd.f32 %v3559_v37, %v2583_v30  ;;  %v3562_v44 = vadd.f32 %v3561_v41, %v3560_v39 }
 0x13f   : > { %v3584_v45 = vadd.f32 %v3583_v42, %v3582_v40 }
 0x140   : > { %v2665_v46 = vadd.f32 %v3581_v38, %v2624_v43  ;;  %v2627_v47 = vadd.f32 %v3562_v44, %v2586_v32 }
 0x142   : > { %v2668_v48 = vadd.f32 %v3584_v45, %v2627_v47 }
 0x15a   : > { %v3601_v49 = vpop.f32.mrb[12].mxu0 }
 0x15b   : > { %v3623_v50 = vpop.f32.mrb[12].mxu1  ;;  %v3602_v51 = vpop.f32.mrb[13].mxu0 }
 0x15c   : > { %v3603_v52 = vadd.f32 %v3602_v51, %v3601_v49  ;;  %v3624_v53 = vpop.f32.mrb[13].mxu1  ;;  %v3604_v54 = vpop.f32.mrb[14].mxu0 }
 0x15d   : > { %v3625_v55 = vadd.f32 %v3624_v53, %v3623_v50  ;;  %v3626_v56 = vpop.f32.mrb[14].mxu1  ;;  %v3605_v57 = vpop.f32.mrb[15].mxu0 }
 0x15e   : > { %v2706_v58 = vadd.f32 %v3603_v52, %v2665_v46  ;;  %v3606_v59 = vadd.f32 %v3605_v57, %v3604_v54  ;;  %v3627_v60 = vpop.f32.mrb[15].mxu1 }
 0x15f   : > { %v3628_v61 = vadd.f32 %v3627_v60, %v3626_v56 }
 0x160   : > { %v2747_v62 = vadd.f32 %v3625_v55, %v2706_v58  ;;  %v2709_v63 = vadd.f32 %v3606_v59, %v2668_v48 }
 0x162   : > { %v2750_v0 = vadd.f32 %v3628_v61, %v2709_v63 }
 0x17a   : > { %v3645_v1 = vpop.f32.mrb[16].mxu0 }
 0x17b   : > { %v3667_v2 = vpop.f32.mrb[16].mxu1  ;;  %v3646_v3 = vpop.f32.mrb[17].mxu0 }
 0x17c   : > { %v3647_v4 = vadd.f32 %v3646_v3, %v3645_v1  ;;  %v3668_v5 = vpop.f32.mrb[17].mxu1  ;;  %v3648_v6 = vpop.f32.mrb[18].mxu0 }
 0x17d   : > { %v3669_v7 = vadd.f32 %v3668_v5, %v3667_v2  ;;  %v3670_v8 = vpop.f32.mrb[18].mxu1  ;;  %v3649_v9 = vpop.f32.mrb[19].mxu0 }
 0x17e   : > { %v2788_v10 = vadd.f32 %v3647_v4, %v2747_v62  ;;  %v3650_v11 = vadd.f32 %v3649_v9, %v3648_v6  ;;  %v3671_v12 = vpop.f32.mrb[19].mxu1 }
 0x17f   : > { %v3672_v13 = vadd.f32 %v3671_v12, %v3670_v8 }
 0x180   : > { %v2829_v14 = vadd.f32 %v3669_v7, %v2788_v10  ;;  %v2791_v15 = vadd.f32 %v3650_v11, %v2750_v0 }
 0x182   : > { %v2832_v16 = vadd.f32 %v3672_v13, %v2791_v15 }
 0x19a   : > { %v3689_v17 = vpop.f32.mrb[20].mxu0 }
 0x19b   : > { %v3711_v18 = vpop.f32.mrb[20].mxu1  ;;  %v3690_v19 = vpop.f32.mrb[21].mxu0 }
 0x19c   : > { %v3712_v20 = vpop.f32.mrb[21].mxu1  ;;  %v3691_v21 = vadd.f32 %v3690_v19, %v3689_v17  ;;  %v3692_v23 = vpop.f32.mrb[22].mxu0 }
 0x19d   : > { %v3713_v22 = vadd.f32 %v3712_v20, %v3711_v18  ;;  %v3714_v24 = vpop.f32.mrb[22].mxu1  ;;  %v3693_v25 = vpop.f32.mrb[23].mxu0 }
 0x19e   : > { %v3715_v26 = vpop.f32.mrb[23].mxu1  ;;  %v2870_v27 = vadd.f32 %v3691_v21, %v2829_v14  ;;  %v3694_v28 = vadd.f32 %v3693_v25, %v3692_v23 }
 0x19f   : > { %v3716_v29 = vadd.f32 %v3715_v26, %v3714_v24 }
 0x1a0   : > { %v2911_v30 = vadd.f32 %v3713_v22, %v2870_v27  ;;  %v2873_v31 = vadd.f32 %v3694_v28, %v2832_v16 }
 0x1a2   : > { %v2914_v32 = vadd.f32 %v3716_v29, %v2873_v31 }
 0x1ba   : > { %v3733_v33 = vpop.f32.mrb[24].mxu0 }
 0x1bb   : > { %v3755_v34 = vpop.f32.mrb[24].mxu1  ;;  %v3734_v35 = vpop.f32.mrb[25].mxu0 }
 0x1bc   : > { %v3735_v36 = vadd.f32 %v3734_v35, %v3733_v33  ;;  %v3756_v37 = vpop.f32.mrb[25].mxu1  ;;  %v3736_v38 = vpop.f32.mrb[26].mxu0 }
 0x1bd   : > { %v3757_v39 = vadd.f32 %v3756_v37, %v3755_v34  ;;  %v3758_v40 = vpop.f32.mrb[26].mxu1  ;;  %v3737_v41 = vpop.f32.mrb[27].mxu0 }
 0x1be   : > { %v2952_v42 = vadd.f32 %v3735_v36, %v2911_v30  ;;  %v3738_v43 = vadd.f32 %v3737_v41, %v3736_v38  ;;  %v3759_v44 = vpop.f32.mrb[27].mxu1 }
 0x1bf   : > { %v3760_v45 = vadd.f32 %v3759_v44, %v3758_v40 }
 0x1c0   : > { %v2993_v46 = vadd.f32 %v3757_v39, %v2952_v42  ;;  %v2955_v47 = vadd.f32 %v3738_v43, %v2914_v32 }
 0x1c2   : > { %v2996_v48 = vadd.f32 %v3760_v45, %v2955_v47 }
 0x1da   : > { %v3777_v49 = vpop.f32.mrb[28].mxu0 }
 0x1db   : > { %v3799_v50 = vpop.f32.mrb[28].mxu1  ;;  %v3778_v51 = vpop.f32.mrb[29].mxu0 }
 0x1dc   : > { %v3800_v52 = vpop.f32.mrb[29].mxu1  ;;  %v3779_v53 = vadd.f32 %v3778_v51, %v3777_v49  ;;  %v3780_v55 = vpop.f32.mrb[30].mxu0 }
 0x1dd   : > { %v3801_v54 = vadd.f32 %v3800_v52, %v3799_v50  ;;  %v3802_v56 = vpop.f32.mrb[30].mxu1  ;;  %v3781_v57 = vpop.f32.mrb[31].mxu0 }
 0x1de   : > { %v3803_v58 = vpop.f32.mrb[31].mxu1  ;;  %v3034_v59 = vadd.f32 %v3779_v53, %v2993_v46  ;;  %v3782_v60 = vadd.f32 %v3781_v57, %v3780_v55 }
 0x1df   : > { %v3804_v61 = vadd.f32 %v3803_v58, %v3802_v56 }
 0x1e0   : > { %v3075_v62 = vadd.f32 %v3801_v54, %v3034_v59  ;;  %v3037_v63 = vadd.f32 %v3782_v60, %v2996_v48 }
 0x1e2   : > { %v3081_v0 = vsub.f32 0.0, %v3075_v62  ;;  %v3078_v1 = vadd.f32 %v3804_v61, %v3037_v63 }
 0x1e4   : > { %v3083_v2 = vmul.f32 1.442695, %v3081_v0  ;;  %v3082_v3 = vsub.f32 0.0, %v3078_v1 }
 0x1e6   : > { %4069 = vpow2.f32 %v3083_v2  ;;  %v3085_v4 = vmul.f32 1.442695, %v3082_v3 }
 0x1e8   : > { %4071 = vpow2.f32 %v3085_v4 }
 0x1f0   : > { %v4070_v5 = vpop.eup %4069 }
 0x1f1   : > { %v3087_v6 = vadd.f32 1.0, %v4070_v5 }
 0x1f2   : > { %v4072_v7 = vpop.eup %4071 }
 0x1f3   : > { %4073 = vrcp.f32 %v3087_v6  ;;  %v3088_v8 = vadd.f32 1.0, %v4072_v7 }
 0x1f5   : > { %4075 = vrcp.f32 %v3088_v8 }
 0x1fd   : > { %v4074_v9 = vpop.eup %4073 }
 0x1fe   : > { %3093 = vst [vmem:[%s175_s29] sm:$0xff] %v4074_v9 }
 0x1ff   : > { %v4076_v10 = vpop.eup %4075 }
 0x200   : > { %3094 = vst [vmem:[%s175_s29 + $0x8] sm:$0xff] %v4076_v10 }
 0x201 PF: > { %s13_s12 = sadd.s32 1, %s4083_s12  }
 0x202   : > { %p10_p4 = scmp.ge.s32.totalorder %s13_s12, 4  }
 0x204   :  { %12 = sbr.rel (!%p10_p4) target bundleno = 1 (0x1), region = 62 }

</bundles_post_ra>
